<compile_context>
chip_gen: v5e
topology: v5e:2x2
jax: 0.10.0
libtpu: 0.0.40
codegen_flags: <defaults>
</compile_context>

<pallas_src>
import jax
import jax.numpy as jnp
from jax import lax
from jax.experimental import pallas as pl
from jax.experimental.pallas import tpu as pltpu


TK_MAX = 8192            # max K-tile (elements) for the first Linear
HIDDEN_PAD = 128         # hidden 100 -> 128 (lane-dense intermediate)
OUT_PAD = 128            # labels 37 -> 128 (lane-dense output stores)
VMEM_LIMIT = 32 * 1024 * 1024
BN_EPS = 1e-5


def _round_up(x, m):
    return ((x + m - 1) // m) * m


def _fc_tiling(flat):
    """K-tile and padded reduction length for the first Linear."""
    tk = min(TK_MAX, _round_up(flat, 128))
    flat_pad = pl.cdiv(flat, tk) * tk
    return tk, flat_pad


def _row_chunk(n_rows, target=16):
    """Largest divisor of n_rows that is <= target (bounds in-kernel temps)."""
    rc = 1
    for d in range(1, min(target, n_rows) + 1):
        if n_rows % d == 0:
            rc = d
    return rc


# --------------------------------------------------------------------------
# Phase 1: Conv2d(1, C, 3, bias=False, valid) + ReLU, per-channel sum / sumsq
# --------------------------------------------------------------------------
def _conv_relu_kernel(x_ref, wt_ref, y_ref, stat_ref):
    _, H, W = x_ref.shape
    KH, KW, C = wt_ref.shape
    _, Ho, Wo, _ = y_ref.shape
    rc = _row_chunk(Ho)

    w_taps = wt_ref[...]                              # (KH, KW, C), tiny
    csum = jnp.zeros((1, C), jnp.float32)
    csq = jnp.zeros((1, C), jnp.float32)

    # Row-chunked conv: broadcast the single input channel across the C=64
    # lane axis once per chunk (never the whole image), then 9 tap FMAs on
    # shifted windows of that chunk.
    for r0 in range(0, Ho, rc):
        xs = x_ref[:, r0:r0 + rc + KH - 1, :]                 # (1, rc+2, W)
        xb = jnp.broadcast_to(xs[..., None], (1, rc + KH - 1, W, C))
        acc = None
        for kh in range(KH):
            for kw in range(KW):
                tap = w_taps[kh, kw, :]                       # (C,) on lanes
                term = xb[:, kh:kh + rc, kw:kw + Wo, :] * tap[None, None,
                                                              None, :]
                acc = term if acc is None else acc + term
        yv = jnp.maximum(acc, 0.0)                            # ReLU, f32
        # BatchNorm batch-statistics partials (from f32 values, pre-cast).
        csum = csum + jnp.sum(yv, axis=(1, 2))                # (1, C)
        csq = csq + jnp.sum(yv * yv, axis=(1, 2))             # (1, C)
        y_ref[:, r0:r0 + rc, :, :] = yv.astype(y_ref.dtype)   # bf16 store

    stat_ref[:, 0:1, :] = csum[:, None, :]
    stat_ref[:, 1:2, :] = csq[:, None, :]


# --------------------------------------------------------------------------
# Phase 2: BatchNorm scale/shift + MaxPool2d(kernel=2, stride=2)
# --------------------------------------------------------------------------
def _bn_pool_kernel(y_ref, scale_ref, shift_ref, out_ref, yh_scr):
    _, Ho, Wo, C = y_ref.shape
    _, Hp, Wp, _ = out_ref.shape

    # BN folded into one scale/shift FMA (scale/shift precomputed outside).
    y = y_ref[...].astype(jnp.float32) * scale_ref[...] + shift_ref[...]

    # H pooling on the value (leading-dim split reshape, no data movement);
    # W pooling via one small scratch + sublane-strided reads.
    y = y[:, :2 * Hp, :, :]
    yr = y.reshape(1, Hp, 2, Wo, C)
    yh_scr[...] = jnp.maximum(yr[:, :, 0, :, :], yr[:, :, 1, :, :])
    out_ref[...] = jnp.maximum(
        yh_scr[:, :, pl.ds(0, Wp, 2), :],
        yh_scr[:, :, pl.ds(1, Wp, 2), :]).astype(out_ref.dtype)


# --------------------------------------------------------------------------
# FC: Linear (K-tiled, bf16 x bf16, f32 accumulate) -> ReLU -> Linear
# --------------------------------------------------------------------------
def _fc_kernel(f_ref, w1_ref, b1_ref, w2_ref, b2_ref, out_ref, acc_ref):
    k = pl.program_id(0)

    @pl.when(k == 0)
    def _():
        acc_ref[...] = jnp.zeros_like(acc_ref)

    acc_ref[...] += jnp.dot(f_ref[...], w1_ref[...],
                            preferred_element_type=jnp.float32)

    @pl.when(k == pl.num_programs(0) - 1)
    def _():
        h = jnp.maximum(acc_ref[...] + b1_ref[...], 0.0).astype(jnp.bfloat16)
        out_ref[...] = (jnp.dot(h, w2_ref[...],
                                preferred_element_type=jnp.float32)
                        + b2_ref[...])


# --------------------------------------------------------------------------
# Parameters (PyTorch layouts / init_weights) and one-time re-layout.
# --------------------------------------------------------------------------
def init_params(key, *, in_ch=1, conv_ch=64, k=3, spatial=16, hidden=100,
                num_labels=37):
    kc, k1, k2 = jax.random.split(key, 3)
    conv_out = spatial - k + 1
    pooled = (conv_out - 2) // 2 + 1
    flat = conv_ch * pooled * pooled
    # Conv2d weight (out_ch, in_ch, kH, kW), kaiming-normal, fan_in = in_ch*k*k
    wc = jax.random.normal(kc, (conv_ch, in_ch, k, k), jnp.float32) * jnp.sqrt(
        2.0 / (in_ch * k * k))
    gamma = jnp.ones((conv_ch,), jnp.float32)     # fresh BatchNorm2d affine
    beta = jnp.zeros((conv_ch,), jnp.float32)
    # Linear(flat, hidden): kaiming-normal weight, zero bias
    w1 = jax.random.normal(k1, (hidden, flat), jnp.float32) * jnp.sqrt(2.0 / flat)
    b1 = jnp.zeros((hidden,), jnp.float32)
    # Linear(hidden, num_labels): xavier-uniform weight, zero bias
    limit = float(jnp.sqrt(6.0 / (hidden + num_labels)))
    w2 = jax.random.uniform(k2, (num_labels, hidden), jnp.float32, -limit, limit)
    b2 = jnp.zeros((num_labels,), jnp.float32)
    return dict(conv_w=wc, gamma=gamma, beta=beta, w1=w1, b1=b1, w2=w2, b2=b2)


def prepare_params(params, *, spatial, hidden_pad=HIDDEN_PAD, out_pad=OUT_PAD):
    """One-time weight re-layout (outside the per-call forward path)."""
    conv_ch, _, kh, _ = params["conv_w"].shape
    conv_out = spatial - kh + 1
    hp = wp = conv_out // 2
    hidden, flat = params["w1"].shape
    labels = params["w2"].shape[0]
    assert flat == conv_ch * hp * wp
    _, flat_pad = _fc_tiling(flat)

    # Conv weight (Cout, 1, kH, kW) -> (kH, kW, Cout), channels on lanes.
    wc = jnp.transpose(params["conv_w"][:, 0, :, :], (1, 2, 0))

    # Linear(flat, hidden):
    #  * fold PyTorch's NCHW flatten into the rows: (c,h,w) -> (h,w,c)
    #  * transpose to (F, hidden) so the kernel never transposes per call
    #  * zero-pad to (F_pad, hidden_pad), bf16 (f32 accumulation in-kernel).
    w1 = params["w1"].reshape(hidden, conv_ch, hp, wp)
    w1 = jnp.transpose(w1, (2, 3, 1, 0)).reshape(flat, hidden)
    w1 = jnp.pad(w1, ((0, flat_pad - flat), (0, hidden_pad - hidden)))
    w1 = w1.astype(jnp.bfloat16)
    b1 = jnp.pad(params["b1"], (0, hidden_pad - hidden)).reshape(1, hidden_pad)
    w2 = jnp.pad(params["w2"].T,
                 ((0, hidden_pad - hidden), (0, out_pad - labels)))
    w2 = w2.astype(jnp.bfloat16)
    b2 = jnp.pad(params["b2"], (0, out_pad - labels)).reshape(1, out_pad)
    return dict(conv_w=wc, gamma=params["gamma"], beta=params["beta"],
                w1=w1, b1=b1, w2=w2, b2=b2)


# --------------------------------------------------------------------------
# Forward
# --------------------------------------------------------------------------
def galaxy_net_forward(x_nchw, prep, *, num_labels=37):
    B, _, H, W = x_nchw.shape
    x = x_nchw[:, 0, :, :]                        # Cin = 1 (is_rgb=False)
    wc = prep["conv_w"]
    KH, KW, C = wc.shape
    Ho, Wo = H - KH + 1, W - KW + 1
    Hp, Wp = Ho // 2, Wo // 2

    # ---- Phase 1: conv + ReLU + BN partial stats (batch-parallel) ----------
    y, stats = pl.pallas_call(
        _conv_relu_kernel,
        out_shape=(jax.ShapeDtypeStruct((B, Ho, Wo, C), jnp.bfloat16),
                   jax.ShapeDtypeStruct((B, 2, C), jnp.float32)),
        grid=(B,),
        in_specs=[
            pl.BlockSpec((1, H, W), lambda b: (b, 0, 0)),
            pl.BlockSpec((KH, KW, C), lambda b: (0, 0, 0)),
        ],
        out_specs=(
            pl.BlockSpec((1, Ho, Wo, C), lambda b: (b, 0, 0, 0)),
            pl.BlockSpec((1, 2, C), lambda b: (b, 0, 0)),
        ),
        compiler_params=pltpu.CompilerParams(
            dimension_semantics=("parallel",),
            vmem_limit_bytes=VMEM_LIMIT),
    )(x, wc)

    # ---- BN batch statistics -> scale/shift (tiny, C=64 elements) ----------
    n = float(B * Ho * Wo)
    csum = jnp.sum(stats[:, 0, :], axis=0)
    csq = jnp.sum(stats[:, 1, :], axis=0)
    mean = csum / n
    var = jnp.maximum(csq / n - mean * mean, 0.0)     # clamp one-pass variance
    scale_c = prep["gamma"] * lax.rsqrt(var + BN_EPS)
    shift_c = prep["beta"] - mean * scale_c
    scale = scale_c.reshape(1, 1, 1, C)
    shift = shift_c.reshape(1, 1, 1, C)

    # ---- Phase 2: BN apply + 2x2 maxpool (batch-parallel), bf16 out --------
    pooled = pl.pallas_call(
        _bn_pool_kernel,
        out_shape=jax.ShapeDtypeStruct((B, Hp, Wp, C), jnp.bfloat16),
        grid=(B,),
        in_specs=[
            pl.BlockSpec((1, Ho, Wo, C), lambda b: (b, 0, 0, 0)),
            pl.BlockSpec((1, 1, 1, C), lambda b: (0, 0, 0, 0)),
            pl.BlockSpec((1, 1, 1, C), lambda b: (0, 0, 0, 0)),
        ],
        out_specs=pl.BlockSpec((1, Hp, Wp, C), lambda b: (b, 0, 0, 0)),
        scratch_shapes=[pltpu.VMEM((1, Hp, Wo, C), jnp.float32)],
        compiler_params=pltpu.CompilerParams(
            dimension_semantics=("parallel",),
            vmem_limit_bytes=VMEM_LIMIT),
    )(y, scale, shift)

    # nn.Flatten: the NCHW (channel-major) permutation lives in w1's rows, so
    # the NHWC pooled output flattens with a free row-major reshape; the small
    # bf16 zero-pad aligns F to the K-tile.
    F = Hp * Wp * C
    tk, F_pad = _fc_tiling(F)
    assert prep["w1"].shape[0] == F_pad
    flat = pooled.reshape(B, F)
    if F_pad != F:
        flat = jnp.pad(flat, ((0, 0), (0, F_pad - F)))

    Hd = prep["w1"].shape[1]
    Lp = prep["w2"].shape[1]
    k_steps = F_pad // tk

    # Deeper pipelining on the (memory-bound) w1 stream when the K loop is
    # deep; plain double-buffering otherwise.
    if k_steps >= 3:
        w1_spec = pl.BlockSpec((tk, Hd), lambda k: (k, 0),
                               pipeline_mode=pl.Buffered(3))
    else:
        w1_spec = pl.BlockSpec((tk, Hd), lambda k: (k, 0))

    cost = pl.CostEstimate(
        flops=2 * B * F_pad * Hd + 2 * B * Hd * Lp,
        transcendentals=0,
        bytes_accessed=(F_pad * Hd * 2 + B * F_pad * 2
                        + Hd * Lp * 2 + (Hd + Lp) * 4 + B * Lp * 4),
    )

    out_padded = pl.pallas_call(
        _fc_kernel,
        out_shape=jax.ShapeDtypeStruct((B, Lp), jnp.float32),
        grid=(k_steps,),
        in_specs=[
            pl.BlockSpec((B, tk), lambda k: (0, k)),      # activations (bf16)
            w1_spec,                                      # w1 K-tile (bf16)
            pl.BlockSpec((1, Hd), lambda k: (0, 0)),      # b1 (padded to 128)
            pl.BlockSpec((Hd, Lp), lambda k: (0, 0)),     # w2 (bf16, 128x128)
            pl.BlockSpec((1, Lp), lambda k: (0, 0)),      # b2 (padded to 128)
        ],
        out_specs=pl.BlockSpec((B, Lp), lambda k: (0, 0)),
        scratch_shapes=[pltpu.VMEM((B, Hd), jnp.float32)],
        compiler_params=pltpu.CompilerParams(
            dimension_semantics=("arbitrary",),
            vmem_limit_bytes=VMEM_LIMIT),
        cost_estimate=cost,
    )(flat, prep["w1"], prep["b1"], prep["w2"], prep["b2"])

    # Slice the lane-dense padded output back to the 37 labels.
    return out_padded[:, :num_labels]


if __name__ == "__main__":
    key = jax.random.PRNGKey(0)
    kx, kp = jax.random.split(key)
    B, Cin, H, W = 2, 1, 16, 16          # small spatial size (module uses 128)
    x = jax.random.normal(kx, (B, Cin, H, W), jnp.float32)
    params = init_params(kp, spatial=H)
    prep = prepare_params(params, spatial=H)
    fwd = jax.jit(galaxy_net_forward)
    out = jax.block_until_ready(fwd(x, prep))
    assert out.shape == (B, 37) and out.dtype == jnp.float32
    print("KERNEL_OK")
</pallas_src>

<mosaic_0001>
module attributes {stable_mosaic.version = 11 : i64} {
  func.func @_conv_relu_kernel(%arg0: i32, %arg1: memref<1x16x16xf32, #tpu.memory_space<vmem>>, %arg2: memref<3x3x64xf32, #tpu.memory_space<vmem>>, %arg3: memref<1x14x14x64xbf16, #tpu.memory_space<vmem>>, %arg4: memref<1x2x64xf32, #tpu.memory_space<vmem>>) attributes {dimension_semantics = [#tpu.dimension_semantics<parallel>], iteration_bounds = array<i64: 2>, scalar_prefetch = 0 : i64, scratch_operands = 0 : i64, tpu.core_type = #tpu.core_type<tc>, window_params = [{transform_indices = @transform_0, window_bounds = array<i64: 1, 16, 16>}, {pipeline_mode = #tpu.pipeline_mode<synchronous>, transform_indices = @transform_1, window_bounds = array<i64: 3, 3, 64>}, {transform_indices = @transform_2, window_bounds = array<i64: 1, 14, 14, 64>}, {transform_indices = @transform_3, window_bounds = array<i64: 1, 2, 64>}]} {
    %c0 = arith.constant 0 : index
    %c0_0 = arith.constant 0 : index
    %c0_1 = arith.constant 0 : index
    %0 = vector.load %arg2[%c0, %c0_0, %c0_1] : memref<3x3x64xf32, #tpu.memory_space<vmem>>, vector<3x3x64xf32>
    %cst = arith.constant 0.000000e+00 : f32
    %1 = vector.broadcast %cst : f32 to vector<1x64xf32>
    %cst_2 = arith.constant 0.000000e+00 : f32
    %2 = vector.broadcast %cst_2 : f32 to vector<1x64xf32>
    %c0_3 = arith.constant 0 : index
    %c0_4 = arith.constant 0 : index
    %c0_5 = arith.constant 0 : index
    %3 = vector.load %arg1[%c0_3, %c0_4, %c0_5] : memref<1x16x16xf32, #tpu.memory_space<vmem>>, vector<1x16x16xf32>
    %4 = vector.shape_cast %3 : vector<1x16x16xf32> to vector<1x16x16x1xf32>
    %5 = vector.shape_cast %4 : vector<1x16x16x1xf32> to vector<1x16x16x1xf32>
    %6 = vector.broadcast %5 : vector<1x16x16x1xf32> to vector<1x16x16x64xf32>
    %7 = vector.extract_strided_slice %0 {offsets = [0, 0, 0], sizes = [1, 1, 64], strides = [1, 1, 1]} : vector<3x3x64xf32> to vector<1x1x64xf32>
    %8 = vector.shape_cast %7 : vector<1x1x64xf32> to vector<64xf32>
    %9 = vector.extract_strided_slice %6 {offsets = [0, 0, 0, 0], sizes = [1, 14, 14, 64], strides = [1, 1, 1, 1]} : vector<1x16x16x64xf32> to vector<1x14x14x64xf32>
    %10 = vector.shape_cast %8 : vector<64xf32> to vector<1x1x1x64xf32>
    %11 = vector.broadcast %10 : vector<1x1x1x64xf32> to vector<1x14x14x64xf32>
    %12 = arith.mulf %9, %11 : vector<1x14x14x64xf32>
    %13 = vector.extract_strided_slice %0 {offsets = [0, 1, 0], sizes = [1, 1, 64], strides = [1, 1, 1]} : vector<3x3x64xf32> to vector<1x1x64xf32>
    %14 = vector.shape_cast %13 : vector<1x1x64xf32> to vector<64xf32>
    %15 = vector.extract_strided_slice %6 {offsets = [0, 0, 1, 0], sizes = [1, 14, 14, 64], strides = [1, 1, 1, 1]} : vector<1x16x16x64xf32> to vector<1x14x14x64xf32>
    %16 = vector.shape_cast %14 : vector<64xf32> to vector<1x1x1x64xf32>
    %17 = vector.broadcast %16 : vector<1x1x1x64xf32> to vector<1x14x14x64xf32>
    %18 = arith.mulf %15, %17 : vector<1x14x14x64xf32>
    %19 = arith.addf %12, %18 : vector<1x14x14x64xf32>
    %20 = vector.extract_strided_slice %0 {offsets = [0, 2, 0], sizes = [1, 1, 64], strides = [1, 1, 1]} : vector<3x3x64xf32> to vector<1x1x64xf32>
    %21 = vector.shape_cast %20 : vector<1x1x64xf32> to vector<64xf32>
    %22 = vector.extract_strided_slice %6 {offsets = [0, 0, 2, 0], sizes = [1, 14, 14, 64], strides = [1, 1, 1, 1]} : vector<1x16x16x64xf32> to vector<1x14x14x64xf32>
    %23 = vector.shape_cast %21 : vector<64xf32> to vector<1x1x1x64xf32>
    %24 = vector.broadcast %23 : vector<1x1x1x64xf32> to vector<1x14x14x64xf32>
    %25 = arith.mulf %22, %24 : vector<1x14x14x64xf32>
    %26 = arith.addf %19, %25 : vector<1x14x14x64xf32>
    %27 = vector.extract_strided_slice %0 {offsets = [1, 0, 0], sizes = [1, 1, 64], strides = [1, 1, 1]} : vector<3x3x64xf32> to vector<1x1x64xf32>
    %28 = vector.shape_cast %27 : vector<1x1x64xf32> to vector<64xf32>
    %29 = vector.extract_strided_slice %6 {offsets = [0, 1, 0, 0], sizes = [1, 14, 14, 64], strides = [1, 1, 1, 1]} : vector<1x16x16x64xf32> to vector<1x14x14x64xf32>
    %30 = vector.shape_cast %28 : vector<64xf32> to vector<1x1x1x64xf32>
    %31 = vector.broadcast %30 : vector<1x1x1x64xf32> to vector<1x14x14x64xf32>
    %32 = arith.mulf %29, %31 : vector<1x14x14x64xf32>
    %33 = arith.addf %26, %32 : vector<1x14x14x64xf32>
    %34 = vector.extract_strided_slice %0 {offsets = [1, 1, 0], sizes = [1, 1, 64], strides = [1, 1, 1]} : vector<3x3x64xf32> to vector<1x1x64xf32>
    %35 = vector.shape_cast %34 : vector<1x1x64xf32> to vector<64xf32>
    %36 = vector.extract_strided_slice %6 {offsets = [0, 1, 1, 0], sizes = [1, 14, 14, 64], strides = [1, 1, 1, 1]} : vector<1x16x16x64xf32> to vector<1x14x14x64xf32>
    %37 = vector.shape_cast %35 : vector<64xf32> to vector<1x1x1x64xf32>
    %38 = vector.broadcast %37 : vector<1x1x1x64xf32> to vector<1x14x14x64xf32>
    %39 = arith.mulf %36, %38 : vector<1x14x14x64xf32>
    %40 = arith.addf %33, %39 : vector<1x14x14x64xf32>
    %41 = vector.extract_strided_slice %0 {offsets = [1, 2, 0], sizes = [1, 1, 64], strides = [1, 1, 1]} : vector<3x3x64xf32> to vector<1x1x64xf32>
    %42 = vector.shape_cast %41 : vector<1x1x64xf32> to vector<64xf32>
    %43 = vector.extract_strided_slice %6 {offsets = [0, 1, 2, 0], sizes = [1, 14, 14, 64], strides = [1, 1, 1, 1]} : vector<1x16x16x64xf32> to vector<1x14x14x64xf32>
    %44 = vector.shape_cast %42 : vector<64xf32> to vector<1x1x1x64xf32>
    %45 = vector.broadcast %44 : vector<1x1x1x64xf32> to vector<1x14x14x64xf32>
    %46 = arith.mulf %43, %45 : vector<1x14x14x64xf32>
    %47 = arith.addf %40, %46 : vector<1x14x14x64xf32>
    %48 = vector.extract_strided_slice %0 {offsets = [2, 0, 0], sizes = [1, 1, 64], strides = [1, 1, 1]} : vector<3x3x64xf32> to vector<1x1x64xf32>
    %49 = vector.shape_cast %48 : vector<1x1x64xf32> to vector<64xf32>
    %50 = vector.extract_strided_slice %6 {offsets = [0, 2, 0, 0], sizes = [1, 14, 14, 64], strides = [1, 1, 1, 1]} : vector<1x16x16x64xf32> to vector<1x14x14x64xf32>
    %51 = vector.shape_cast %49 : vector<64xf32> to vector<1x1x1x64xf32>
    %52 = vector.broadcast %51 : vector<1x1x1x64xf32> to vector<1x14x14x64xf32>
    %53 = arith.mulf %50, %52 : vector<1x14x14x64xf32>
    %54 = arith.addf %47, %53 : vector<1x14x14x64xf32>
    %55 = vector.extract_strided_slice %0 {offsets = [2, 1, 0], sizes = [1, 1, 64], strides = [1, 1, 1]} : vector<3x3x64xf32> to vector<1x1x64xf32>
    %56 = vector.shape_cast %55 : vector<1x1x64xf32> to vector<64xf32>
    %57 = vector.extract_strided_slice %6 {offsets = [0, 2, 1, 0], sizes = [1, 14, 14, 64], strides = [1, 1, 1, 1]} : vector<1x16x16x64xf32> to vector<1x14x14x64xf32>
    %58 = vector.shape_cast %56 : vector<64xf32> to vector<1x1x1x64xf32>
    %59 = vector.broadcast %58 : vector<1x1x1x64xf32> to vector<1x14x14x64xf32>
    %60 = arith.mulf %57, %59 : vector<1x14x14x64xf32>
    %61 = arith.addf %54, %60 : vector<1x14x14x64xf32>
    %62 = vector.extract_strided_slice %0 {offsets = [2, 2, 0], sizes = [1, 1, 64], strides = [1, 1, 1]} : vector<3x3x64xf32> to vector<1x1x64xf32>
    %63 = vector.shape_cast %62 : vector<1x1x64xf32> to vector<64xf32>
    %64 = vector.extract_strided_slice %6 {offsets = [0, 2, 2, 0], sizes = [1, 14, 14, 64], strides = [1, 1, 1, 1]} : vector<1x16x16x64xf32> to vector<1x14x14x64xf32>
    %65 = vector.shape_cast %63 : vector<64xf32> to vector<1x1x1x64xf32>
    %66 = vector.broadcast %65 : vector<1x1x1x64xf32> to vector<1x14x14x64xf32>
    %67 = arith.mulf %64, %66 : vector<1x14x14x64xf32>
    %68 = arith.addf %61, %67 : vector<1x14x14x64xf32>
    %cst_6 = arith.constant 0.000000e+00 : f32
    %69 = vector.broadcast %cst_6 : f32 to vector<1x14x14x64xf32>
    %70 = arith.maximumf %68, %69 : vector<1x14x14x64xf32>
    %cst_7 = arith.constant dense<0.000000e+00> : vector<1x64xf32>
    %71 = vector.multi_reduction <add>, %70, %cst_7 [1, 2] : vector<1x14x14x64xf32> to vector<1x64xf32>
    %72 = arith.addf %1, %71 : vector<1x64xf32>
    %73 = arith.mulf %70, %70 : vector<1x14x14x64xf32>
    %cst_8 = arith.constant dense<0.000000e+00> : vector<1x64xf32>
    %74 = vector.multi_reduction <add>, %73, %cst_8 [1, 2] : vector<1x14x14x64xf32> to vector<1x64xf32>
    %75 = arith.addf %2, %74 : vector<1x64xf32>
    %76 = arith.truncf %70 : vector<1x14x14x64xf32> to vector<1x14x14x64xbf16>
    %c0_9 = arith.constant 0 : index
    %c0_10 = arith.constant 0 : index
    %c0_11 = arith.constant 0 : index
    %c0_12 = arith.constant 0 : index
    %77 = vector.load %arg3[%c0_9, %c0_10, %c0_11, %c0_12] : memref<1x14x14x64xbf16, #tpu.memory_space<vmem>>, vector<1x14x14x64xbf16>
    tpu.vector_store %arg3[%c0_9, %c0_10, %c0_11, %c0_12], %76 {strides = array<i32>} : memref<1x14x14x64xbf16, #tpu.memory_space<vmem>>, vector<1x14x14x64xbf16>,
    %78 = vector.shape_cast %72 : vector<1x64xf32> to vector<1x1x64xf32>
    %c0_13 = arith.constant 0 : index
    %c0_14 = arith.constant 0 : index
    %c0_15 = arith.constant 0 : index
    %79 = vector.load %arg4[%c0_13, %c0_14, %c0_15] : memref<1x2x64xf32, #tpu.memory_space<vmem>>, vector<1x1x64xf32>
    tpu.vector_store %arg4[%c0_13, %c0_14, %c0_15], %78 {strides = array<i32>} : memref<1x2x64xf32, #tpu.memory_space<vmem>>, vector<1x1x64xf32>,
    %80 = vector.shape_cast %75 : vector<1x64xf32> to vector<1x1x64xf32>
    %c0_16 = arith.constant 0 : index
    %c1 = arith.constant 1 : index
    %c0_17 = arith.constant 0 : index
    %81 = vector.load %arg4[%c0_16, %c1, %c0_17] : memref<1x2x64xf32, #tpu.memory_space<vmem>>, vector<1x1x64xf32>
    tpu.vector_store %arg4[%c0_16, %c1, %c0_17], %80 {strides = array<i32>} : memref<1x2x64xf32, #tpu.memory_space<vmem>>, vector<1x1x64xf32>,
    return
  }
  func.func @transform_0(%arg0: i32) -> (i32, i32, i32) {
    %c0_i32 = arith.constant 0 : i32
    %c0_i32_0 = arith.constant 0 : i32
    %c0_i32_1 = arith.constant 0 : i32
    return %arg0, %c0_i32, %c0_i32_0 : i32, i32, i32
  }
  func.func @transform_1(%arg0: i32) -> (i32, i32, i32) {
    %c0_i32 = arith.constant 0 : i32
    %c0_i32_0 = arith.constant 0 : i32
    %c0_i32_1 = arith.constant 0 : i32
    %c0_i32_2 = arith.constant 0 : i32
    return %c0_i32, %c0_i32_0, %c0_i32_1 : i32, i32, i32
  }
  func.func @transform_2(%arg0: i32) -> (i32, i32, i32, i32) {
    %c0_i32 = arith.constant 0 : i32
    %c0_i32_0 = arith.constant 0 : i32
    %c0_i32_1 = arith.constant 0 : i32
    %c0_i32_2 = arith.constant 0 : i32
    return %arg0, %c0_i32, %c0_i32_0, %c0_i32_1 : i32, i32, i32, i32
  }
  func.func @transform_3(%arg0: i32) -> (i32, i32, i32) {
    %c0_i32 = arith.constant 0 : i32
    %c0_i32_0 = arith.constant 0 : i32
    %c0_i32_1 = arith.constant 0 : i32
    return %arg0, %c0_i32, %c0_i32_0 : i32, i32, i32
  }
}

module attributes {stable_mosaic.version = 11 : i64} {
  func.func @_bn_pool_kernel(%arg0: i32, %arg1: memref<1x14x14x64xbf16, #tpu.memory_space<vmem>>, %arg2: memref<1x1x1x64xf32, #tpu.memory_space<vmem>>, %arg3: memref<1x1x1x64xf32, #tpu.memory_space<vmem>>, %arg4: memref<1x7x7x64xbf16, #tpu.memory_space<vmem>>, %arg5: memref<1x7x14x64xf32, #tpu.memory_space<vmem>>) attributes {dimension_semantics = [#tpu.dimension_semantics<parallel>], iteration_bounds = array<i64: 2>, scalar_prefetch = 0 : i64, scratch_operands = 1 : i64, tpu.core_type = #tpu.core_type<tc>, window_params = [{transform_indices = @transform_0, window_bounds = array<i64: 1, 14, 14, 64>}, {pipeline_mode = #tpu.pipeline_mode<synchronous>, transform_indices = @transform_1, window_bounds = array<i64: 1, 1, 1, 64>}, {pipeline_mode = #tpu.pipeline_mode<synchronous>, transform_indices = @transform_2, window_bounds = array<i64: 1, 1, 1, 64>}, {transform_indices = @transform_3, window_bounds = array<i64: 1, 7, 7, 64>}]} {
    %c0 = arith.constant 0 : index
    %c0_0 = arith.constant 0 : index
    %c0_1 = arith.constant 0 : index
    %c0_2 = arith.constant 0 : index
    %0 = vector.load %arg1[%c0, %c0_0, %c0_1, %c0_2] : memref<1x14x14x64xbf16, #tpu.memory_space<vmem>>, vector<1x14x14x64xbf16>
    %1 = arith.extf %0 : vector<1x14x14x64xbf16> to vector<1x14x14x64xf32>
    %c0_3 = arith.constant 0 : index
    %c0_4 = arith.constant 0 : index
    %c0_5 = arith.constant 0 : index
    %c0_6 = arith.constant 0 : index
    %2 = vector.load %arg2[%c0_3, %c0_4, %c0_5, %c0_6] : memref<1x1x1x64xf32, #tpu.memory_space<vmem>>, vector<1x1x1x64xf32>
    %3 = vector.broadcast %2 : vector<1x1x1x64xf32> to vector<1x14x14x64xf32>
    %4 = arith.mulf %1, %3 : vector<1x14x14x64xf32>
    %c0_7 = arith.constant 0 : index
    %c0_8 = arith.constant 0 : index
    %c0_9 = arith.constant 0 : index
    %c0_10 = arith.constant 0 : index
    %5 = vector.load %arg3[%c0_7, %c0_8, %c0_9, %c0_10] : memref<1x1x1x64xf32, #tpu.memory_space<vmem>>, vector<1x1x1x64xf32>
    %6 = vector.broadcast %5 : vector<1x1x1x64xf32> to vector<1x14x14x64xf32>
    %7 = arith.addf %4, %6 : vector<1x14x14x64xf32>
    %8 = vector.shape_cast %7 : vector<1x14x14x64xf32> to vector<1x7x2x14x64xf32>
    %9 = vector.extract_strided_slice %8 {offsets = [0, 0, 0, 0, 0], sizes = [1, 7, 1, 14, 64], strides = [1, 1, 1, 1, 1]} : vector<1x7x2x14x64xf32> to vector<1x7x1x14x64xf32>
    %10 = vector.shape_cast %9 : vector<1x7x1x14x64xf32> to vector<1x7x14x64xf32>
    %11 = vector.extract_strided_slice %8 {offsets = [0, 0, 1, 0, 0], sizes = [1, 7, 1, 14, 64], strides = [1, 1, 1, 1, 1]} : vector<1x7x2x14x64xf32> to vector<1x7x1x14x64xf32>
    %12 = vector.shape_cast %11 : vector<1x7x1x14x64xf32> to vector<1x7x14x64xf32>
    %13 = arith.maximumf %10, %12 : vector<1x7x14x64xf32>
    %c0_11 = arith.constant 0 : index
    %c0_12 = arith.constant 0 : index
    %c0_13 = arith.constant 0 : index
    %c0_14 = arith.constant 0 : index
    %14 = vector.load %arg5[%c0_11, %c0_12, %c0_13, %c0_14] : memref<1x7x14x64xf32, #tpu.memory_space<vmem>>, vector<1x7x14x64xf32>
    tpu.vector_store %arg5[%c0_11, %c0_12, %c0_13, %c0_14], %13 {strides = array<i32>} : memref<1x7x14x64xf32, #tpu.memory_space<vmem>>, vector<1x7x14x64xf32>,
    %c0_15 = arith.constant 0 : index
    %c0_16 = arith.constant 0 : index
    %c0_17 = arith.constant 0 : index
    %c0_18 = arith.constant 0 : index
    %15 = tpu.strided_load %arg5[%c0_15, %c0_16, %c0_17, %c0_18] {strides = array<i32: 1, 1, 2, 1>} : memref<1x7x14x64xf32, #tpu.memory_space<vmem>>, vector<1x7x7x64xf32>
    %c0_19 = arith.constant 0 : index
    %c0_20 = arith.constant 0 : index
    %c1 = arith.constant 1 : index
    %c0_21 = arith.constant 0 : index
    %16 = tpu.strided_load %arg5[%c0_19, %c0_20, %c1, %c0_21] {strides = array<i32: 1, 1, 2, 1>} : memref<1x7x14x64xf32, #tpu.memory_space<vmem>>, vector<1x7x7x64xf32>
    %17 = arith.maximumf %15, %16 : vector<1x7x7x64xf32>
    %18 = arith.truncf %17 : vector<1x7x7x64xf32> to vector<1x7x7x64xbf16>
    %c0_22 = arith.constant 0 : index
    %c0_23 = arith.constant 0 : index
    %c0_24 = arith.constant 0 : index
    %c0_25 = arith.constant 0 : index
    %19 = vector.load %arg4[%c0_22, %c0_23, %c0_24, %c0_25] : memref<1x7x7x64xbf16, #tpu.memory_space<vmem>>, vector<1x7x7x64xbf16>
    tpu.vector_store %arg4[%c0_22, %c0_23, %c0_24, %c0_25], %18 {strides = array<i32>} : memref<1x7x7x64xbf16, #tpu.memory_space<vmem>>, vector<1x7x7x64xbf16>,
    return
  }
  func.func @transform_0(%arg0: i32) -> (i32, i32, i32, i32) {
    %c0_i32 = arith.constant 0 : i32
    %c0_i32_0 = arith.constant 0 : i32
    %c0_i32_1 = arith.constant 0 : i32
    %c0_i32_2 = arith.constant 0 : i32
    return %arg0, %c0_i32, %c0_i32_0, %c0_i32_1 : i32, i32, i32, i32
  }
  func.func @transform_1(%arg0: i32) -> (i32, i32, i32, i32) {
    %c0_i32 = arith.constant 0 : i32
    %c0_i32_0 = arith.constant 0 : i32
    %c0_i32_1 = arith.constant 0 : i32
    %c0_i32_2 = arith.constant 0 : i32
    %c0_i32_3 = arith.constant 0 : i32
    return %c0_i32, %c0_i32_0, %c0_i32_1, %c0_i32_2 : i32, i32, i32, i32
  }
  func.func @transform_2(%arg0: i32) -> (i32, i32, i32, i32) {
    %c0_i32 = arith.constant 0 : i32
    %c0_i32_0 = arith.constant 0 : i32
    %c0_i32_1 = arith.constant 0 : i32
    %c0_i32_2 = arith.constant 0 : i32
    %c0_i32_3 = arith.constant 0 : i32
    return %c0_i32, %c0_i32_0, %c0_i32_1, %c0_i32_2 : i32, i32, i32, i32
  }
  func.func @transform_3(%arg0: i32) -> (i32, i32, i32, i32) {
    %c0_i32 = arith.constant 0 : i32
    %c0_i32_0 = arith.constant 0 : i32
    %c0_i32_1 = arith.constant 0 : i32
    %c0_i32_2 = arith.constant 0 : i32
    return %arg0, %c0_i32, %c0_i32_0, %c0_i32_1 : i32, i32, i32, i32
  }
}

module attributes {stable_mosaic.version = 11 : i64} {
  func.func @_fc_kernel(%arg0: i32, %arg1: memref<2x3200xbf16, #tpu.memory_space<vmem>>, %arg2: memref<3200x128xbf16, #tpu.memory_space<vmem>>, %arg3: memref<1x128xf32, #tpu.memory_space<vmem>>, %arg4: memref<128x128xbf16, #tpu.memory_space<vmem>>, %arg5: memref<1x128xf32, #tpu.memory_space<vmem>>, %arg6: memref<2x128xf32, #tpu.memory_space<vmem>>, %arg7: memref<2x128xf32, #tpu.memory_space<vmem>>) attributes {dimension_semantics = [#tpu.dimension_semantics<arbitrary>], iteration_bounds = array<i64: 1>, scalar_prefetch = 0 : i64, scratch_operands = 1 : i64, tpu.core_type = #tpu.core_type<tc>, window_params = [{transform_indices = @transform_0, window_bounds = array<i64: 2, 3200>}, {transform_indices = @transform_1, window_bounds = array<i64: 3200, 128>}, {pipeline_mode = #tpu.pipeline_mode<synchronous>, transform_indices = @transform_2, window_bounds = array<i64: 1, 128>}, {pipeline_mode = #tpu.pipeline_mode<synchronous>, transform_indices = @transform_3, window_bounds = array<i64: 128, 128>}, {pipeline_mode = #tpu.pipeline_mode<synchronous>, transform_indices = @transform_4, window_bounds = array<i64: 1, 128>}, {pipeline_mode = #tpu.pipeline_mode<synchronous>, transform_indices = @transform_5, window_bounds = array<i64: 2, 128>}]} {
    %c0_i32 = arith.constant 0 : i32
    %0 = arith.cmpi eq, %arg0, %c0_i32 : i32
    %1 = arith.extui %0 : i1 to i32
    %c0_i32_0 = arith.constant 0 : i32
    %2 = arith.cmpi ne, %1, %c0_i32_0 : i32
    scf.if %2 {
      %cst_10 = arith.constant 0.000000e+00 : f32
      %12 = vector.broadcast %cst_10 : f32 to vector<2x128xf32>
      %c0_11 = arith.constant 0 : index
      %c0_12 = arith.constant 0 : index
      %13 = vector.load %arg7[%c0_11, %c0_12] : memref<2x128xf32, #tpu.memory_space<vmem>>, vector<2x128xf32>
      tpu.vector_store %arg7[%c0_11, %c0_12], %12 {strides = array<i32>} : memref<2x128xf32, #tpu.memory_space<vmem>>, vector<2x128xf32>,
    } else {
    }
    %c0 = arith.constant 0 : index
    %c0_1 = arith.constant 0 : index
    %3 = vector.load %arg7[%c0, %c0_1] : memref<2x128xf32, #tpu.memory_space<vmem>>, vector<2x128xf32>
    %c0_2 = arith.constant 0 : index
    %c0_3 = arith.constant 0 : index
    %4 = vector.load %arg1[%c0_2, %c0_3] : memref<2x3200xbf16, #tpu.memory_space<vmem>>, vector<2x3200xbf16>
    %c0_4 = arith.constant 0 : index
    %c0_5 = arith.constant 0 : index
    %5 = vector.load %arg2[%c0_4, %c0_5] : memref<3200x128xbf16, #tpu.memory_space<vmem>>, vector<3200x128xbf16>
    %cst = arith.constant dense<0.000000e+00> : vector<2x128xf32>
    %6 = tpu.matmul %4, %5, %cst {dimension_numbers = #tpu.dot_dimension_numbers<[1], [0], [0], [1], [0, 0, 1, 1], [], []>} : vector<2x3200xbf16>, vector<3200x128xbf16>, vector<2x128xf32> -> vector<2x128xf32>
    %7 = arith.addf %3, %6 : vector<2x128xf32>
    %c0_6 = arith.constant 0 : index
    %c0_7 = arith.constant 0 : index
    %8 = vector.load %arg7[%c0_6, %c0_7] : memref<2x128xf32, #tpu.memory_space<vmem>>, vector<2x128xf32>
    tpu.vector_store %arg7[%c0_6, %c0_7], %7 {strides = array<i32>} : memref<2x128xf32, #tpu.memory_space<vmem>>, vector<2x128xf32>,
    %c0_i32_8 = arith.constant 0 : i32
    %9 = arith.cmpi eq, %arg0, %c0_i32_8 : i32
    %10 = arith.extui %9 : i1 to i32
    %c0_i32_9 = arith.constant 0 : i32
    %11 = arith.cmpi ne, %10, %c0_i32_9 : i32
    scf.if %11 {
      %c0_10 = arith.constant 0 : index
      %c0_11 = arith.constant 0 : index
      %12 = vector.load %arg7[%c0_10, %c0_11] : memref<2x128xf32, #tpu.memory_space<vmem>>, vector<2x128xf32>
      %c0_12 = arith.constant 0 : index
      %c0_13 = arith.constant 0 : index
      %13 = vector.load %arg3[%c0_12, %c0_13] : memref<1x128xf32, #tpu.memory_space<vmem>>, vector<1x128xf32>
      %14 = vector.broadcast %13 : vector<1x128xf32> to vector<2x128xf32>
      %15 = arith.addf %12, %14 : vector<2x128xf32>
      %cst_14 = arith.constant 0.000000e+00 : f32
      %16 = vector.broadcast %cst_14 : f32 to vector<2x128xf32>
      %17 = arith.maximumf %15, %16 : vector<2x128xf32>
      %18 = arith.truncf %17 : vector<2x128xf32> to vector<2x128xbf16>
      %c0_15 = arith.constant 0 : index
      %c0_16 = arith.constant 0 : index
      %19 = vector.load %arg4[%c0_15, %c0_16] : memref<128x128xbf16, #tpu.memory_space<vmem>>, vector<128x128xbf16>
      %cst_17 = arith.constant dense<0.000000e+00> : vector<2x128xf32>
      %20 = tpu.matmul %18, %19, %cst_17 {dimension_numbers = #tpu.dot_dimension_numbers<[1], [0], [0], [1], [0, 0, 1, 1], [], []>} : vector<2x128xbf16>, vector<128x128xbf16>, vector<2x128xf32> -> vector<2x128xf32>
      %c0_18 = arith.constant 0 : index
      %c0_19 = arith.constant 0 : index
      %21 = vector.load %arg5[%c0_18, %c0_19] : memref<1x128xf32, #tpu.memory_space<vmem>>, vector<1x128xf32>
      %22 = vector.broadcast %21 : vector<1x128xf32> to vector<2x128xf32>
      %23 = arith.addf %20, %22 : vector<2x128xf32>
      %c0_20 = arith.constant 0 : index
      %c0_21 = arith.constant 0 : index
      %24 = vector.load %arg6[%c0_20, %c0_21] : memref<2x128xf32, #tpu.memory_space<vmem>>, vector<2x128xf32>
      tpu.vector_store %arg6[%c0_20, %c0_21], %23 {strides = array<i32>} : memref<2x128xf32, #tpu.memory_space<vmem>>, vector<2x128xf32>,
    } else {
    }
    return
  }
  func.func @transform_0(%arg0: i32) -> (i32, i32) {
    %c0_i32 = arith.constant 0 : i32
    %c0_i32_0 = arith.constant 0 : i32
    return %c0_i32, %arg0 : i32, i32
  }
  func.func @transform_1(%arg0: i32) -> (i32, i32) {
    %c0_i32 = arith.constant 0 : i32
    %c0_i32_0 = arith.constant 0 : i32
    return %arg0, %c0_i32 : i32, i32
  }
  func.func @transform_2(%arg0: i32) -> (i32, i32) {
    %c0_i32 = arith.constant 0 : i32
    %c0_i32_0 = arith.constant 0 : i32
    %c0_i32_1 = arith.constant 0 : i32
    return %c0_i32, %c0_i32_0 : i32, i32
  }
  func.func @transform_3(%arg0: i32) -> (i32, i32) {
    %c0_i32 = arith.constant 0 : i32
    %c0_i32_0 = arith.constant 0 : i32
    %c0_i32_1 = arith.constant 0 : i32
    return %c0_i32, %c0_i32_0 : i32, i32
  }
  func.func @transform_4(%arg0: i32) -> (i32, i32) {
    %c0_i32 = arith.constant 0 : i32
    %c0_i32_0 = arith.constant 0 : i32
    %c0_i32_1 = arith.constant 0 : i32
    return %c0_i32, %c0_i32_0 : i32, i32
  }
  func.func @transform_5(%arg0: i32) -> (i32, i32) {
    %c0_i32 = arith.constant 0 : i32
    %c0_i32_0 = arith.constant 0 : i32
    %c0_i32_1 = arith.constant 0 : i32
    return %c0_i32, %c0_i32_0 : i32, i32
  }
}

</mosaic_0001>

<bundles_post_ra>
// kernel: galaxy_net_forward.4
= control target key start
LH: loop header
LB: loop body
LE: loop exit
PB: predicated region body
PF: predicated region fallthrough
CT: control target
= control target key end

     0   :  { %s490_s12 = smov 0   ;;  %s657_s0 = inlined_call_operand.vmem [shape: bf16[2,14,14,64], index: 0, kind: input, shape index: {}]   ;;  %s658_s1 = inlined_call_operand.vmem [shape: f32[1,1,1,64], index: 1, kind: input, shape index: {}]   ;;  %s659_s2 = inlined_call_operand.vmem [shape: f32[1,1,1,64], index: 2, kind: input, shape index: {}]   ;;  %s660_s3 = inlined_call_operand.vmem [shape: bf16[2,7,7,64], index: 3, kind: output, shape index: {}]  }
   0x1 LB: > { %s441_s13 = sadd.s32 4294967295, %s468_s12   ;;  %p445_p0 = scmp.ge.s32.totalorder %s468_s12, 1  ;;  %s468_s12 = sphi %s490_s12, %s13_s12  }
   0x2   : > { %p137_p1 = scmp.lt.s32.totalorder %s468_s12, 3 }
   0x4   : > { %p138_p2 = pnand %p445_p0, %p137_p1 }
   0x5   : > { %p161_p3 = scmp.lt.s32.totalorder (!%p138_p2), %s441_s13, 1 }
   0x6   : > { %141 = sbr.rel (%p138_p2) target bundleno = 60 (0x3c), region = 32 }
   0xb   : > { %s664_s13 = smov (!%p161_p3, %s441_s13), 1  ;;  %v509_v0 = vld [vmem:[%s658_s1] ss:$0 sm:$0xff]  ;;  %vm305_vm0 = vcmask 523264   ;;  %vm307_vm1 = vcmask 521216   ;;  %vm362_vm2 = vcmask 519168  }
   0xc   : > { %s450_s14 = smul.u32 112, %s664_s13  ;;  %v514_v1 = vld [vmem:[%s659_s2] ss:$0 sm:$0xff]  ;;  %vm363_vm3 = vsmask.f32 3328 }
   0xd   : > { %s451_s22 = smul.u32 28, %s664_s13  ;;  %vm616_vm4 = vmand %vm362_vm2, %vm363_vm3 }
   0xe   : > { %s504_s17 = scalar_lea.vmem %s657_s0, %s450_s14 }
   0xf   : > { %v171_v2 = vld [vmem:[%s504_s17] sm:$0xf]  ;;  %v173_v3 = vld [vmem:[%s504_s17 + $0x8] sm:$0xf]  ;;  %v172_v4 = vld [vmem:[%s504_s17 + $0x4] sm:$0x7]  ;;  %s600_s25 = scalar_lea.vmem %s660_s3, %s451_s22 }
  0x10   : > { %v199_v5 = vunpack.c.l.bf16 %v171_v2  ;;  %v201_v6 = vunpack.c.l.bf16 %v173_v3  ;;  %v174_v7 = vld [vmem:[%s504_s17 + $0xc] sm:$0x7]  ;;  %v200_v8 = vunpack.c.l.bf16 %v172_v4  ;;  %v175_v9 = vld [vmem:[%s504_s17 + $0x10] sm:$0xf]  ;;  %v177_v10 = vld [vmem:[%s504_s17 + $0x18] sm:$0xf] }
  0x11   : > { %v202_v11 = vunpack.c.l.bf16 %v174_v7  ;;  %v203_v12 = vunpack.c.l.bf16 %v175_v9  ;;  %v205_v13 = vunpack.c.l.bf16 %v177_v10  ;;  %v176_v14 = vld [vmem:[%s504_s17 + $0x14] sm:$0x7]  ;;  %v178_v15 = vld [vmem:[%s504_s17 + $0x1c] sm:$0x7]  ;;  %v179_v24 = vld [vmem:[%s504_s17 + $0x20] sm:$0xf] }
  0x12   : > { %v231_v16 = vmul.f32 %v509_v0, %v199_v5  ;;  %v233_v17 = vmul.f32 %v509_v0, %v201_v6  ;;  %v232_v18 = vmul.f32 %v509_v0, %v200_v8  ;;  %v204_v19 = vunpack.c.l.bf16 %v176_v14  ;;  %v181_v25 = vld [vmem:[%s504_s17 + $0x28] sm:$0xf]  ;;  %v180_v30 = vld [vmem:[%s504_s17 + $0x24] sm:$0x7]  ;;  %v182_v35 = vld [vmem:[%s504_s17 + $0x2c] sm:$0x7] }
  0x13   : > { %v234_v20 = vmul.f32 %v509_v0, %v202_v11  ;;  %v235_v21 = vmul.f32 %v509_v0, %v203_v12  ;;  %v237_v22 = vmul.f32 %v509_v0, %v205_v13  ;;  %v206_v23 = vunpack.c.l.bf16 %v178_v15  ;;  %v183_v36 = vld [vmem:[%s504_s17 + $0x30] sm:$0xf]  ;;  %v185_v41 = vld [vmem:[%s504_s17 + $0x38] sm:$0xf]  ;;  %v184_v42 = vld [vmem:[%s504_s17 + $0x34] sm:$0x7] }
  0x14   : > { %v263_v26 = vadd.f32 %v514_v1, %v231_v16  ;;  %v265_v27 = vadd.f32 %v514_v1, %v233_v17  ;;  %v264_v28 = vadd.f32 %v514_v1, %v232_v18  ;;  %v236_v29 = vmul.f32 %v509_v0, %v204_v19  ;;  %v186_v51 = vld [vmem:[%s504_s17 + $0x3c] sm:$0x7]  ;;  %v187_v56 = vld [vmem:[%s504_s17 + $0x40] sm:$0xf]  ;;  %v189_v61 = vld [vmem:[%s504_s17 + $0x48] sm:$0xf] }
  0x15   : > { %v266_v31 = vadd.f32 %v514_v1, %v234_v20  ;;  %v267_v32 = vadd.f32 %v514_v1, %v235_v21  ;;  %v269_v33 = vadd.f32 %v514_v1, %v237_v22  ;;  %v238_v34 = vmul.f32 %v509_v0, %v206_v23  ;;  %v188_v4 = vld [vmem:[%s504_s17 + $0x44] sm:$0x7]  ;;  %v190_v5 = vld [vmem:[%s504_s17 + $0x4c] sm:$0x7]  ;;  %v191_v10 = vld [vmem:[%s504_s17 + $0x50] sm:$0xf] }
  0x16   : > { %v291_v37 = vmax.f32 %v263_v26, %v265_v27  ;;  %v268_v38 = vadd.f32 %v514_v1, %v236_v29  ;;  %v207_v39 = vunpack.c.l.bf16 %v179_v24  ;;  %v209_v40 = vunpack.c.l.bf16 %v181_v25  ;;  %v193_v15 = vld [vmem:[%s504_s17 + $0x58] sm:$0xf]  ;;  %v192_v20 = vld [vmem:[%s504_s17 + $0x54] sm:$0x7]  ;;  %v194_v25 = vld [vmem:[%s504_s17 + $0x5c] sm:$0x7] }
  0x17   : > { %v292_v43 = vmax.f32 %v264_v28, %v266_v31  ;;  %v293_v44 = vmax.f32 %v267_v32, %v269_v33  ;;  %v270_v45 = vadd.f32 %v514_v1, %v238_v34  ;;  %v208_v46 = vunpack.c.l.bf16 %v180_v30  ;;  %v195_v30 = vld [vmem:[%s504_s17 + $0x60] sm:$0xf] }
  0x18   : > { %306 = vst.msk [vmem:[#allocation2] sm:$0xff] %vm305_vm0, %v291_v37  ;;  %v239_v47 = vmul.f32 %v509_v0, %v207_v39  ;;  %v241_v48 = vmul.f32 %v509_v0, %v209_v40  ;;  %v210_v49 = vunpack.c.l.bf16 %v182_v35  ;;  %v211_v50 = vunpack.c.l.bf16 %v183_v36  ;;  %v197_v35 = vld [vmem:[%s504_s17 + $0x68] sm:$0xf]  ;;  %v196_v36 = vld [vmem:[%s504_s17 + $0x64] sm:$0x7] }
  0x19   : > { %308 = vst.msk [vmem:[#allocation2 + $0x8] sm:$0x3f] %vm307_vm1, %v292_v43  ;;  %v294_v52 = vmax.f32 %v268_v38, %v270_v45  ;;  %v240_v53 = vmul.f32 %v509_v0, %v208_v46  ;;  %v213_v54 = vunpack.c.l.bf16 %v185_v41  ;;  %v212_v55 = vunpack.c.l.bf16 %v184_v42  ;;  %v198_v41 = vld [vmem:[%s504_s17 + $0x6c] sm:$0x7] }
  0x1a   : > { %309 = vst.msk [vmem:[#allocation2 + $0x10] sm:$0xff] %vm305_vm0, %v293_v44  ;;  %v271_v57 = vadd.f32 %v514_v1, %v239_v47  ;;  %v273_v58 = vadd.f32 %v514_v1, %v241_v48  ;;  %v242_v59 = vmul.f32 %v509_v0, %v210_v49  ;;  %v243_v60 = vmul.f32 %v509_v0, %v211_v50 }
  0x1b   : > { %310 = vst.msk [vmem:[#allocation2 + $0x18] sm:$0x3f] %vm307_vm1, %v294_v52  ;;  %v272_v62 = vadd.f32 %v514_v1, %v240_v53  ;;  %v245_v63 = vmul.f32 %v509_v0, %v213_v54  ;;  %v214_v2 = vunpack.c.l.bf16 %v186_v51  ;;  %v244_v3 = vmul.f32 %v509_v0, %v212_v55 }
  0x1c   : > { %v295_v6 = vmax.f32 %v271_v57, %v273_v58  ;;  %v274_v7 = vadd.f32 %v514_v1, %v242_v59  ;;  %v275_v8 = vadd.f32 %v514_v1, %v243_v60  ;;  %v215_v9 = vunpack.c.l.bf16 %v187_v56 }
  0x1d   : > { %v277_v11 = vadd.f32 %v514_v1, %v245_v63  ;;  %v246_v12 = vmul.f32 %v509_v0, %v214_v2  ;;  %v276_v13 = vadd.f32 %v514_v1, %v244_v3  ;;  %v217_v14 = vunpack.c.l.bf16 %v189_v61 }
  0x1e   : > { %311 = vst.msk [vmem:[#allocation2 + $0x20] sm:$0xff] %vm305_vm0, %v295_v6  ;;  %v296_v16 = vmax.f32 %v272_v62, %v274_v7  ;;  %v247_v17 = vmul.f32 %v509_v0, %v215_v9  ;;  %v216_v18 = vunpack.c.l.bf16 %v188_v4  ;;  %v218_v19 = vunpack.c.l.bf16 %v190_v5  ;;  %v365_v62 = vld [vmem:[%s600_s25] sm:$0xf] }
  0x1f   : > { %v297_v21 = vmax.f32 %v275_v8, %v277_v11  ;;  %v278_v22 = vadd.f32 %v514_v1, %v246_v12  ;;  %v249_v23 = vmul.f32 %v509_v0, %v217_v14  ;;  %v219_v24 = vunpack.c.l.bf16 %v191_v10  ;;  %v368_v11 = vld [vmem:[%s600_s25 + $0x4] sm:$0xf] }
  0x20   : > { %312 = vst.msk [vmem:[#allocation2 + $0x28] sm:$0x3f] %vm307_vm1, %v296_v16  ;;  %v279_v26 = vadd.f32 %v514_v1, %v247_v17  ;;  %v248_v27 = vmul.f32 %v509_v0, %v216_v18  ;;  %v250_v28 = vmul.f32 %v509_v0, %v218_v19  ;;  %v221_v29 = vunpack.c.l.bf16 %v193_v15  ;;  %v321_v42 = vld [vmem:[#allocation2] ss:$2 sm:$0x7f] }
  0x21   : > { %313 = vst.msk [vmem:[#allocation2 + $0x30] sm:$0xff] %vm305_vm0, %v297_v21  ;;  %v298_v31 = vmax.f32 %v276_v13, %v278_v22  ;;  %v281_v32 = vadd.f32 %v514_v1, %v249_v23  ;;  %v251_v33 = vmul.f32 %v509_v0, %v219_v24  ;;  %v220_v34 = vunpack.c.l.bf16 %v192_v20  ;;  %v335_v47 = vld [vmem:[#allocation2 + $0x1] ss:$2 sm:$0x7f] }
  0x22   : > { %v280_v37 = vadd.f32 %v514_v1, %v248_v27  ;;  %v282_v38 = vadd.f32 %v514_v1, %v250_v28  ;;  %v253_v39 = vmul.f32 %v509_v0, %v221_v29  ;;  %v222_v40 = vunpack.c.l.bf16 %v194_v25  ;;  %v323_v52 = vld [vmem:[#allocation2 + $0x10] ss:$2 sm:$0x7f]  ;;  %v337_v53 = vld [vmem:[#allocation2 + $0x11] ss:$2 sm:$0x7f] }
  0x23   : > { %314 = vst.msk [vmem:[#allocation2 + $0x38] sm:$0x3f] %vm307_vm1, %v298_v31  ;;  %v299_v43 = vmax.f32 %v279_v26, %v281_v32  ;;  %v283_v44 = vadd.f32 %v514_v1, %v251_v33  ;;  %v252_v45 = vmul.f32 %v509_v0, %v220_v34  ;;  %v223_v46 = vunpack.c.l.bf16 %v195_v30  ;;  %v371_v15 = vld [vmem:[%s600_s25 + $0x8] sm:$0xf]  ;;  %v374_v24 = vld [vmem:[%s600_s25 + $0xc] sm:$0xf] }
  0x24   : > { %v300_v48 = vmax.f32 %v280_v37, %v282_v38  ;;  %v285_v49 = vadd.f32 %v514_v1, %v253_v39  ;;  %v254_v50 = vmul.f32 %v509_v0, %v222_v40  ;;  %v225_v51 = vunpack.c.l.bf16 %v197_v35  ;;  %v377_v30 = vld [vmem:[%s600_s25 + $0x10] sm:$0xf] }
  0x25   : > { %315 = vst.msk [vmem:[#allocation2 + $0x40] sm:$0xff] %vm305_vm0, %v299_v43  ;;  %v284_v54 = vadd.f32 %v514_v1, %v252_v45  ;;  %v255_v55 = vmul.f32 %v509_v0, %v223_v46  ;;  %v224_v56 = vunpack.c.l.bf16 %v196_v36  ;;  %v226_v57 = vunpack.c.l.bf16 %v198_v41  ;;  %v380_v36 = vld [vmem:[%s600_s25 + $0x14] sm:$0xf] }
  0x26   : > { %316 = vst.msk [vmem:[#allocation2 + $0x48] sm:$0x3f] %vm307_vm1, %v300_v48  ;;  %v301_v58 = vmax.f32 %v283_v44, %v285_v49  ;;  %v286_v59 = vadd.f32 %v514_v1, %v254_v50  ;;  %v257_v60 = vmul.f32 %v509_v0, %v225_v51  ;;  %v348_v61 = vmax.f32 %v321_v42, %v335_v47  ;;  %v383_v42 = vld [vmem:[%s600_s25 + $0x18] sm:$0xf] }
  0x27   : > { %v287_v63 = vadd.f32 %v514_v1, %v255_v55  ;;  %v256_v2 = vmul.f32 %v509_v0, %v224_v56  ;;  %v258_v3 = vmul.f32 %v509_v0, %v226_v57  ;;  %v349_v5 = vmax.f32 %v323_v52, %v337_v53  ;;  %v325_v6 = vld [vmem:[#allocation2 + $0x20] ss:$2 sm:$0x7f]  ;;  %v339_v7 = vld [vmem:[#allocation2 + $0x21] ss:$2 sm:$0x7f] }
  0x28   : > { %317 = vst.msk [vmem:[#allocation2 + $0x50] sm:$0xff] %vm305_vm0, %v301_v58  ;;  %v302_v8 = vmax.f32 %v284_v54, %v286_v59  ;;  %v289_v9 = vadd.f32 %v514_v1, %v257_v60  ;;  %v355_v10 = vpack.c.bf16 %v348_v61, %v348_v61  ;;  %v350_v12 = vmax.f32 %v325_v6, %v339_v7 }
  0x29   : > { %v288_v0 = vadd.f32 %v514_v1, %v256_v2  ;;  %v290_v13 = vadd.f32 %v514_v1, %v258_v3  ;;  %v356_v14 = vpack.c.bf16 %v349_v5, %v349_v5 }
  0x2a   : > { %318 = vst.msk [vmem:[#allocation2 + $0x58] sm:$0x3f] %vm307_vm1, %v302_v8  ;;  %v303_v16 = vmax.f32 %v287_v63, %v289_v9  ;;  %v366_v17 = vsel %vm616_vm4, %v355_v10, %v365_v62  ;;  %v357_v18 = vpack.c.bf16 %v350_v12, %v350_v12  ;;  %v327_v19 = vld [vmem:[#allocation2 + $0x30] ss:$2 sm:$0x7f] }
  0x2b   : > { %v304_v20 = vmax.f32 %v288_v0, %v290_v13  ;;  %367 = vst [vmem:[%s600_s25] sm:$0xf] %v366_v17  ;;  %v369_v21 = vsel %vm616_vm4, %v356_v14, %v368_v11  ;;  %v341_v1 = vld [vmem:[#allocation2 + $0x31] ss:$2 sm:$0x7f] }
  0x2c   : > { %319 = vst.msk [vmem:[#allocation2 + $0x60] sm:$0xff] %vm305_vm0, %v303_v16  ;;  %v372_v22 = vsel %vm616_vm4, %v357_v18, %v371_v15  ;;  %v351_v23 = vmax.f32 %v327_v19, %v341_v1 }
  0x2d   : > { %320 = vst.msk [vmem:[#allocation2 + $0x68] sm:$0x3f] %vm307_vm1, %v304_v20  ;;  %v329_v25 = vld [vmem:[#allocation2 + $0x40] ss:$2 sm:$0x7f] }
  0x2e   : > { %370 = vst [vmem:[%s600_s25 + $0x4] sm:$0xf] %v369_v21  ;;  %v358_v26 = vpack.c.bf16 %v351_v23, %v351_v23  ;;  %v343_v27 = vld [vmem:[#allocation2 + $0x41] ss:$2 sm:$0x7f] }
  0x2f   : > { %373 = vst [vmem:[%s600_s25 + $0x8] sm:$0xf] %v372_v22  ;;  %v352_v28 = vmax.f32 %v329_v25, %v343_v27 }
  0x30   : > { %v375_v29 = vsel %vm616_vm4, %v358_v26, %v374_v24 }
  0x31   : > { %376 = vst [vmem:[%s600_s25 + $0xc] sm:$0xf] %v375_v29  ;;  %v359_v31 = vpack.c.bf16 %v352_v28, %v352_v28  ;;  %v331_v32 = vld [vmem:[#allocation2 + $0x50] ss:$2 sm:$0x7f] }
  0x32   : > { %v345_v33 = vld [vmem:[#allocation2 + $0x51] ss:$2 sm:$0x7f] }
  0x33   : > { %v378_v34 = vsel %vm616_vm4, %v359_v31, %v377_v30  ;;  %v353_v35 = vmax.f32 %v331_v32, %v345_v33 }
  0x34   : > { %379 = vst [vmem:[%s600_s25 + $0x10] sm:$0xf] %v378_v34  ;;  %v333_v37 = vld [vmem:[#allocation2 + $0x60] ss:$2 sm:$0x7f] }
  0x35   : > { %v360_v38 = vpack.c.bf16 %v353_v35, %v353_v35  ;;  %v347_v39 = vld [vmem:[#allocation2 + $0x61] ss:$2 sm:$0x7f] }
  0x36   : > { %v354_v40 = vmax.f32 %v333_v37, %v347_v39 }
  0x37   : > { %v381_v41 = vsel %vm616_vm4, %v360_v38, %v380_v36 }
  0x38   : > { %382 = vst [vmem:[%s600_s25 + $0x14] sm:$0xf] %v381_v41  ;;  %v361_v43 = vpack.c.bf16 %v354_v40, %v354_v40 }
  0x3a   : > { %v384_v44 = vsel %vm616_vm4, %v361_v43, %v383_v42 }
  0x3b   : > { %385 = vst [vmem:[%s600_s25 + $0x18] sm:$0xf] %v384_v44 }
  0x3c PF: > { %s13_s12 = sadd.s32 1, %s468_s12  }
  0x3d   : > { %p10_p4 = scmp.ge.s32.totalorder %s13_s12, 4  }
  0x3f   :  { %12 = sbr.rel (!%p10_p4) target bundleno = 1 (0x1), region = 75 }

// kernel: galaxy_net_forward.3
= control target key start
LH: loop header
LB: loop body
LE: loop exit
PB: predicated region body
PF: predicated region fallthrough
CT: control target
= control target key end

     0   :  { %9 = vsyncpa [#allocation3], 0  ;;  %s3516_s0 = inlined_call_operand.hbm [shape: f32[2,16,16], index: 0, kind: input, shape index: {}]   ;;  %s3517_s1 = inlined_call_operand.hbm [shape: f32[3,3,64], index: 1, kind: input, shape index: {}]   ;;  %s3518_s2 = inlined_call_operand.vmem [shape: bf16[2,14,14,64], index: 2, kind: output, shape index: {0}]   ;;  %s3519_s3 = inlined_call_operand.vmem [shape: f32[2,2,64], index: 3, kind: output, shape index: {1}]  }
   0x1   :  { %11 = vsyncpa [#allocation3 + $0x1], 0 }
   0x2   :  { %12 = vsyncpa [#allocation5], 0  ;;  %s2076_s12 = smov 0   ;;  %s2078_s13 = smov 0  }
   0x3   :  { %s2080_s14 = smov 0   ;;  %s2082_s15 = smov 0  }
   0x4 LB: > { %s2095_s16 = sadd.s32 4294967295, %s2049_s15   ;;  %p38_p0 = scmp.ne.s32.totalorder %s2041_s13, %s2037_s12  ;;  %s2049_s15 = sphi %s2082_s15, %s3667_s15   ;;  %s2045_s14 = sphi %s2080_s14, %s3666_s14   ;;  %s2041_s13 = sphi %s2078_s13, %s3665_s13   ;;  %s2037_s12 = sphi %s2076_s12, %s3664_s12  }
   0x5   : > { %p39_p1 = scmp.eq.s32.totalorder %s2095_s16, 0  ;;  %p1861_p2 = scmp.ge.s32.totalorder %s2049_s15, 1 }
   0x6   : > { %p122_p3 = scmp.lt.s32.totalorder %s2049_s15, 3  ;;  %s133_s20 = sshll.u32 %s3517_s1, 4  ;;  %s134_s20 = int_to_ptr.hbm [resolvable:$true] %s133_s20 }
   0x7   : > { %p2103_p4 = por %p39_p1, %p38_p0  ;;  %s2051_s22 = smov [#allocation4]  }
   0x8   : > { %p2110_p5 = pnand %p1861_p2, %p122_p3  ;;  %s135_s23 = sshll.u32 %s2051_s22, 4  ;;  %s136_s23 = int_to_ptr.vmem [resolvable:$true] %s135_s23 }
   0x9   : > { %s2119_s24 = sadd.s32 1, %s2049_s15   ;;  %s2052_s25 = smov 64  }
   0xa   : > { %p1882_p6 = pneg %p2110_p5  ;;  %s2053_s26 = smov 4  }
   0xb   : > { %s22_s27 = ssub.s32 %s2049_s15, %s2119_s24  ;;  %s25_s28 = sadd.s32 1, %s2045_s14 }
   0xc   : > { %p1883_p7 = pnand %p1882_p6, %p39_p1  ;;  %p23_p8 = scmp.eq.s32.totalorder %s22_s27, 0 }
   0xd   : > { %p32_p9 = scmp.ne.s32.totalorder %s2045_s14, %s2041_s13  ;;  %p33_p10 = scmp.eq.s32.totalorder %s2049_s15, 0 }
   0xe   : > { %1885 = dma.hbm_to_vmem [thread:$0]  (!%p1883_p7), %s134_s20, 192, %s136_s23, [#allocation5], %s2052_s25, %s2052_s25, %s2053_s26  }
   0xf   : > { %p1891_p11 = scmp.lt.s32.totalorder %s2049_s15, 2  ;;  %p34_p12 = por %p33_p10, %p32_p9 }
  0x10   : > { %s2129_s29 = scalar_select %p23_p8, %s2045_s14, %s25_s28  }
  0x11   : > { %s149_s30 = sand.u32 1, %s2045_s14   ;;  %s1874_s5 = sshll.u32 %s2049_s15, 4 }
  0x12   : > { %s1864_s4 = sshll.u32 %s149_s30, 4  ;;  %s158_s8 = scalar_lea.hbm %s3516_s0, %s1874_s5 }
  0x13   : > { %s153_s9 = scalar_lea.vmem [#allocation2], %s1864_s4  ;;  %s159_s11 = sshll.u32 %s158_s8, 4  ;;  %s160_s11 = int_to_ptr.hbm [resolvable:$true] %s159_s11 }
  0x14   : > { %s161_s10 = sshll.u32 %s153_s9, 4  ;;  %p2136_p13 = pnand %p1891_p11, %p34_p12  ;;  %s162_s10 = int_to_ptr.vmem [resolvable:$true] %s161_s10 }
  0x15   : > { %s150_s18 = scalar_lea.sflag [#allocation3], %s149_s30  ;;  %s1981_s19 = sshra.s32 %s160_s11, 4  ;;  %s1982_s19 = int_to_ptr.hbm [resolvable:$true] %s1981_s19 }
  0x16   : > { %s1983_s20 = scalar_lea.hbm %s1982_s19, 16  ;;  %p1985_p2 = pneg %p2136_p13 }
  0x17   : > { %p1984_p0 = scmp.ne.s32.totalorder %s1982_s19, %s1983_s20  ;;  %s1988_s23 = scalar_lea.hbm %s3516_s0, 32 }
  0x18   : > { %p1989_p7 = scmp.lt.s32.totalorder %s1982_s19, %s3516_s0  ;;  %p1990_p8 = scmp.lt.s32.totalorder %s1988_s23, %s1983_s20 }
  0x19   : > { %p1986_p3 = pnand %p1985_p2, %p1984_p0 }
  0x1a   : > { %p1991_p9 = por %p1990_p8, %p1989_p7 }
  0x1b   : > { %p1987_p6 = pneg %p1986_p3 }
  0x1d   : > { %p1992_p10 = pnand %p1991_p9, %p1987_p6 }
  0x1f   : > { %1995 = shalt.err (!%p1992_p10)
}
  0x20   : > { %s2054_s27 = smov 128   ;;  %s2055_s28 = smov 8  }
  0x21   : > { %1889 = dma.hbm_to_vmem [thread:$0]  (!%p2136_p13), %s160_s11, 256, %s162_s10, %s150_s18, %s2054_s27, %s2054_s27, %s2055_s28  }
  0x22   : > { %173 = sbr.rel (%p2110_p5) target bundleno = 430 (0x1ae), region = 28 }
  0x27   : > { %s175_s30 = sand.u32 1, %s2041_s13  }
  0x28   : > { %s2153_s4 = sshll.u32 %s175_s30, 4  ;;  %s176_s5 = scalar_lea.sflag [#allocation3], %s175_s30 }
  0x29   : > { %s179_s6 = scalar_lea.vmem [#allocation2], %s2153_s4 }
  0x2a   : > { %2028 = dma.done.wait (%p2103_p4), %s176_s5, 256  }
  0x2b   : > { %2030 = vsyncadd (%p2103_p4), %s176_s5, 4294967040 }
  0x2c   : > { %2032 = dma.done.wait (%p39_p1), [#allocation5], 192  }
  0x2d   : > { %2034 = vsyncadd (%p39_p1), [#allocation5], 4294967104  ;;  %v227_v0 = vlaneseq  ;;  %v224_v2 = vld [vmem:[%s179_s6] sm:$0xff]  ;;  %v2183_v11 = vld [vmem:[%s179_s6 + $0x8] sm:$0xff]  ;;  %vm520_vm0 = vcmask 1046528   ;;  %vm676_vm1 = vcmask 1045504  }
  0x2e   : > { %v239_v3 = vperm.slane %v224_v2, 1  ;;  %v226_v4 = vperm.slane %v224_v2, 0  ;;  %v252_v5 = vperm.slane %v224_v2, 2  ;;  %v278_v7 = vperm.slane %v224_v2, 4  ;;  %v221_v19 = vld [vmem:[#allocation4] sm:$0x7] }
  0x2f   : > { %v2164_v1 = vshrl.u32 %v227_v0, 7  ;;  %v265_v8 = vperm.slane %v224_v2, 3  ;;  %v304_v9 = vperm.slane %v224_v2, 6  ;;  %v291_v10 = vperm.slane %v224_v2, 5  ;;  %v223_v20 = vld [vmem:[#allocation4 + $0x8] sm:$0x7] }
  0x30   : > { %v343_v12 = vperm.slane %v2183_v11, 1  ;;  %v317_v13 = vperm.slane %v224_v2, 7  ;;  %v369_v14 = vperm.slane %v2183_v11, 3  ;;  %v330_v15 = vperm.slane %v2183_v11, 0  ;;  %v222_v21 = vld [vmem:[#allocation4 + $0x4] sm:$0x7] }
  0x31   : > { %1931 = vset.pattern.permute.xlu1 %v2164_v1  ;;  %1930 = vset.pattern.permute.xlu0 %v2164_v1  ;;  %v2172_v6 = vadd.s32 8, %v2164_v1  ;;  %v356_v16 = vperm.slane %v2183_v11, 2  ;;  %v3522_v18 = vperm.slane %v2183_v11, 6  ;;  %v2201_v23 = vperm.slane %v221_v19, 1  ;;  %p212_p1 = scmp.lt.s32.totalorder %s2095_s16, 1 }
  0x32   : > { %1932 = vset.pattern.permute.xlu2 %v2164_v1  ;;  %v2203_v24 = vperm.slane %v223_v20, 1  ;;  %v382_v25 = vperm.slane %v2183_v11, 4  ;;  %v2207_v26 = vperm.slane %v222_v21, 1  ;;  %v2209_v27 = vperm.slane %v222_v21, 2 }
  0x33   : > { %v2211_v28 = vperm.slane %v223_v20, 2  ;;  %v2214_v29 = vperm.slane %v221_v19, 0  ;;  %v2216_v30 = vperm.slane %v221_v19, 2  ;;  %v2221_v33 = vperm.slane %v222_v21, 0  ;;  %s3669_s16 = smov (!%p212_p1, %s2095_s16), 1 }
  0x34   : > { %v395_v42 = vperm.slane %v2183_v11, 5  ;;  %v2250_v52 = vperm.slane %v223_v20, 0  ;;  %vm1539_vm2 = vcmask 521216   ;;  %vm1537_vm3 = vcmask 523264   ;;  %s1875_s17 = smul.u32 112, %s3669_s16  ;;  %s1871_s9 = sshll.u32 %s3669_s16, 1 }
  0x35   : > { %vm1719_vm4 = vcmask 519168   ;;  %vm1721_vm5 = vcmask 518144   ;;  %s220_s12 = scalar_lea.vmem %s3519_s3, %s1871_s9  ;;  %vm1749_vm6 = vcmask 516096  }
  0x36   : > { %s3252_s8 = scalar_lea.vmem %s3518_s2, %s1875_s17 }
  0x39   : > { %244 = vperm.xlu1 %1931, %v239_v3   ;;  %231 = vperm.xlu0 %1930, %v226_v4  }
  0x3a   : > { %257 = vperm.xlu2 %1932, %v252_v5  }
  0x41   : > { %1933 = vset.pattern.permute.xlu1 %v2172_v6  ;;  %283 = vperm.xlu0 %1930, %v278_v7  }
  0x42   : > { %1935 = vset.pattern.permute.xlu2 %v2172_v6 }
  0x49   : > { %250 = vperm.xlu1 %1933, %v239_v3   ;;  %1936 = vset.pattern.permute.xlu0 %v2172_v6 }
  0x4a   : > { %263 = vperm.xlu2 %1935, %v252_v5  }
  0x51   : > { %1934 = vset.pattern.permute.xlu1 %v2164_v1  ;;  %237 = vperm.xlu0 %1936, %v226_v4  }
  0x52   : > { %276 = vperm.xlu2 %1935, %v265_v8  }
  0x59   : > { %270 = vperm.xlu1 %1934, %v265_v8   ;;  %315 = vperm.xlu0 %1936, %v304_v9  }
  0x5a   : > { %1938 = vset.pattern.permute.xlu2 %v2164_v1 }
  0x61   : > { %1937 = vset.pattern.permute.xlu1 %v2172_v6  ;;  %1941 = vset.pattern.permute.xlu0 %v2164_v1 }
  0x62   : > { %296 = vperm.xlu2 %1938, %v291_v10  }
  0x69   : > { %289 = vperm.xlu1 %1937, %v278_v7   ;;  %348 = vperm.xlu0 %1941, %v343_v12  }
  0x6a   : > { %309 = vperm.xlu2 %1938, %v304_v9  }
  0x71   : > { %302 = vperm.xlu1 %1937, %v291_v10   ;;  %1944 = vset.pattern.permute.xlu0 %v2172_v6 }
  0x72   : > { %1940 = vset.pattern.permute.xlu2 %v2172_v6 }
  0x79   : > { %1939 = vset.pattern.permute.xlu1 %v2164_v1  ;;  %380 = vperm.xlu0 %1944, %v369_v14  }
  0x7a   : > { %328 = vperm.xlu2 %1940, %v317_v13  }
  0x81   : > { %322 = vperm.xlu1 %1939, %v317_v13   ;;  %1947 = vset.pattern.permute.xlu0 %v2164_v1 }
  0x82   : > { %341 = vperm.xlu2 %1940, %v330_v15  }
  0x89   : > { %335 = vperm.xlu1 %1939, %v330_v15   ;;  %413 = vperm.xlu0 %1947, %v3522_v18   ;;  %v3525_v18 = vperm.slane %v2183_v11, 7 }
  0x8a   : > { %1943 = vset.pattern.permute.xlu2 %v2164_v1 }
  0x91   : > { %1942 = vset.pattern.permute.xlu1 %v2172_v6  ;;  %1950 = vset.pattern.permute.xlu0 %v2172_v6 }
  0x92   : > { %361 = vperm.xlu2 %1943, %v356_v16  }
  0x94   : > { %v258_v17 = vpop.permute.xlu2 %257 }
  0x95   : > { %v468_v31 = vmul.f32 %v2201_v23, %v258_v17  ;;  %v835_v34 = vmul.f32 %v2207_v26, %v258_v17  ;;  %v990_v35 = vmul.f32 %v2209_v27, %v258_v17  ;;  %v1200_v36 = vmul.f32 %v2203_v24, %v258_v17 }
  0x96   : > { %v1355_v40 = vmul.f32 %v2211_v28, %v258_v17  ;;  %v624_v45 = vmul.f32 %v2216_v30, %v258_v17  ;;  %v439_v48 = vmul.f32 %v2214_v29, %v258_v17  ;;  %v2258_v0 = vmul.f32 %v2221_v33, %v258_v17 }
  0x97   : > { %v527_v44 = vrot.slane %v468_v31, 1  ;;  %v892_v49 = vrot.slane %v835_v34, 1  ;;  %v1047_v50 = vrot.slane %v990_v35, 2  ;;  %v1256_v55 = vrot.slane %v1200_v36, 1 }
  0x98   : > { %v1411_v58 = vrot.slane %v1355_v40, 2  ;;  %v683_v61 = vrot.slane %v624_v45, 2  ;;  %v2265_v3 = vmul.f32 %v2250_v52, %v258_v17 }
  0x99   : > { %354 = vperm.xlu1 %1942, %v343_v12  }
  0x9a   : > { %374 = vperm.xlu2 %1943, %v369_v14  }
  0xa1   : > { %367 = vperm.xlu1 %1942, %v356_v16  }
  0xa2   : > { %1946 = vset.pattern.permute.xlu2 %v2172_v6 }
  0xa4   : > { %v2199_v22 = vpop.permute.xlu2 %263 }
  0xa5   : > { %v469_v32 = vmul.f32 %v2201_v23, %v2199_v22  ;;  %v2228_v37 = vmul.f32 %v2207_v26, %v2199_v22  ;;  %v2232_v38 = vmul.f32 %v2209_v27, %v2199_v22  ;;  %v2236_v39 = vmul.f32 %v2203_v24, %v2199_v22 }
  0xa6   : > { %v440_v41 = vmul.f32 %v2214_v29, %v2199_v22  ;;  %v2244_v43 = vmul.f32 %v2211_v28, %v2199_v22  ;;  %v625_v47 = vmul.f32 %v2216_v30, %v2199_v22  ;;  %v2262_v2 = vmul.f32 %v2221_v33, %v2199_v22 }
  0xa7   : > { %v528_v46 = vrot.slane %v469_v32, 1  ;;  %v3524_v53 = vrot.slane %v2228_v37, 1  ;;  %v3523_v54 = vrot.slane %v2232_v38, 2  ;;  %v3521_v56 = vrot.slane %v2236_v39, 1 }
  0xa8   : > { %v3520_v60 = vrot.slane %v2244_v43, 2  ;;  %v684_v63 = vrot.slane %v625_v47, 2 }
  0xa9   : > { %1945 = vset.pattern.permute.xlu1 %v2164_v1  ;;  %v596_v59 = vadd.f32 %v528_v46, %v440_v41  ;;  %v529_v62 = vsel %vm520_vm0, %v527_v44, %v528_v46  ;;  %v2271_v5 = vsel %vm520_vm0, %v892_v49, %v3524_v53  ;;  %v2276_v7 = vsel %vm676_vm1, %v1047_v50, %v3523_v54 }
  0xaa   : > { %393 = vperm.xlu2 %1946, %v382_v25   ;;  %v2281_v8 = vsel %vm520_vm0, %v1256_v55, %v3521_v56  ;;  %v2289_v12 = vsel %vm676_vm1, %v1411_v58, %v3520_v60  ;;  %v595_v13 = vadd.f32 %v529_v62, %v439_v48  ;;  %v685_v19 = vsel %vm676_vm1, %v683_v61, %v684_v63 }
  0xab   : > { %v232_v51 = vpop.permute.xlu0 %231  ;;  %v245_v57 = vpop.permute.xlu1 %244  ;;  %v752_v10 = vadd.f32 %v684_v63, %v596_v59  ;;  %v2333_v50 = vmul.f32 %v2250_v52, %v2199_v22 }
  0xac   : > { %v466_v4 = vmul.f32 %v2201_v23, %v245_v57  ;;  %v2284_v9 = vmul.f32 %v2216_v30, %v245_v57  ;;  %v2292_v14 = vmul.f32 %v2207_v26, %v245_v57  ;;  %v2295_v15 = vmul.f32 %v2209_v27, %v245_v57  ;;  %v277_v17 = vpop.permute.xlu2 %276 }
  0xad   : > { %v2298_v16 = vmul.f32 %v2201_v23, %v232_v51  ;;  %v437_v20 = vmul.f32 %v2214_v29, %v245_v57  ;;  %v2303_v21 = vmul.f32 %v2221_v33, %v245_v57  ;;  %v2309_v31 = vmul.f32 %v2201_v23, %v277_v17 }
  0xae   : > { %v524_v32 = vrot.slane %v466_v4, 1  ;;  %v2312_v34 = vmul.f32 %v2214_v29, %v232_v51  ;;  %v2315_v35 = vmul.f32 %v2216_v30, %v277_v17  ;;  %v781_v36 = vmul.f32 %v2221_v33, %v277_v17 }
  0xaf   : > { %v680_v40 = vrot.slane %v2284_v9, 2  ;;  %v2320_v44 = vmul.f32 %v2207_v26, %v277_v17  ;;  %v2323_v45 = vmul.f32 %v2209_v27, %v277_v17  ;;  %v2326_v46 = vmul.f32 %v2203_v24, %v277_v17 }
  0xb0   : > { %v521_v49 = vrot.slane %v2298_v16, 1  ;;  %v442_v55 = vmul.f32 %v2214_v29, %v277_v17  ;;  %v2340_v58 = vmul.f32 %v2250_v52, %v277_v17  ;;  %v809_v22 = vadd.f32 %v781_v36, %v752_v10 }
  0xb1   : > { %387 = vperm.xlu1 %1945, %v382_v25   ;;  %v2306_v25 = vmul.f32 %v2216_v30, %v232_v51  ;;  %v2349_v9 = vmul.f32 %v2211_v28, %v277_v17  ;;  %v2367_v17 = vadd.f32 %v685_v19, %v595_v13 }
  0xb2   : > { %406 = vperm.xlu2 %1946, %v395_v42  }
  0xb3   : > { %v284_v41 = vpop.permute.xlu0 %283 }
  0xb4   : > { %v2353_v60 = vmul.f32 %v2201_v23, %v284_v41  ;;  %v2356_v56 = vmul.f32 %v2216_v30, %v284_v41  ;;  %v2359_v10 = vmul.f32 %v2214_v29, %v284_v41  ;;  %v2362_v36 = vmul.f32 %v2221_v33, %v284_v41 }
  0xb5   : > { %v2365_v4 = vmul.f32 %v2207_v26, %v284_v41  ;;  %v2373_v54 = vmul.f32 %v2209_v27, %v284_v41  ;;  %v2376_v62 = vmul.f32 %v2250_v52, %v284_v41  ;;  %v2379_v53 = vmul.f32 %v2203_v24, %v284_v41 }
  0xb6   : > { %3554 = vst [vmem:[#allocation8_spill] sm:$0xff] %v2353_v60  ;;  %v2389_v63 = vmul.f32 %v2211_v28, %v284_v41  ;;  %v3561_v41 = vrot.slane %v2320_v44, 1  ;;  %v3562_v60 = vrot.slane %v2228_v37, 1 }
  0xb7   : > { %3555 = vst [vmem:[#allocation9_spill] sm:$0xff] %v2356_v56 }
  0xb8   : > { %3556 = vst [vmem:[#allocation10_spill] sm:$0xff] %v2359_v10  ;;  %v3560_v10 = vrot.slane %v2309_v31, 1  ;;  %v964_v56 = vadd.f32 %v3561_v41, %v809_v22 }
  0xb9   : > { %400 = vperm.xlu1 %1945, %v395_v42   ;;  %v677_v42 = vrot.slane %v2306_v25, 2  ;;  %3557 = vst [vmem:[#allocation11_spill] sm:$0xff] %v2362_v36 }
  0xba   : > { %1949 = vset.pattern.permute.xlu2 %v2164_v1  ;;  %3558 = vst [vmem:[#allocation12_spill] sm:$0xff] %v2365_v4 }
  0xbb   : > { %v251_v51 = vpop.permute.xlu1 %250  ;;  %3559 = vst [vmem:[#allocation13_spill] sm:$0xff] %v2376_v62  ;;  %v1262_v62 = vrot.slane %v2379_v53, 1 }
  0xbc   : > { %v467_v59 = vmul.f32 %v2201_v23, %v251_v51  ;;  %v623_v61 = vmul.f32 %v2216_v30, %v251_v51  ;;  %v438_v16 = vmul.f32 %v2214_v29, %v251_v51  ;;  %v834_v1 = vmul.f32 %v2207_v26, %v251_v51 }
  0xbe   : > { %v525_v25 = vrot.slane %v467_v59, 1  ;;  %v681_v47 = vrot.slane %v623_v61, 2 }
  0xc0   : > { %v526_v48 = vsel %vm520_vm0, %v524_v32, %v525_v25  ;;  %v594_v59 = vadd.f32 %v525_v25, %v438_v16  ;;  %v989_v16 = vmul.f32 %v2209_v27, %v251_v51  ;;  %v682_v32 = vsel %vm676_vm1, %v680_v40, %v681_v47 }
  0xc1   : > { %1948 = vset.pattern.permute.xlu1 %v2172_v6  ;;  %v593_v13 = vadd.f32 %v526_v48, %v437_v20  ;;  %v598_v6 = vadd.f32 %v3560_v10, %v442_v55  ;;  %v890_v25 = vrot.slane %v834_v1, 1 }
  0xc2   : > { %v750_v19 = vadd.f32 %v681_v47, %v594_v59  ;;  %426 = vperm.xlu2 %1949, %v3525_v18   ;;  %v3564_v47 = vrot.slane %v2232_v38, 2 }
  0xc3   : > { %v238_v57 = vpop.permute.xlu0 %237  ;;  %v749_v4 = vadd.f32 %v682_v32, %v593_v13  ;;  %v777_v32 = vmul.f32 %v2221_v33, %v251_v51 }
  0xc4   : > { %v807_v20 = vadd.f32 %v2262_v2, %v750_v19  ;;  %v436_v48 = vmul.f32 %v2214_v29, %v238_v57  ;;  %v465_v59 = vmul.f32 %v2201_v23, %v238_v57  ;;  %v621_v61 = vmul.f32 %v2216_v30, %v238_v57 }
  0xc5   : > { %v1045_v19 = vrot.slane %v989_v16, 2  ;;  %v3563_v57 = vrot.slane %v2315_v35, 2  ;;  %v806_v38 = vadd.f32 %v2258_v0, %v749_v4  ;;  %v3569_v4 = vrot.slane %v2326_v46, 1 }
  0xc6   : > { %v962_v55 = vadd.f32 %v3562_v60, %v807_v20  ;;  %v522_v10 = vrot.slane %v465_v59, 1  ;;  %v678_v2 = vrot.slane %v621_v61, 2  ;;  %v3565_v61 = vrot.slane %v2323_v45, 2 }
  0xc7   : > { %v2407_v40 = vadd.f32 %v3563_v57, %v598_v6  ;;  %v1415_v20 = vrot.slane %v2349_v9, 2  ;;  %v3566_v6 = vperm.slane %v2183_v11, 6 }
  0xc8   : > { %v1117_v1 = vadd.f32 %v3564_v47, %v962_v55  ;;  %v523_v22 = vsel %vm520_vm0, %v521_v49, %v522_v10  ;;  %v592_v13 = vadd.f32 %v522_v10, %v436_v48  ;;  %v679_v37 = vsel %vm676_vm1, %v677_v42, %v678_v2  ;;  %v2427_v48 = vpop.permute.xlu2 %296 }
  0xc9   : > { %v591_v60 = vadd.f32 %v523_v22, %v2312_v34  ;;  %v2417_v16 = vadd.f32 %v3565_v61, %v964_v56  ;;  %419 = vperm.xlu1 %1948, %v3566_v6   ;;  %v3567_v49 = vrot.slane %v2292_v14, 1  ;;  %v3568_v56 = vrot.slane %v2295_v15, 2 }
  0xca   : > { %v748_v59 = vadd.f32 %v678_v2, %v592_v13  ;;  %v1174_v34 = vadd.f32 %v2340_v58, %v1117_v1  ;;  %v2434_v10 = vmul.f32 %v2214_v29, %v2427_v48  ;;  %v2438_v0 = vmul.f32 %v2201_v23, %v2427_v48 }
  0xcb   : > { %v891_v42 = vsel %vm520_vm0, %v3567_v49, %v890_v25  ;;  %v747_v51 = vadd.f32 %v679_v37, %v591_v60  ;;  %v1046_v41 = vsel %vm676_vm1, %v3568_v56, %v1045_v19  ;;  %v271_v55 = vpop.permute.xlu1 %270  ;;  %v2445_v15 = vmul.f32 %v2216_v30, %v2427_v48 }
  0xcc   : > { %v805_v14 = vadd.f32 %v777_v32, %v748_v59  ;;  %v1329_v58 = vadd.f32 %v3569_v4, %v1174_v34  ;;  %v470_v2 = vmul.f32 %v2201_v23, %v271_v55  ;;  %v837_v47 = vmul.f32 %v2207_v26, %v271_v55 }
  0xcd   : > { %v804_v57 = vadd.f32 %v2303_v21, %v747_v51  ;;  %v2451_v1 = vmul.f32 %v2207_v26, %v2427_v48  ;;  %v2455_v22 = vmul.f32 %v2209_v27, %v2427_v48  ;;  %v961_v13 = vadd.f32 %v2271_v5, %v806_v38 }
  0xce   : > { %v960_v37 = vadd.f32 %v890_v25, %v805_v14  ;;  %v530_v60 = vrot.slane %v470_v2, 1  ;;  %v780_v32 = vmul.f32 %v2221_v33, %v271_v55  ;;  %v626_v6 = vmul.f32 %v2216_v30, %v271_v55 }
  0xcf   : > { %v959_v61 = vadd.f32 %v891_v42, %v804_v57  ;;  %v895_v21 = vrot.slane %v837_v47, 1  ;;  %v2462_v59 = vmul.f32 %v2221_v33, %v2427_v48  ;;  %v1484_v34 = vadd.f32 %v1415_v20, %v1329_v58 }
  0xd0   : > { %v1115_v49 = vadd.f32 %v1045_v19, %v960_v37  ;;  %v992_v38 = vmul.f32 %v2209_v27, %v271_v55  ;;  %v3570_v42 = vperm.slane %v2183_v11, 7  ;;  %v1116_v4 = vadd.f32 %v2276_v7, %v961_v13 }
  0xd1   : > { %v1114_v25 = vadd.f32 %v1046_v41, %v959_v61  ;;  %v3571_v58 = vrot.slane %v2309_v31, 1  ;;  %v808_v57 = vadd.f32 %v780_v32, %v2367_v17  ;;  %v441_v47 = vmul.f32 %v2214_v29, %v271_v55 }
  0xd2   : > { %432 = vperm.xlu1 %1948, %v3570_v42   ;;  %v1172_v19 = vadd.f32 %v2333_v50, %v1115_v49  ;;  %v686_v11 = vrot.slane %v626_v6, 2  ;;  %v3572_v37 = vrot.slane %v2320_v44, 1  ;;  %v3573_v42 = vrot.slane %v2236_v39, 1 }
  0xd3   : > { %v532_v2 = vsel %vm520_vm0, %v530_v60, %v3571_v58  ;;  %v1171_v41 = vadd.f32 %v2265_v3, %v1114_v25  ;;  %v2486_v13 = vmax.f32 %v1484_v34, 0.0  ;;  %v1145_v31 = vmul.f32 %v2250_v52, %v271_v55 }
  0xd4   : > { %v897_v61 = vsel %vm520_vm0, %v895_v21, %v3572_v37  ;;  %v1327_v7 = vadd.f32 %v3573_v42, %v1172_v19  ;;  %v1202_v50 = vmul.f32 %v2203_v24, %v271_v55  ;;  %v597_v60 = vadd.f32 %v532_v2, %v441_v47 }
  0xd5   : > { %3574 = vst [vmem:[#allocation14_spill] sm:$0xff] %v2486_v13  ;;  %v1326_v17 = vadd.f32 %v2281_v8, %v1171_v41  ;;  %v1050_v3 = vrot.slane %v992_v38, 2  ;;  %v1357_v32 = vmul.f32 %v2211_v28, %v271_v55  ;;  %v3575_v44 = vrot.slane %v2244_v43, 2  ;;  %v2503_v38 = vpop.permute.xlu2 %309 }
  0xd6   : > { %v963_v21 = vadd.f32 %v897_v61, %v808_v57  ;;  %v1173_v49 = vadd.f32 %v1145_v31, %v1116_v4  ;;  %v1259_v39 = vrot.slane %v1202_v50, 1  ;;  %v2497_v19 = vmul.f32 %v2203_v24, %v2427_v48  ;;  %v3584_v31 = vld [vmem:[#allocation8_spill] sm:$0xff] }
  0xd7   : > { %v1482_v6 = vadd.f32 %v3575_v44, %v1327_v7  ;;  %v1481_v34 = vadd.f32 %v2289_v12, %v1326_v17  ;;  %v1414_v25 = vrot.slane %v1357_v32, 2  ;;  %v2501_v8 = vmul.f32 %v2211_v28, %v2427_v48 }
  0xd8   : > { %v1604_v43 = vmul.f32 %v2486_v13, %v2486_v13  ;;  %v3577_v4 = vrot.slane %v2315_v35, 2  ;;  %v3578_v58 = vrot.slane %v2326_v46, 1  ;;  %v3580_v47 = vrot.slane %v2323_v45, 2 }
  0xd9   : > { %v2505_v55 = vmax.f32 %v1482_v6, 0.0  ;;  %v2515_v57 = vmax.f32 %v1481_v34, 0.0  ;;  %v1416_v7 = vsel %vm676_vm1, %v1414_v25, %v1415_v20  ;;  %v2525_v35 = vmul.f32 %v2250_v52, %v2427_v48  ;;  %v3583_v34 = vld [vmem:[#allocation13_spill] sm:$0xff] }
  0xda   : > { %v688_v12 = vsel %vm676_vm1, %v686_v11, %v3577_v4  ;;  %v1261_v2 = vsel %vm520_vm0, %v1259_v39, %v3578_v58  ;;  %v1052_v37 = vsel %vm676_vm1, %v1050_v3, %v3580_v47  ;;  %v2529_v46 = vmul.f32 %v2201_v23, %v2503_v38 }
  0xdb   : > { %3576 = vst [vmem:[#allocation15_spill] sm:$0xff] %v2505_v55  ;;  %v753_v41 = vadd.f32 %v688_v12, %v597_v60  ;;  %v1328_v61 = vadd.f32 %v1261_v2, %v1173_v49  ;;  %v1118_v42 = vadd.f32 %v1052_v37, %v963_v21  ;;  %v2533_v11 = vsel %vm1539_vm2, %v2486_v13, 0.0  ;;  %v290_v9 = vpop.permute.xlu1 %289  ;;  %v316_v13 = vpop.permute.xlu0 %315 }
  0xdc   : > { %3579 = vst [vmem:[#allocation16_spill] sm:$0xff] %v2515_v57  ;;  %v1601_v20 = vmul.f32 %v2515_v57, %v2515_v57  ;;  %v1602_v48 = vmul.f32 %v2505_v55, %v2505_v55  ;;  %v473_v60 = vmul.f32 %v2201_v23, %v290_v9  ;;  %v2545_v3 = vsel %vm1539_vm2, %v1604_v43, 0.0 }
  0xdd   : > { %v1483_v45 = vadd.f32 %v1416_v7, %v1328_v61  ;;  %v3581_v32 = vmov %v2362_v36  ;;  %v2550_v6 = vmul.f32 %v2214_v29, %v2503_v38  ;;  %v2554_v21 = vmul.f32 %v2216_v30, %v2503_v38 }
  0xde   : > { %v810_v44 = vadd.f32 %v3581_v32, %v753_v41  ;;  %v840_v39 = vmul.f32 %v2207_v26, %v290_v9  ;;  %v1175_v25 = vadd.f32 %v3583_v34, %v1118_v42  ;;  %v1538_v43 = vsel %vm1537_vm3, %v2515_v57, 0.0 }
  0xdf   : > { %v2556_v49 = vmax.f32 %v1483_v45, 0.0  ;;  %v1540_v12 = vsel %vm1539_vm2, %v2505_v55, 0.0  ;;  %v2567_v58 = vmul.f32 %v2221_v33, %v2503_v38  ;;  %v2571_v2 = vmul.f32 %v2207_v26, %v2503_v38 }
  0xe0   : > { %v1629_v41 = vsel %vm1537_vm3, %v1601_v20, 0.0  ;;  %v1630_v47 = vsel %vm1539_vm2, %v1602_v48, 0.0  ;;  %v534_v37 = vrot.slane %v473_v60, 1  ;;  %v783_v61 = vmul.f32 %v2221_v33, %v290_v9 }
  0xe1   : > { %3582 = vst [vmem:[#allocation11_spill] sm:$0xff] %v2556_v49  ;;  %v629_v45 = vmul.f32 %v2216_v30, %v290_v9  ;;  %v1541_v34 = vadd.f32 %v1540_v12, %v1538_v43  ;;  %v1603_v17 = vmul.f32 %v2556_v49, %v2556_v49  ;;  %v899_v20 = vrot.slane %v840_v39, 1 }
  0xe2   : > { %v1148_v48 = vmul.f32 %v2250_v52, %v290_v9  ;;  %v1631_v60 = vadd.f32 %v1630_v47, %v1629_v41  ;;  %v444_v5 = vmul.f32 %v2214_v29, %v290_v9  ;;  %v995_v50 = vmul.f32 %v2209_v27, %v290_v9 }
  0xe3   : > { %v1205_v42 = vmul.f32 %v2203_v24, %v290_v9  ;;  %v3585_v7 = vrot.slane %v3584_v31, 1  ;;  %v811_v32 = vadd.f32 %v783_v61, %v2407_v40  ;;  %v1360_v12 = vmul.f32 %v2211_v28, %v290_v9  ;;  %v3586_v31 = vld [vmem:[#allocation12_spill] sm:$0xff]  ;;  %v3588_v61 = vld [vmem:[#allocation10_spill] sm:$0xff] }
  0xe4   : > { %v1176_v43 = vadd.f32 %v1148_v48, %v2417_v16  ;;  %v1542_v39 = vsel %vm1537_vm3, %v2556_v49, 0.0  ;;  %v690_v47 = vrot.slane %v629_v45, 2  ;;  %v1632_v56 = vsel %vm1537_vm3, %v1603_v17, 0.0  ;;  %v3589_v17 = vld [vmem:[#allocation9_spill] sm:$0xff] }
  0xe5   : > { %v535_v51 = vsel %vm520_vm0, %v3585_v7, %v534_v37  ;;  %v1263_v14 = vrot.slane %v1205_v42, 1  ;;  %v600_v4 = vadd.f32 %v534_v37, %v444_v5  ;;  %v3587_v18 = vrot.slane %v3586_v31, 1 }
  0xe6   : > { %v1418_v40 = vrot.slane %v1360_v12, 2  ;;  %v599_v16 = vadd.f32 %v535_v51, %v3588_v61  ;;  %v1054_v48 = vrot.slane %v995_v50, 2  ;;  %v1543_v41 = vadd.f32 %v1542_v39, %v1541_v34 }
  0xe7   : > { %v900_v7 = vsel %vm520_vm0, %v3587_v18, %v899_v20  ;;  %v1264_v9 = vsel %vm520_vm0, %v1262_v62, %v1263_v14  ;;  %v1331_v36 = vadd.f32 %v1263_v14, %v1176_v43  ;;  %v1633_v45 = vadd.f32 %v1632_v56, %v1631_v60 }
  0xe8   : > { %v966_v42 = vadd.f32 %v899_v20, %v811_v32  ;;  %v1330_v49 = vadd.f32 %v1264_v9, %v1175_v25  ;;  %v3590_v5 = vrot.slane %v3589_v17, 2  ;;  %v965_v31 = vadd.f32 %v900_v7, %v810_v44 }
  0xe9   : > { %v3591_v18 = vrot.slane %v2389_v63, 2  ;;  %v1486_v50 = vadd.f32 %v1418_v40, %v1331_v36  ;;  %v2614_v53 = vmul.f32 %v2209_v27, %v2503_v38  ;;  %v2618_v62 = vmul.f32 %v2203_v24, %v2503_v38 }
  0xea   : > { %v691_v37 = vsel %vm676_vm1, %v3590_v5, %v690_v47  ;;  %v477_v56 = vmul.f32 %v2201_v23, %v316_v13  ;;  %v756_v25 = vadd.f32 %v690_v47, %v600_v4  ;;  %v3592_v44 = vrot.slane %v2373_v54, 2 }
  0xeb   : > { %v1419_v51 = vsel %vm676_vm1, %v3591_v18, %v1418_v40  ;;  %v755_v14 = vadd.f32 %v691_v37, %v599_v16  ;;  %v2626_v36 = vmul.f32 %v2211_v28, %v2503_v38  ;;  %v1545_v32 = vadd.f32 %v2533_v11, %v1543_v41  ;;  %v303_v16 = vpop.permute.xlu1 %302 }
  0xec   : > { %v1485_v12 = vadd.f32 %v1419_v51, %v1330_v49  ;;  %v1055_v63 = vsel %vm676_vm1, %v3592_v44, %v1054_v48  ;;  %v1121_v49 = vadd.f32 %v1054_v48, %v966_v42  ;;  %v2630_v34 = vadd.f32 %v2545_v3, %v1633_v45 }
  0xed   : > { %v2633_v20 = vmul.f32 %v2216_v30, %v316_v13  ;;  %v1120_v60 = vadd.f32 %v1055_v63, %v965_v31  ;;  %v2637_v4 = vmax.f32 %v1486_v50, 0.0  ;;  %v1151_v47 = vmul.f32 %v2250_v52, %v2503_v38 }
  0xee   : > { %v2635_v43 = vmax.f32 %v1485_v12, 0.0  ;;  %v1268_v11 = vrot.slane %v2618_v62, 1  ;;  %v540_v41 = vrot.slane %v477_v56, 1  ;;  %v448_v7 = vmul.f32 %v2214_v29, %v316_v13 }
  0xef   : > { %3594 = vst [vmem:[#allocation8_spill] sm:$0xff] %v2637_v4  ;;  %v787_v40 = vmul.f32 %v2221_v33, %v316_v13  ;;  %v2648_v61 = vmul.f32 %v2207_v26, %v316_v13  ;;  %v2652_v9 = vmul.f32 %v2209_v27, %v316_v13  ;;  %v1152_v38 = vmul.f32 %v2250_v52, %v316_v13 }
  0xf0   : > { %3593 = vst [vmem:[#allocation13_spill] sm:$0xff] %v2635_v43  ;;  %v1209_v45 = vmul.f32 %v2203_v24, %v316_v13  ;;  %v1546_v42 = vsel %vm1537_vm3, %v2635_v43, 0.0  ;;  %v2660_v17 = vsel %vm1539_vm2, %v2637_v4, 0.0  ;;  %v1606_v5 = vmul.f32 %v2637_v4, %v2637_v4 }
  0xf1   : > { %v1605_v31 = vmul.f32 %v2635_v43, %v2635_v43  ;;  %v3595_v51 = vrot.slane %v2529_v46, 1  ;;  %v475_v12 = vmul.f32 %v2201_v23, %v303_v16  ;;  %v604_v62 = vadd.f32 %v540_v41, %v448_v7 }
  0xf2   : > { %v2677_v56 = vmul.f32 %v2216_v30, %v303_v16  ;;  %v785_v44 = vmul.f32 %v2221_v33, %v303_v16  ;;  %v842_v63 = vmul.f32 %v2207_v26, %v303_v16  ;;  %v1547_v37 = vadd.f32 %v1546_v42, %v1545_v32 }
  0xf3   : > { %v2673_v50 = vsel %vm520_vm0, %v3595_v51, %v540_v41  ;;  %v446_v39 = vmul.f32 %v2214_v29, %v303_v16  ;;  %v537_v54 = vrot.slane %v475_v12, 1  ;;  %v997_v18 = vmul.f32 %v2209_v27, %v303_v16 }
  0xf4   : > { %v2684_v46 = vsel %vm1539_vm2, %v1606_v5, 0.0  ;;  %v813_v51 = vadd.f32 %v785_v44, %v756_v25  ;;  %v902_v48 = vrot.slane %v842_v63, 1  ;;  %v1150_v41 = vmul.f32 %v2250_v52, %v303_v16 }
  0xf5   : > { %v1269_v7 = vrot.slane %v1209_v45, 1  ;;  %v602_v3 = vadd.f32 %v537_v54, %v446_v39  ;;  %v812_v4 = vadd.f32 %v2462_v59, %v755_v14  ;;  %v1057_v43 = vrot.slane %v997_v18, 2  ;;  %v329_v18 = vpop.permute.xlu2 %328 }
  0xf6   : > { %v1364_v55 = vmul.f32 %v2211_v28, %v316_v13  ;;  %v693_v32 = vrot.slane %v2677_v56, 2  ;;  %v3596_v42 = vrot.slane %v2451_v1, 1  ;;  %v968_v57 = vadd.f32 %v902_v48, %v813_v51 }
  0xf7   : > { %v1636_v5 = vsel %vm1537_vm3, %v1605_v31, 0.0  ;;  %v1178_v44 = vadd.f32 %v1150_v41, %v1121_v49  ;;  %v1207_v63 = vmul.f32 %v2203_v24, %v303_v16  ;;  %v3597_v39 = vrot.slane %v2455_v22, 2 }
  0xf8   : > { %v903_v12 = vsel %vm520_vm0, %v3596_v42, %v902_v48  ;;  %v758_v45 = vadd.f32 %v693_v32, %v602_v3  ;;  %v1123_v14 = vadd.f32 %v1057_v43, %v968_v57  ;;  %v1362_v13 = vmul.f32 %v2211_v28, %v303_v16 }
  0xf9   : > { %v967_v25 = vadd.f32 %v903_v12, %v812_v4  ;;  %v1058_v59 = vsel %vm676_vm1, %v3597_v39, %v1057_v43  ;;  %v1270_v1 = vsel %vm520_vm0, %v1268_v11, %v1269_v7  ;;  %v1266_v42 = vrot.slane %v1207_v63, 1 }
  0xfa   : > { %v2701_v48 = vmul.f32 %v2201_v23, %v329_v18  ;;  %v1424_v4 = vrot.slane %v1364_v55, 2  ;;  %v1177_v49 = vadd.f32 %v2525_v35, %v1120_v60  ;;  %v1180_v31 = vadd.f32 %v1152_v38, %v1123_v14 }
  0xfb   : > { %v1122_v56 = vadd.f32 %v1058_v59, %v967_v25  ;;  %v1421_v3 = vrot.slane %v1362_v13, 2  ;;  %v3598_v22 = vrot.slane %v2438_v0, 1  ;;  %v3599_v43 = vrot.slane %v2497_v19, 1 }
  0xfc   : > { %v1333_v11 = vadd.f32 %v1266_v42, %v1178_v44  ;;  %v815_v41 = vadd.f32 %v787_v40, %v758_v45  ;;  %v1335_v25 = vadd.f32 %v1269_v7, %v1180_v31  ;;  %v450_v63 = vmul.f32 %v2214_v29, %v329_v18 }
  0xfd   : > { %v538_v51 = vsel %vm520_vm0, %v3598_v22, %v537_v54  ;;  %v1179_v57 = vadd.f32 %v1151_v47, %v1122_v56  ;;  %v1267_v16 = vsel %vm520_vm0, %v3599_v43, %v1266_v42  ;;  %v3600_v35 = vrot.slane %v2501_v8, 2 }
  0xfe   : > { %v1332_v12 = vadd.f32 %v1267_v16, %v1177_v49  ;;  %v1488_v38 = vadd.f32 %v1421_v3, %v1333_v11  ;;  %v543_v0 = vrot.slane %v2701_v48, 1  ;;  %v905_v54 = vrot.slane %v2648_v61, 1 }
  0xff   : > { %v1334_v55 = vadd.f32 %v1270_v1, %v1179_v57  ;;  %v1422_v60 = vsel %vm676_vm1, %v3600_v35, %v1421_v3  ;;  %v3601_v19 = vrot.slane %v2626_v36, 2  ;;  %v1490_v40 = vadd.f32 %v1424_v4, %v1335_v25 }
 0x100   : > { %v1487_v44 = vadd.f32 %v1422_v60, %v1332_v12  ;;  %v3602_v7 = vrot.slane %v2633_v20, 2  ;;  %v1060_v39 = vrot.slane %v2652_v9, 2  ;;  %v2723_v8 = vmul.f32 %v2216_v30, %v329_v18 }
 0x101   : > { %v1425_v47 = vsel %vm676_vm1, %v3601_v19, %v1424_v4  ;;  %v1637_v14 = vadd.f32 %v1636_v5, %v2630_v34  ;;  %v601_v13 = vadd.f32 %v538_v51, %v2434_v10  ;;  %v970_v36 = vadd.f32 %v905_v54, %v815_v41  ;;  %v323_v41 = vpop.permute.xlu1 %322 }
 0x102   : > { %v760_v45 = vadd.f32 %v3602_v7, %v604_v62  ;;  %v1489_v59 = vadd.f32 %v1425_v47, %v1334_v55  ;;  %v2727_v61 = vmax.f32 %v1487_v44, 0.0  ;;  %v2729_v1 = vmax.f32 %v1488_v38, 0.0 }
 0x103   : > { %v2731_v56 = vmax.f32 %v1490_v40, 0.0  ;;  %v606_v62 = vadd.f32 %v543_v0, %v450_v63  ;;  %v789_v42 = vmul.f32 %v2221_v33, %v329_v18  ;;  %v1549_v4 = vadd.f32 %v2660_v17, %v1547_v37 }
 0x104   : > { %v3603_v49 = vrot.slane %v2571_v2, 1  ;;  %v2740_v5 = vmax.f32 %v1489_v59, 0.0  ;;  %v1607_v10 = vmul.f32 %v2727_v61, %v2727_v61  ;;  %v3604_v31 = vrot.slane %v2445_v15, 2 }
 0x105   : > { %v1550_v22 = vsel %vm1537_vm3, %v2727_v61, 0.0  ;;  %v699_v51 = vrot.slane %v2723_v8, 2  ;;  %v2751_v17 = vmul.f32 %v2207_v26, %v329_v18  ;;  %v1639_v2 = vadd.f32 %v2684_v46, %v1637_v14 }
 0x106   : > { %v906_v34 = vsel %vm520_vm0, %v3603_v49, %v905_v54  ;;  %v694_v3 = vsel %vm676_vm1, %v3604_v31, %v693_v32  ;;  %v1640_v57 = vsel %vm1537_vm3, %v1607_v10, 0.0  ;;  %v1125_v43 = vadd.f32 %v1060_v39, %v970_v36 }
 0x107   : > { %v757_v37 = vadd.f32 %v694_v3, %v601_v13  ;;  %v1608_v15 = vmul.f32 %v2729_v1, %v2729_v1  ;;  %v1610_v32 = vmul.f32 %v2731_v56, %v2731_v56  ;;  %v2763_v16 = vadd.f32 %v699_v51, %v606_v62 }
 0x108   : > { %v817_v11 = vadd.f32 %v789_v42, %v760_v45  ;;  %v1551_v12 = vadd.f32 %v1550_v22, %v1549_v4  ;;  %v1609_v46 = vmul.f32 %v2740_v5, %v2740_v5  ;;  %v1154_v25 = vmul.f32 %v2250_v52, %v329_v18 }
 0x109   : > { %v1211_v63 = vmul.f32 %v2203_v24, %v329_v18  ;;  %v1641_v55 = vadd.f32 %v1640_v57, %v1639_v2  ;;  %v908_v35 = vrot.slane %v2751_v17, 1  ;;  %v2771_v60 = vmul.f32 %v2209_v27, %v329_v18 }
 0x10a   : > { %v1366_v38 = vmul.f32 %v2211_v28, %v329_v18  ;;  %v1552_v54 = vsel %vm1539_vm2, %v2729_v1, 0.0  ;;  %v1182_v19 = vadd.f32 %v1154_v25, %v1125_v43  ;;  %v478_v44 = vmul.f32 %v2201_v23, %v323_v41 }
 0x10b   : > { %v1272_v47 = vrot.slane %v1211_v63, 1  ;;  %v1554_v40 = vsel %vm1537_vm3, %v2740_v5, 0.0  ;;  %v1556_v7 = vsel %vm1539_vm2, %v2731_v56, 0.0  ;;  %v1642_v45 = vsel %vm1539_vm2, %v1608_v15, 0.0 }
 0x10c   : > { %v1553_v14 = vadd.f32 %v1552_v54, %v1551_v12  ;;  %v1644_v18 = vsel %vm1537_vm3, %v1609_v46, 0.0  ;;  %v1646_v13 = vsel %vm1539_vm2, %v1610_v32, 0.0  ;;  %v1643_v62 = vadd.f32 %v1642_v45, %v1641_v55 }
 0x10d   : > { %v1337_v42 = vadd.f32 %v1272_v47, %v1182_v19  ;;  %v1427_v4 = vrot.slane %v1366_v38, 2  ;;  %v814_v49 = vadd.f32 %v2567_v58, %v757_v37  ;;  %v972_v3 = vadd.f32 %v908_v35, %v817_v11  ;;  %v342_v19 = vpop.permute.xlu2 %341 }
 0x10e   : > { %v542_v22 = vrot.slane %v478_v44, 1  ;;  %v1555_v2 = vadd.f32 %v1554_v40, %v1553_v14  ;;  %v1645_v57 = vadd.f32 %v1644_v18, %v1643_v62  ;;  %v603_v43 = vadd.f32 %v2673_v50, %v2550_v6 }
 0x10f   : > { %v969_v15 = vadd.f32 %v906_v34, %v814_v49  ;;  %v634_v32 = vmul.f32 %v2216_v30, %v323_v41  ;;  %v3605_v58 = vrot.slane %v2633_v20, 2  ;;  %v3606_v37 = vrot.slane %v2554_v21, 2 }
 0x110   : > { %v3607_v46 = vrot.slane %v2614_v53, 2  ;;  %v1153_v25 = vmul.f32 %v2250_v52, %v323_v41  ;;  %v1492_v63 = vadd.f32 %v1427_v4, %v1337_v42  ;;  %v1210_v6 = vmul.f32 %v2203_v24, %v323_v41 }
 0x111   : > { %v697_v12 = vsel %vm676_vm1, %v3606_v37, %v3605_v58  ;;  %v1365_v50 = vmul.f32 %v2211_v28, %v323_v41  ;;  %v1063_v20 = vrot.slane %v2771_v60, 2  ;;  %v544_v21 = vsel %vm520_vm0, %v542_v22, %v543_v0  ;;  %v336_v58 = vpop.permute.xlu1 %335 }
 0x112   : > { %v1061_v11 = vsel %vm676_vm1, %v3607_v46, %v1060_v39  ;;  %v788_v9 = vmul.f32 %v2221_v33, %v323_v41  ;;  %v845_v53 = vmul.f32 %v2207_v26, %v323_v41  ;;  %v449_v39 = vmul.f32 %v2214_v29, %v323_v41 }
 0x113   : > { %v1124_v55 = vadd.f32 %v1061_v11, %v969_v15  ;;  %v1271_v38 = vrot.slane %v1210_v6, 1  ;;  %v1426_v54 = vrot.slane %v1365_v50, 2  ;;  %v2818_v44 = vadd.f32 %v1556_v7, %v1555_v2 }
 0x114   : > { %v2820_v40 = vadd.f32 %v1646_v13, %v1645_v57  ;;  %v1127_v45 = vadd.f32 %v1063_v20, %v972_v3  ;;  %v759_v48 = vadd.f32 %v697_v12, %v603_v43  ;;  %v2824_v14 = vmax.f32 %v1492_v63, 0.0 }
 0x115   : > { %v1181_v34 = vadd.f32 %v1153_v25, %v1124_v55  ;;  %v605_v0 = vadd.f32 %v544_v21, %v449_v39  ;;  %v698_v18 = vrot.slane %v634_v32, 2  ;;  %v1273_v62 = vsel %vm520_vm0, %v1271_v38, %v1272_v47 }
 0x116   : > { %3608 = vst [vmem:[#allocation12_spill] sm:$0xff] %v2824_v14  ;;  %v816_v42 = vadd.f32 %v788_v9, %v759_v48  ;;  %v907_v49 = vrot.slane %v845_v53, 1  ;;  %v481_v15 = vmul.f32 %v2201_v23, %v342_v19  ;;  %v1000_v7 = vmul.f32 %v2209_v27, %v323_v41 }
 0x117   : > { %v1336_v22 = vadd.f32 %v1273_v62, %v1181_v34  ;;  %v1428_v13 = vsel %vm676_vm1, %v1426_v54, %v1427_v4  ;;  %v1156_v2 = vmul.f32 %v2250_v52, %v342_v19  ;;  %v2832_v3 = vmul.f32 %v2203_v24, %v342_v19 }
 0x118   : > { %v791_v43 = vmul.f32 %v2221_v33, %v342_v19  ;;  %v848_v32 = vmul.f32 %v2207_v26, %v342_v19  ;;  %v2837_v47 = vmul.f32 %v2211_v28, %v342_v19  ;;  %v1612_v37 = vmul.f32 %v2824_v14, %v2824_v14 }
 0x119   : > { %v1491_v57 = vadd.f32 %v1428_v13, %v1336_v22  ;;  %v2842_v41 = vmul.f32 %v2216_v30, %v342_v19  ;;  %v1184_v4 = vadd.f32 %v1156_v2, %v1127_v45  ;;  %v1275_v12 = vrot.slane %v2832_v3, 1 }
 0x11a   : > { %v909_v46 = vsel %vm520_vm0, %v907_v49, %v908_v35  ;;  %v452_v25 = vmul.f32 %v2214_v29, %v342_v19  ;;  %v546_v63 = vrot.slane %v481_v15, 1  ;;  %v1062_v55 = vrot.slane %v1000_v7, 2 }
 0x11b   : > { %v2848_v11 = vmax.f32 %v1491_v57, 0.0  ;;  %v1339_v6 = vadd.f32 %v1275_v12, %v1184_v4  ;;  %v1430_v50 = vrot.slane %v2837_v47, 2  ;;  %v480_v21 = vmul.f32 %v2201_v23, %v336_v58 }
 0x11c   : > { %v2855_v9 = vsel %vm1539_vm2, %v2824_v14, 0.0  ;;  %v819_v53 = vadd.f32 %v791_v43, %v2763_v16  ;;  %v911_v17 = vrot.slane %v848_v32, 1  ;;  %v1003_v35 = vmul.f32 %v2209_v27, %v342_v19 }
 0x11d   : > { %v2860_v39 = vsel %vm1539_vm2, %v1612_v37, 0.0  ;;  %v971_v38 = vadd.f32 %v909_v46, %v816_v42  ;;  %v702_v54 = vrot.slane %v2842_v41, 2  ;;  %v1611_v45 = vmul.f32 %v2848_v11, %v2848_v11 }
 0x11e   : > { %v608_v48 = vadd.f32 %v546_v63, %v452_v25  ;;  %v700_v16 = vsel %vm676_vm1, %v698_v18, %v699_v51  ;;  %v847_v62 = vmul.f32 %v2207_v26, %v336_v58  ;;  %v1494_v19 = vadd.f32 %v1430_v50, %v1339_v6 }
 0x11f   : > { %v545_v49 = vrot.slane %v480_v21, 1  ;;  %v761_v22 = vadd.f32 %v700_v16, %v605_v0  ;;  %v790_v15 = vmul.f32 %v2221_v33, %v336_v58  ;;  %v974_v7 = vadd.f32 %v911_v17, %v819_v53 }
 0x120   : > { %v1066_v13 = vrot.slane %v1003_v35, 2  ;;  %v910_v42 = vrot.slane %v847_v62, 1  ;;  %v1155_v2 = vmul.f32 %v2250_v52, %v336_v58  ;;  %v1558_v3 = vsel %vm1537_vm3, %v2848_v11, 0.0 }
 0x121   : > { %v451_v57 = vmul.f32 %v2214_v29, %v336_v58  ;;  %v636_v8 = vmul.f32 %v2216_v30, %v336_v58  ;;  %v1064_v51 = vsel %vm676_vm1, %v1062_v55, %v1063_v20  ;;  %v1002_v0 = vmul.f32 %v2209_v27, %v336_v58 }
 0x122   : > { %v1126_v18 = vadd.f32 %v1064_v51, %v971_v38  ;;  %v1212_v43 = vmul.f32 %v2203_v24, %v336_v58  ;;  %v1367_v32 = vmul.f32 %v2211_v28, %v336_v58  ;;  %v1648_v47 = vsel %vm1537_vm3, %v1611_v45, 0.0  ;;  %v349_v45 = vpop.permute.xlu0 %348 }
 0x123   : > { %v2884_v37 = vmax.f32 %v1494_v19, 0.0  ;;  %v547_v41 = vsel %vm520_vm0, %v545_v49, %v546_v63  ;;  %v818_v4 = vadd.f32 %v790_v15, %v761_v22  ;;  %v912_v46 = vsel %vm520_vm0, %v910_v42, %v911_v17 }
 0x124   : > { %v1183_v25 = vadd.f32 %v1155_v2, %v1126_v18  ;;  %v1274_v60 = vrot.slane %v1212_v43, 1  ;;  %v1429_v6 = vrot.slane %v1367_v32, 2  ;;  %v2890_v55 = vadd.f32 %v702_v54, %v608_v48  ;;  %v362_v18 = vpop.permute.xlu2 %361 }
 0x125   : > { %3609 = vst [vmem:[#allocation10_spill] sm:$0xff] %v2884_v37  ;;  %v2892_v21 = vadd.f32 %v1066_v13, %v974_v7  ;;  %v701_v58 = vrot.slane %v636_v8, 2  ;;  %v1559_v53 = vadd.f32 %v1558_v3, %v2818_v44  ;;  %v607_v35 = vadd.f32 %v547_v41, %v451_v57 }
 0x126   : > { %v1065_v38 = vrot.slane %v1002_v0, 2  ;;  %v1276_v63 = vsel %vm520_vm0, %v1274_v60, %v1275_v12  ;;  %v1649_v17 = vadd.f32 %v1648_v47, %v2820_v40  ;;  %v1614_v16 = vmul.f32 %v2884_v37, %v2884_v37 }
 0x127   : > { %v973_v62 = vadd.f32 %v912_v46, %v818_v4  ;;  %v1338_v19 = vadd.f32 %v1276_v63, %v1183_v25  ;;  %v2901_v48 = vsel %vm1539_vm2, %v2884_v37, 0.0  ;;  %v1431_v44 = vsel %vm676_vm1, %v1429_v6, %v1430_v50  ;;  %v355_v25 = vpop.permute.xlu1 %354 }
 0x128   : > { %v482_v22 = vmul.f32 %v2201_v23, %v349_v45  ;;  %v2908_v15 = vmul.f32 %v2216_v30, %v349_v45  ;;  %v703_v40 = vsel %vm676_vm1, %v701_v58, %v702_v54  ;;  %v792_v7 = vmul.f32 %v2221_v33, %v349_v45 }
 0x129   : > { %v1493_v12 = vadd.f32 %v1431_v44, %v1338_v19  ;;  %v763_v42 = vadd.f32 %v703_v40, %v607_v35  ;;  %v849_v2 = vmul.f32 %v2207_v26, %v349_v45  ;;  %v2914_v3 = vmul.f32 %v2209_v27, %v349_v45 }
 0x12a   : > { %v1067_v57 = vsel %vm676_vm1, %v1065_v38, %v1066_v13  ;;  %v2918_v50 = vsel %vm1539_vm2, %v1614_v16, 0.0  ;;  %v1157_v51 = vmul.f32 %v2250_v52, %v349_v45  ;;  %v1214_v0 = vmul.f32 %v2203_v24, %v349_v45 }
 0x12b   : > { %v1128_v8 = vadd.f32 %v1067_v57, %v973_v62  ;;  %v1561_v54 = vadd.f32 %v2855_v9, %v1559_v53  ;;  %v1369_v43 = vmul.f32 %v2211_v28, %v349_v45  ;;  %v2925_v32 = vmul.f32 %v2201_v23, %v362_v18 }
 0x12c   : > { %v2928_v47 = vmul.f32 %v2216_v30, %v362_v18  ;;  %v2930_v13 = vmax.f32 %v1493_v12, 0.0  ;;  %v1651_v41 = vadd.f32 %v2860_v39, %v1649_v17  ;;  %v453_v4 = vmul.f32 %v2214_v29, %v349_v45 }
 0x12d   : > { %v548_v46 = vrot.slane %v482_v22, 1  ;;  %v704_v60 = vrot.slane %v2908_v15, 2  ;;  %v820_v6 = vadd.f32 %v792_v7, %v763_v42  ;;  %v913_v9 = vrot.slane %v849_v2, 1 }
 0x12e   : > { %3610 = vst [vmem:[#allocation9_spill] sm:$0xff] %v2930_v13  ;;  %v1068_v58 = vrot.slane %v2914_v3, 2  ;;  %v1185_v53 = vadd.f32 %v1157_v51, %v1128_v8  ;;  %v1277_v35 = vrot.slane %v1214_v0, 1  ;;  %v2937_v38 = vmul.f32 %v2214_v29, %v362_v18 }
 0x12f   : > { %v2940_v63 = vmul.f32 %v2221_v33, %v362_v18  ;;  %v1432_v16 = vrot.slane %v1369_v43, 2  ;;  %v483_v17 = vmul.f32 %v2201_v23, %v355_v25  ;;  %v1562_v62 = vsel %vm1537_vm3, %v2930_v13, 0.0 }
 0x130   : > { %v2948_v19 = vmul.f32 %v2207_v26, %v362_v18  ;;  %v793_v44 = vmul.f32 %v2221_v33, %v355_v25  ;;  %v850_v22 = vmul.f32 %v2207_v26, %v355_v25  ;;  %v1613_v12 = vmul.f32 %v2930_v13, %v2930_v13 }
 0x131   : > { %v549_v15 = vrot.slane %v483_v17, 1  ;;  %v1158_v40 = vmul.f32 %v2250_v52, %v355_v25  ;;  %v1215_v7 = vmul.f32 %v2203_v24, %v355_v25  ;;  %v639_v2 = vmul.f32 %v2216_v30, %v355_v25 }
 0x132   : > { %v1005_v3 = vmul.f32 %v2209_v27, %v355_v25  ;;  %v1370_v57 = vmul.f32 %v2211_v28, %v355_v25  ;;  %v1563_v8 = vadd.f32 %v1562_v62, %v1561_v54  ;;  %v2962_v51 = vmul.f32 %v2209_v27, %v362_v18 }
 0x133   : > { %v914_v0 = vrot.slane %v850_v22, 1  ;;  %v1186_v43 = vadd.f32 %v1158_v40, %v2892_v21  ;;  %v454_v49 = vmul.f32 %v2214_v29, %v355_v25  ;;  %v550_v34 = vsel %vm520_vm0, %v548_v46, %v549_v15 }
 0x134   : > { %v821_v42 = vadd.f32 %v793_v44, %v2890_v55  ;;  %v1652_v20 = vsel %vm1537_vm3, %v1613_v12, 0.0  ;;  %v2971_v31 = vmul.f32 %v2203_v24, %v362_v18  ;;  %v1278_v54 = vrot.slane %v1215_v7, 1 }
 0x135   : > { %v1433_v62 = vrot.slane %v1370_v57, 2  ;;  %v2974_v10 = vmul.f32 %v2211_v28, %v362_v18  ;;  %v610_v22 = vadd.f32 %v549_v15, %v454_v49  ;;  %v705_v21 = vrot.slane %v639_v2, 2  ;;  %v375_v57 = vpop.permute.xlu2 %374  ;;  %v381_v2 = vpop.permute.xlu0 %380 }
 0x136   : > { %v1069_v40 = vrot.slane %v1005_v3, 2  ;;  %v609_v59 = vadd.f32 %v550_v34, %v453_v4  ;;  %v915_v25 = vsel %vm520_vm0, %v913_v9, %v914_v0  ;;  %v1279_v46 = vsel %vm520_vm0, %v1277_v35, %v1278_v54 }
 0x137   : > { %v1341_v36 = vadd.f32 %v1278_v54, %v1186_v43  ;;  %v2980_v44 = vmul.f32 %v2250_v52, %v362_v18  ;;  %v976_v12 = vadd.f32 %v914_v0, %v821_v42  ;;  %v1340_v7 = vadd.f32 %v1279_v46, %v1185_v53 }
 0x138   : > { %v1653_v45 = vadd.f32 %v1652_v20, %v1651_v41  ;;  %v1434_v49 = vsel %vm676_vm1, %v1432_v16, %v1433_v62  ;;  %v706_v4 = vsel %vm676_vm1, %v704_v60, %v705_v21  ;;  %v975_v9 = vadd.f32 %v915_v25, %v820_v6 }
 0x139   : > { %v1496_v15 = vadd.f32 %v1433_v62, %v1341_v36  ;;  %v1495_v35 = vadd.f32 %v1434_v49, %v1340_v7  ;;  %v2986_v3 = vadd.f32 %v706_v4, %v609_v59  ;;  %v766_v18 = vadd.f32 %v705_v21, %v610_v22 }
 0x13a   : > { %v1070_v42 = vsel %vm676_vm1, %v1068_v58, %v1069_v40  ;;  %v486_v53 = vmul.f32 %v2201_v23, %v375_v57  ;;  %v2990_v20 = vadd.f32 %v1069_v40, %v976_v12  ;;  %v2995_v36 = vmul.f32 %v2216_v30, %v375_v57 }
 0x13b   : > { %v2992_v41 = vmax.f32 %v1495_v35, 0.0  ;;  %v2998_v16 = vmul.f32 %v2207_v26, %v375_v57  ;;  %v3000_v60 = vmax.f32 %v1496_v15, 0.0  ;;  %v1565_v59 = vadd.f32 %v2901_v48, %v1563_v8  ;;  %v368_v15 = vpop.permute.xlu1 %367 }
 0x13c   : > { %v3004_v6 = vmul.f32 %v2209_v27, %v375_v57  ;;  %v487_v58 = vmul.f32 %v2201_v23, %v381_v2  ;;  %v3007_v0 = vadd.f32 %v1070_v42, %v975_v9  ;;  %v3010_v43 = vadd.f32 %v2918_v50, %v1653_v45 }
 0x13d   : > { %3611 = vst [vmem:[#allocation17_spill] sm:$0xff] %v2992_v41  ;;  %v3013_v54 = vmul.f32 %v2214_v29, %v375_v57  ;;  %v3016_v62 = vmul.f32 %v2203_v24, %v375_v57  ;;  %v1615_v22 = vmul.f32 %v2992_v41, %v2992_v41  ;;  %v554_v48 = vrot.slane %v486_v53, 1  ;;  %v3096_v14 = vpop.permute.xlu2 %393 }
 0x13e   : > { %3612 = vst [vmem:[#allocation18_spill] sm:$0xff] %v3000_v60  ;;  %v3021_v8 = vmul.f32 %v2221_v33, %v375_v57  ;;  %v3024_v21 = vmul.f32 %v2211_v28, %v375_v57  ;;  %v1566_v50 = vsel %vm1537_vm3, %v2992_v41, 0.0  ;;  %v919_v40 = vrot.slane %v2998_v16, 1 }
 0x13f   : > { %3613 = vst [vmem:[#allocation19_spill] sm:$0xff] %v3010_v43  ;;  %v3031_v25 = vmul.f32 %v2250_v52, %v375_v57  ;;  %v3035_v46 = vsel %vm1539_vm2, %v3000_v60, 0.0  ;;  %v458_v7 = vmul.f32 %v2214_v29, %v381_v2  ;;  %v555_v49 = vrot.slane %v487_v58, 1 }
 0x140   : > { %3614 = vst [vmem:[#allocation20_spill] sm:$0xff] %v3035_v46  ;;  %v3041_v4 = vmul.f32 %v3000_v60, %v3000_v60  ;;  %v1283_v35 = vrot.slane %v3016_v62, 1  ;;  %v3048_v42 = vadd.f32 %v1566_v50, %v1565_v59  ;;  %v3051_v53 = vsel %vm1537_vm3, %v1615_v22, 0.0 }
 0x141   : > { %3617 = vst [vmem:[#allocation23_spill] sm:$0xff] %v3051_v53  ;;  %v1438_v16 = vrot.slane %v3024_v21, 2  ;;  %v3055_v58 = vmul.f32 %v2216_v30, %v381_v2  ;;  %v797_v12 = vmul.f32 %v2221_v33, %v381_v2  ;;  %v854_v45 = vmul.f32 %v2207_v26, %v381_v2 }
 0x142   : > { %3615 = vst [vmem:[#allocation21_spill] sm:$0xff] %v3041_v4  ;;  %v485_v9 = vmul.f32 %v2201_v23, %v368_v15  ;;  %v641_v57 = vmul.f32 %v2216_v30, %v368_v15  ;;  %v3062_v62 = vsel %vm520_vm0, %v554_v48, %v555_v49  ;;  %v614_v59 = vadd.f32 %v555_v49, %v458_v7 }
 0x143   : > { %3616 = vst [vmem:[#allocation22_spill] sm:$0xff] %v3048_v42  ;;  %v3065_v22 = vmul.f32 %v2209_v27, %v381_v2  ;;  %v795_v21 = vmul.f32 %v2221_v33, %v368_v15  ;;  %v3069_v50 = vmul.f32 %v2203_v24, %v381_v2  ;;  %v456_v34 = vmul.f32 %v2214_v29, %v368_v15 }
 0x144   : > { %v552_v55 = vrot.slane %v485_v9, 1  ;;  %v852_v17 = vmul.f32 %v2207_v26, %v368_v15  ;;  %v3074_v39 = vmul.f32 %v2211_v28, %v381_v2  ;;  %v708_v4 = vrot.slane %v641_v57, 2 }
 0x145   : > { %v823_v48 = vadd.f32 %v795_v21, %v766_v18  ;;  %v1007_v7 = vmul.f32 %v2209_v27, %v368_v15  ;;  %v3618_v49 = vrot.slane %v2925_v32, 1  ;;  %v1160_v42 = vmul.f32 %v2250_v52, %v368_v15 }
 0x146   : > { %v612_v43 = vadd.f32 %v552_v55, %v456_v34  ;;  %v917_v46 = vrot.slane %v852_v17, 1  ;;  %v711_v60 = vrot.slane %v3055_v58, 2  ;;  %v920_v9 = vrot.slane %v854_v45, 1 }
 0x147   : > { %v553_v53 = vsel %vm520_vm0, %v3618_v49, %v552_v55  ;;  %v1162_v37 = vmul.f32 %v2250_v52, %v381_v2  ;;  %v3619_v21 = vrot.slane %v2948_v19, 1  ;;  %v1217_v49 = vmul.f32 %v2203_v24, %v368_v15 }
 0x148   : > { %v768_v18 = vadd.f32 %v708_v4, %v612_v43  ;;  %v611_v55 = vadd.f32 %v553_v53, %v2937_v38  ;;  %v822_v34 = vadd.f32 %v2940_v63, %v2986_v3  ;;  %v978_v45 = vadd.f32 %v917_v46, %v823_v48 }
 0x149   : > { %v918_v32 = vsel %vm520_vm0, %v3619_v21, %v917_v46  ;;  %v1072_v58 = vrot.slane %v1007_v7, 2  ;;  %v1188_v2 = vadd.f32 %v1160_v42, %v2990_v20  ;;  %v1281_v41 = vrot.slane %v1217_v49, 1 }
 0x14a   : > { %v1372_v43 = vmul.f32 %v2211_v28, %v368_v15  ;;  %v770_v57 = vadd.f32 %v711_v60, %v614_v59  ;;  %v921_v19 = vsel %vm520_vm0, %v919_v40, %v920_v9  ;;  %v825_v21 = vadd.f32 %v797_v12, %v768_v18 }
 0x14b   : > { %v977_v13 = vadd.f32 %v918_v32, %v822_v34  ;;  %v3620_v17 = vrot.slane %v3069_v50, 1  ;;  %v3621_v63 = vrot.slane %v2971_v31, 1  ;;  %v799_v20 = vmul.f32 %v2221_v33, %v3096_v14 }
 0x14c   : > { %v856_v46 = vmul.f32 %v2207_v26, %v3096_v14  ;;  %v3622_v40 = vrot.slane %v3074_v39, 2  ;;  %v3623_v15 = vrot.slane %v2928_v47, 2  ;;  %v1133_v42 = vadd.f32 %v1072_v58, %v978_v45 }
 0x14d   : > { %v3101_v38 = vsel %vm520_vm0, %v1283_v35, %v3620_v17  ;;  %v1282_v3 = vsel %vm520_vm0, %v3621_v63, %v1281_v41  ;;  %v1187_v31 = vadd.f32 %v2980_v44, %v3007_v0  ;;  %v3624_v59 = vrot.slane %v2962_v51, 2 }
 0x14e   : > { %v3113_v12 = vsel %vm676_vm1, %v1438_v16, %v3622_v40  ;;  %v709_v35 = vsel %vm676_vm1, %v3623_v15, %v708_v4  ;;  %v1343_v7 = vadd.f32 %v1281_v41, %v1188_v2  ;;  %v1436_v18 = vrot.slane %v1372_v43, 2 }
 0x14f   : > { %v767_v53 = vadd.f32 %v709_v35, %v611_v55  ;;  %v1073_v48 = vsel %vm676_vm1, %v3624_v59, %v1072_v58  ;;  %v1342_v49 = vadd.f32 %v1282_v3, %v1187_v31  ;;  %v3125_v16 = vmul.f32 %v2201_v23, %v3096_v14 }
 0x150   : > { %v1132_v32 = vadd.f32 %v1073_v48, %v977_v13  ;;  %v980_v47 = vadd.f32 %v920_v9, %v825_v21  ;;  %v827_v17 = vadd.f32 %v799_v20, %v770_v57  ;;  %v923_v4 = vrot.slane %v856_v46, 1 }
 0x151   : > { %v1164_v34 = vmul.f32 %v2250_v52, %v3096_v14  ;;  %v1221_v44 = vmul.f32 %v2203_v24, %v3096_v14  ;;  %v1190_v51 = vadd.f32 %v1162_v37, %v1133_v42  ;;  %v3133_v41 = vmul.f32 %v2214_v29, %v3096_v14  ;;  %v388_v37 = vpop.permute.xlu1 %387 }
 0x152   : > { %v3625_v13 = vrot.slane %v3065_v22, 2  ;;  %v1376_v55 = vmul.f32 %v2211_v28, %v3096_v14  ;;  %v3626_v9 = vrot.slane %v2974_v10, 2  ;;  %v1498_v45 = vadd.f32 %v1436_v18, %v1343_v7 }
 0x153   : > { %v1011_v58 = vmul.f32 %v2209_v27, %v3096_v14  ;;  %v1287_v2 = vrot.slane %v1221_v44, 1  ;;  %v1189_v43 = vadd.f32 %v3031_v25, %v1132_v32  ;;  %v558_v63 = vrot.slane %v3125_v16, 1  ;;  %v3157_v32 = vpop.permute.xlu2 %406 }
 0x154   : > { %v1135_v0 = vadd.f32 %v3625_v13, %v980_v47  ;;  %v1437_v57 = vsel %vm676_vm1, %v3626_v9, %v1436_v18  ;;  %v982_v20 = vadd.f32 %v923_v4, %v827_v17  ;;  %v1442_v46 = vrot.slane %v1376_v55, 2 }
 0x155   : > { %v1497_v21 = vadd.f32 %v1437_v57, %v1342_v49  ;;  %v613_v40 = vadd.f32 %v3062_v62, %v3013_v54  ;;  %v3627_v10 = vrot.slane %v2995_v36, 2  ;;  %v798_v42 = vmul.f32 %v2221_v33, %v388_v37 }
 0x156   : > { %v1192_v3 = vadd.f32 %v1164_v34, %v1135_v0  ;;  %v824_v31 = vadd.f32 %v3021_v8, %v767_v53  ;;  %v855_v25 = vmul.f32 %v2207_v26, %v388_v37  ;;  %v3154_v59 = vmax.f32 %v1498_v45, 0.0 }
 0x157   : > { %v712_v15 = vsel %vm676_vm1, %v3627_v10, %v711_v60  ;;  %v1078_v48 = vrot.slane %v1011_v58, 2  ;;  %v488_v7 = vmul.f32 %v2201_v23, %v388_v37  ;;  %v1220_v60 = vmul.f32 %v2203_v24, %v388_v37 }
 0x158   : > { %v1347_v35 = vadd.f32 %v1287_v2, %v1192_v3  ;;  %v769_v18 = vadd.f32 %v712_v15, %v613_v40  ;;  %v922_v36 = vrot.slane %v855_v25, 1  ;;  %v979_v62 = vadd.f32 %v921_v19, %v824_v31 }
 0x159   : > { %v3160_v49 = vmax.f32 %v1497_v21, 0.0  ;;  %v1137_v47 = vadd.f32 %v1078_v48, %v982_v20  ;;  %v1010_v8 = vmul.f32 %v2209_v27, %v388_v37  ;;  %v1375_v53 = vmul.f32 %v2211_v28, %v388_v37 }
 0x15a   : > { %v1502_v54 = vadd.f32 %v1442_v46, %v1347_v35  ;;  %v826_v34 = vadd.f32 %v798_v42, %v769_v18  ;;  %v1163_v44 = vmul.f32 %v2250_v52, %v388_v37  ;;  %v1166_v13 = vmul.f32 %v2250_v52, %v3157_v32  ;;  %v3195_v42 = vpop.permute.xlu1 %400 }
 0x15b   : > { %v557_v0 = vrot.slane %v488_v7, 1  ;;  %v924_v19 = vsel %vm520_vm0, %v922_v36, %v923_v4  ;;  %v3628_v55 = vrot.slane %v3065_v22, 2  ;;  %v3629_v9 = vrot.slane %v3004_v6, 2 }
 0x15c   : > { %v3164_v17 = vmax.f32 %v1502_v54, 0.0  ;;  %v1286_v45 = vrot.slane %v1220_v60, 1  ;;  %v3630_v58 = vrot.slane %v3069_v50, 1  ;;  %v1441_v20 = vrot.slane %v1375_v53, 2 }
 0x15d   : > { %v1076_v57 = vsel %vm676_vm1, %v3629_v9, %v3628_v55  ;;  %v3182_v40 = vmul.f32 %v2203_v24, %v3157_v32  ;;  %v3185_v4 = vadd.f32 %v3101_v38, %v1189_v43  ;;  %v1707_v6 = vpack.c.bf16 %v3160_v49, %v3160_v49 }
 0x15e   : > { %v3178_v21 = vadd.f32 %v3630_v58, %v1190_v51  ;;  %v1134_v3 = vadd.f32 %v1076_v57, %v979_v62  ;;  %v1708_v22 = vpack.c.bf16 %v3154_v59, %v3154_v59  ;;  %v1077_v10 = vrot.slane %v1010_v8, 2 }
 0x15f   : > { %v1712_v50 = vpack.c.bf16 %v3164_v17, %v3164_v17  ;;  %v981_v51 = vadd.f32 %v924_v19, %v826_v34  ;;  %v3193_v35 = vadd.f32 %v1166_v13, %v1137_v47  ;;  %v1288_v38 = vsel %vm520_vm0, %v1286_v45, %v1287_v2  ;;  %1737 = vst.msk [vmem:[%s3252_s8 + $0x40] sm:$0xf] %vm1719_vm4, %v1707_v6 }
 0x160   : > { %v1191_v15 = vadd.f32 %v1163_v44, %v1134_v3  ;;  %v459_v43 = vmul.f32 %v2214_v29, %v388_v37  ;;  %v559_v31 = vsel %vm520_vm0, %v557_v0, %v558_v63  ;;  %v644_v25 = vmul.f32 %v2216_v30, %v388_v37  ;;  %v414_v0 = vpop.permute.xlu0 %413  ;;  %1738 = vst.msk [vmem:[%s3252_s8 + $0x44] sm:$0x7] %vm1721_vm5, %v1708_v22 }
 0x161   : > { %v3209_v7 = vsel %vm676_vm1, %v1441_v20, %v1442_v46  ;;  %v1290_v18 = vrot.slane %v3182_v40, 1  ;;  %v3214_v54 = vmul.f32 %v2211_v28, %v3157_v32  ;;  %v645_v2 = vmul.f32 %v2216_v30, %v3096_v14  ;;  %1742 = vst.msk [vmem:[%s3252_s8 + $0x54] sm:$0x7] %vm1721_vm5, %v1712_v50  ;;  %v3662_v50 = vld [vmem:[#allocation23_spill] sm:$0xff]  ;;  %v3663_v40 = vld [vmem:[#allocation21_spill] sm:$0xff] }
 0x162   : > { %v1079_v36 = vsel %vm676_vm1, %v1077_v10, %v1078_v48  ;;  %v3221_v62 = vmul.f32 %v2250_v52, %v3195_v42  ;;  %v615_v60 = vadd.f32 %v559_v31, %v459_v43  ;;  %v713_v37 = vrot.slane %v644_v25, 2  ;;  %v3631_v25 = vld [vmem:[#allocation16_spill] sm:$0xff] }
 0x163   : > { %v3223_v47 = vadd.f32 %v1288_v38, %v1191_v15  ;;  %v714_v46 = vrot.slane %v645_v2, 2  ;;  %v857_v8 = vmul.f32 %v2207_v26, %v3195_v42  ;;  %v858_v53 = vmul.f32 %v2207_v26, %v3157_v32  ;;  %v3254_v15 = vpop.permute.xlu1 %419 }
 0x164   : > { %v3230_v34 = vadd.f32 %v1079_v36, %v981_v51  ;;  %v800_v14 = vmul.f32 %v2221_v33, %v3195_v42  ;;  %v1012_v48 = vmul.f32 %v2209_v27, %v3195_v42  ;;  %v1013_v44 = vmul.f32 %v2209_v27, %v3157_v32 }
 0x165   : > { %v3240_v13 = vmul.f32 %v2203_v24, %v3195_v42  ;;  %v715_v19 = vsel %vm676_vm1, %v713_v37, %v714_v46  ;;  %v925_v55 = vrot.slane %v857_v8, 1  ;;  %v926_v9 = vrot.slane %v858_v53, 1  ;;  %v3633_v53 = vld [vmem:[#allocation15_spill] sm:$0xff] }
 0x166   : > { %v771_v57 = vadd.f32 %v715_v19, %v615_v60  ;;  %v3244_v45 = vmul.f32 %v2207_v26, %v414_v0  ;;  %v1080_v58 = vrot.slane %v1012_v48, 2  ;;  %v1081_v3 = vrot.slane %v1013_v44, 2  ;;  %v3635_v44 = vld [vmem:[#allocation11_spill] sm:$0xff] }
 0x167   : > { %v927_v20 = vsel %vm520_vm0, %v925_v55, %v926_v9  ;;  %v1224_v10 = vmul.f32 %v2203_v24, %v414_v0  ;;  %v1379_v51 = vmul.f32 %v2211_v28, %v414_v0  ;;  %v3257_v43 = vmul.f32 %v2209_v27, %v414_v0 }
 0x168   : > { %v828_v38 = vadd.f32 %v800_v14, %v771_v57  ;;  %v616_v31 = vadd.f32 %v558_v63, %v3133_v41  ;;  %v3632_v2 = vpack.c.bf16 %v3631_v25, %v3631_v25  ;;  %v1082_v36 = vsel %vm676_vm1, %v1080_v58, %v1081_v3 }
 0x169   : > { %v1167_v60 = vmul.f32 %v2250_v52, %v414_v0  ;;  %v1292_v37 = vrot.slane %v1224_v10, 1  ;;  %v801_v8 = vmul.f32 %v2221_v33, %v3157_v32  ;;  %v3634_v14 = vpack.c.bf16 %v3633_v53, %v3633_v53 }
 0x16a   : > { %1720 = vst.msk [vmem:[%s3252_s8] sm:$0xf] %vm1719_vm4, %v3632_v2  ;;  %v983_v16 = vadd.f32 %v927_v20, %v828_v38  ;;  %v1447_v41 = vrot.slane %v1379_v51, 2  ;;  %v772_v63 = vadd.f32 %v714_v46, %v616_v31  ;;  %v1225_v48 = vmul.f32 %v2203_v24, %v3254_v15  ;;  %v3637_v20 = vld [vmem:[#allocation14_spill] sm:$0xff]  ;;  %v3639_v31 = vld [vmem:[#allocation13_spill] sm:$0xff] }
 0x16b   : > { %1722 = vst.msk [vmem:[%s3252_s8 + $0x4] sm:$0x7] %vm1721_vm5, %v3634_v14  ;;  %v3636_v19 = vpack.c.bf16 %v3635_v44, %v3635_v44  ;;  %v3285_v55 = vmul.f32 %v2207_v26, %v3254_v15  ;;  %v1168_v57 = vmul.f32 %v2250_v52, %v3254_v15  ;;  %v1380_v58 = vmul.f32 %v2211_v28, %v3254_v15  ;;  %v3641_v14 = vld [vmem:[#allocation8_spill] sm:$0xff] }
 0x16c   : > { %v3638_v46 = vpack.c.bf16 %v3637_v20, %v3637_v20  ;;  %v490_v10 = vmul.f32 %v2201_v23, %v3195_v42  ;;  %v1138_v51 = vadd.f32 %v1082_v36, %v983_v16  ;;  %v829_v38 = vadd.f32 %v801_v8, %v772_v63 }
 0x16d   : > { %1723 = vst.msk [vmem:[%s3252_s8 + $0x8] sm:$0xf] %vm1719_vm4, %v3636_v19  ;;  %v1293_v26 = vrot.slane %v1225_v48, 1  ;;  %v3640_v25 = vpack.c.bf16 %v3639_v31, %v3639_v31  ;;  %v491_v2 = vmul.f32 %v2201_v23, %v3157_v32  ;;  %v1448_v53 = vrot.slane %v1380_v58, 2 }
 0x16e   : > { %1724 = vst.msk [vmem:[%s3252_s8 + $0xc] sm:$0x7] %vm1721_vm5, %v3638_v46  ;;  %v3642_v44 = vpack.c.bf16 %v3641_v14, %v3641_v14  ;;  %v560_v19 = vrot.slane %v490_v10, 1  ;;  %v646_v36 = vmul.f32 %v2216_v30, %v3195_v42  ;;  %v647_v8 = vmul.f32 %v2216_v30, %v3157_v32 }
 0x16f   : > { %1725 = vst.msk [vmem:[%s3252_s8 + $0x10] sm:$0xf] %vm1719_vm4, %v3640_v25  ;;  %v1195_v16 = vadd.f32 %v1167_v60, %v1138_v51  ;;  %v984_v63 = vadd.f32 %v926_v9, %v829_v38  ;;  %v1294_v48 = vsel %vm520_vm0, %v1292_v37, %v1293_v26  ;;  %v3643_v23 = vpack.c.bf16 %v2727_v61, %v2727_v61 }
 0x170   : > { %1726 = vst.msk [vmem:[%s3252_s8 + $0x14] sm:$0x7] %vm1721_vm5, %v3642_v44  ;;  %v561_v58 = vrot.slane %v491_v2, 1  ;;  %v928_v20 = vrot.slane %v3244_v45, 1  ;;  %v3644_v46 = vpack.c.bf16 %v2729_v1, %v2729_v1  ;;  %v461_v30 = vmul.f32 %v2214_v29, %v3195_v42 }
 0x171   : > { %1727 = vst.msk [vmem:[%s3252_s8 + $0x18] sm:$0xf] %vm1719_vm4, %v3643_v23  ;;  %v716_v9 = vrot.slane %v646_v36, 2  ;;  %v717_v60 = vrot.slane %v647_v8, 2  ;;  %v929_v37 = vrot.slane %v3285_v55, 1  ;;  %v1139_v10 = vadd.f32 %v1081_v3, %v984_v63  ;;  %v427_v55 = vpop.permute.xlu2 %426 }
 0x172   : > { %1728 = vst.msk [vmem:[%s3252_s8 + $0x1c] sm:$0x7] %vm1721_vm5, %v3644_v46  ;;  %v1350_v61 = vadd.f32 %v1294_v48, %v1195_v16  ;;  %v3645_v51 = vpack.c.bf16 %v2740_v5, %v2740_v5  ;;  %v562_v1 = vsel %vm520_vm0, %v560_v19, %v561_v58  ;;  %v802_v45 = vmul.f32 %v2221_v33, %v414_v0  ;;  %v3648_v19 = vld [vmem:[#allocation12_spill] sm:$0xff]  ;;  %v3650_v16 = vld [vmem:[#allocation9_spill] sm:$0xff]  ;;  %v3652_v48 = vld [vmem:[#allocation10_spill] sm:$0xff] }
 0x173   : > { %v1449_v38 = vsel %vm676_vm1, %v1447_v41, %v1448_v53  ;;  %v3646_v31 = vpack.c.bf16 %v2731_v56, %v2731_v56  ;;  %v617_v3 = vadd.f32 %v562_v1, %v461_v30  ;;  %v1015_v5 = vmul.f32 %v2209_v27, %v3254_v15 }
 0x174   : > { %1729 = vst.msk [vmem:[%s3252_s8 + $0x20] sm:$0xf] %vm1719_vm4, %v3645_v51  ;;  %v3346_v25 = vmul.f32 %v2211_v28, %v3195_v42  ;;  %v1196_v2 = vadd.f32 %v1168_v57, %v1139_v10  ;;  %v1505_v0 = vadd.f32 %v1449_v38, %v1350_v61  ;;  %v3647_v41 = vpack.c.bf16 %v2848_v11, %v2848_v11  ;;  %v433_v57 = vpop.permute.xlu1 %432  ;;  %v3654_v10 = vld [vmem:[#allocation17_spill] sm:$0xff] }
 0x175   : > { %1730 = vst.msk [vmem:[%s3252_s8 + $0x24] sm:$0x7] %vm1721_vm5, %v3646_v31  ;;  %v718_v56 = vsel %vm676_vm1, %v716_v9, %v717_v60  ;;  %v1289_v14 = vrot.slane %v3240_v13, 1  ;;  %v1083_v44 = vrot.slane %v3257_v43, 2  ;;  %v3649_v27 = vpack.c.bf16 %v3648_v19, %v3648_v19  ;;  %v3661_v19 = vld [vmem:[#allocation19_spill] sm:$0xff] }
 0x176   : > { %1731 = vst.msk [vmem:[%s3252_s8 + $0x28] sm:$0xf] %vm1719_vm4, %v3647_v41  ;;  %v773_v42 = vadd.f32 %v718_v56, %v617_v3  ;;  %v462_v36 = vmul.f32 %v2214_v29, %v3157_v32  ;;  %v1351_v11 = vadd.f32 %v1293_v26, %v1196_v2  ;;  %v3363_v8 = vmax.f32 %v1505_v0, 0.0  ;;  %v3659_v56 = vld [vmem:[#allocation22_spill] sm:$0xff] }
 0x177   : > { %1732 = vst.msk [vmem:[%s3252_s8 + $0x2c] sm:$0x7] %vm1721_vm5, %v3649_v27  ;;  %v3651_v63 = vpack.c.bf16 %v3650_v16, %v3650_v16  ;;  %v930_v13 = vsel %vm520_vm0, %v928_v20, %v929_v37  ;;  %v1226_v43 = vmul.f32 %v2203_v24, %v427_v55  ;;  %v3653_v23 = vpack.c.bf16 %v3652_v48, %v3652_v48 }
 0x178   : > { %v830_v29 = vadd.f32 %v802_v45, %v773_v42  ;;  %v1084_v32 = vrot.slane %v1015_v5, 2  ;;  %v618_v26 = vadd.f32 %v561_v58, %v462_v36  ;;  %v803_v46 = vmul.f32 %v2221_v33, %v3254_v15  ;;  %v3656_v15 = vld [vmem:[#allocation18_spill] sm:$0xff] }
 0x179   : > { %1733 = vst.msk [vmem:[%s3252_s8 + $0x30] sm:$0xf] %vm1719_vm4, %v3651_v63  ;;  %v1445_v30 = vrot.slane %v3214_v54, 2  ;;  %v1193_v20 = vadd.f32 %v3221_v62, %v3230_v34  ;;  %v1506_v9 = vadd.f32 %v1448_v53, %v1351_v11  ;;  %v3655_v61 = vpack.c.bf16 %v3654_v10, %v3654_v10 }
 0x17a   : > { %1734 = vst.msk [vmem:[%s3252_s8 + $0x34] sm:$0x7] %vm1721_vm5, %v3653_v23  ;;  %v1227_v51 = vmul.f32 %v2203_v24, %v433_v57  ;;  %v1444_v1 = vrot.slane %v3346_v25, 2  ;;  %v1715_v33 = vpack.c.bf16 %v3363_v8, %v3363_v8  ;;  %v3657_v54 = vpack.c.bf16 %v3656_v15, %v3656_v15 }
 0x17b   : > { %1735 = vst.msk [vmem:[%s3252_s8 + $0x38] sm:$0xf] %vm1719_vm4, %v3655_v61  ;;  %v985_v62 = vadd.f32 %v930_v13, %v830_v29  ;;  %v774_v34 = vadd.f32 %v717_v60, %v618_v26  ;;  %v3396_v53 = vmax.f32 %v1506_v9, 0.0  ;;  %v1295_v24 = vrot.slane %v1226_v43, 1 }
 0x17c   : > { %1736 = vst.msk [vmem:[%s3252_s8 + $0x3c] sm:$0x7] %vm1721_vm5, %v3657_v54  ;;  %v1381_v58 = vmul.f32 %v2211_v28, %v427_v55  ;;  %v1291_v45 = vsel %vm520_vm0, %v1289_v14, %v1290_v18  ;;  %v1085_v60 = vsel %vm676_vm1, %v1083_v44, %v1084_v32  ;;  %v1296_v31 = vrot.slane %v1227_v51, 1  ;;  %v3660_v14 = vld [vmem:[#allocation20_spill] sm:$0xff] }
 0x17d   : > { %v831_v38 = vadd.f32 %v803_v46, %v774_v34  ;;  %v1499_v6 = vadd.f32 %v3113_v12, %v3185_v4  ;;  %v1716_v3 = vpack.c.bf16 %v3396_v53, %v3396_v53  ;;  %v1140_v5 = vadd.f32 %v1085_v60, %v985_v62  ;;  %1745 = vst.msk [vmem:[%s3252_s8 + $0x60] sm:$0xf] %vm1719_vm4, %v1715_v33 }
 0x17e   : > { %v1169_v25 = vmul.f32 %v2250_v52, %v427_v55  ;;  %v1382_v22 = vmul.f32 %v2211_v28, %v433_v57  ;;  %v1170_v0 = vmul.f32 %v2250_v52, %v433_v57  ;;  %v1348_v41 = vadd.f32 %v1291_v45, %v1193_v20 }
 0x17f   : > { %v986_v2 = vadd.f32 %v929_v37, %v831_v38  ;;  %v3658_v12 = vrot.slane %v3074_v39, 2  ;;  %v1569_v44 = vadd.f32 %v3660_v14, %v3659_v56  ;;  %v1657_v27 = vadd.f32 %v3662_v50, %v3661_v19  ;;  %1746 = vst.msk [vmem:[%s3252_s8 + $0x64] sm:$0x7] %vm1721_vm5, %v1716_v3 }
 0x180   : > { %v1501_v28 = vadd.f32 %v3209_v7, %v3223_v47  ;;  %v1527_v55 = vmax.f32 %v1499_v6, 0.0  ;;  %v1450_v37 = vrot.slane %v1381_v58, 2  ;;  %v1297_v52 = vsel %vm520_vm0, %v1295_v24, %v1296_v31 }
 0x181   : > { %v1500_v4 = vadd.f32 %v3658_v12, %v3178_v21  ;;  %v1141_v42 = vadd.f32 %v1084_v32, %v986_v2  ;;  %v1349_v39 = vadd.f32 %v1290_v18, %v3193_v35  ;;  %v1197_v21 = vadd.f32 %v1169_v25, %v1140_v5 }
 0x182   : > { %v1446_v57 = vsel %vm676_vm1, %v1444_v1, %v1445_v30  ;;  %v1451_v36 = vrot.slane %v1382_v22, 2  ;;  %v1570_v11 = vsel %vm1537_vm3, %v3160_v49, 0.0  ;;  %v1529_v43 = vmax.f32 %v1501_v28, 0.0 }
 0x183   : > { %v1198_v16 = vadd.f32 %v1170_v0, %v1141_v42  ;;  %v1503_v63 = vadd.f32 %v1446_v57, %v1348_v41  ;;  %v1528_v13 = vmax.f32 %v1500_v4, 0.0  ;;  %v1571_v7 = vadd.f32 %v1570_v11, %v1569_v44 }
 0x184   : > { %v1352_v47 = vadd.f32 %v1297_v52, %v1197_v21  ;;  %v1572_v48 = vsel %vm1539_vm2, %v3154_v59, 0.0  ;;  %v1574_v23 = vsel %vm1537_vm3, %v1527_v55, 0.0  ;;  %v1658_v35 = vsel %vm1539_vm2, %v3663_v40, 0.0 }
 0x185   : > { %v1617_v18 = vmul.f32 %v3160_v49, %v3160_v49  ;;  %v1353_v29 = vadd.f32 %v1296_v31, %v1198_v16  ;;  %v1573_v32 = vadd.f32 %v1572_v48, %v1571_v7  ;;  %v1659_v26 = vadd.f32 %v1658_v35, %v1657_v27 }
 0x186   : > { %v1504_v46 = vadd.f32 %v1445_v30, %v1349_v39  ;;  %v1618_v20 = vmul.f32 %v3154_v59, %v3154_v59  ;;  %v1452_v9 = vsel %vm676_vm1, %v1450_v37, %v1451_v36  ;;  %v1619_v61 = vmul.f32 %v1527_v55, %v1527_v55 }
 0x187   : > { %v1575_v10 = vadd.f32 %v1574_v23, %v1573_v32  ;;  %v1507_v51 = vadd.f32 %v1452_v9, %v1352_v47  ;;  %v1531_v1 = vmax.f32 %v1503_v63, 0.0  ;;  %v1576_v33 = vsel %vm1539_vm2, %v1528_v13, 0.0 }
 0x188   : > { %v1578_v15 = vsel %vm1537_vm3, %v1529_v43, 0.0  ;;  %v1508_v54 = vadd.f32 %v1451_v36, %v1353_v29  ;;  %v1660_v49 = vsel %vm1537_vm3, %v1617_v18, 0.0  ;;  %v1532_v34 = vmax.f32 %v1504_v46, 0.0 }
 0x189   : > { %v1577_v62 = vadd.f32 %v1576_v33, %v1575_v10  ;;  %v1620_v24 = vmul.f32 %v1528_v13, %v1528_v13  ;;  %v1661_v30 = vadd.f32 %v1660_v49, %v1659_v26  ;;  %v1621_v45 = vmul.f32 %v1529_v43, %v1529_v43 }
 0x18a   : > { %v1662_v59 = vsel %vm1539_vm2, %v1618_v20, 0.0  ;;  %v1664_v60 = vsel %vm1537_vm3, %v1619_v61, 0.0  ;;  %v1535_v38 = vmax.f32 %v1507_v51, 0.0  ;;  %v1580_v31 = vsel %vm1539_vm2, %v3164_v17, 0.0 }
 0x18b   : > { %v1579_v58 = vadd.f32 %v1578_v15, %v1577_v62  ;;  %v1582_v6 = vsel %vm1537_vm3, %v1531_v1, 0.0  ;;  %v1663_v3 = vadd.f32 %v1662_v59, %v1661_v30  ;;  %v1536_v5 = vmax.f32 %v1508_v54, 0.0 }
 0x18c   : > { %v1622_v22 = vmul.f32 %v3164_v17, %v3164_v17  ;;  %v1623_v2 = vmul.f32 %v1531_v1, %v1531_v1  ;;  %v1709_v41 = vpack.c.bf16 %v1527_v55, %v1527_v55  ;;  %v1710_v12 = vpack.c.bf16 %v1528_v13, %v1528_v13 }
 0x18d   : > { %v1581_v25 = vadd.f32 %v1580_v31, %v1579_v58  ;;  %v1665_v0 = vadd.f32 %v1664_v60, %v1663_v3  ;;  %v1711_v4 = vpack.c.bf16 %v1529_v43, %v1529_v43  ;;  %v1666_v14 = vsel %vm1539_vm2, %v1620_v24, 0.0 }
 0x18e   : > { %v1668_v44 = vsel %vm1537_vm3, %v1621_v45, 0.0  ;;  %v1713_v19 = vpack.c.bf16 %v1531_v1, %v1531_v1  ;;  %v1584_v50 = vsel %vm1539_vm2, %v1532_v34, 0.0  ;;  %v1586_v27 = vsel %vm1537_vm3, %v3363_v8, 0.0  ;;  %1739 = vst.msk [vmem:[%s3252_s8 + $0x48] sm:$0xf] %vm1719_vm4, %v1709_v41 }
 0x18f   : > { %v1583_v56 = vadd.f32 %v1582_v6, %v1581_v25  ;;  %v1667_v17 = vadd.f32 %v1666_v14, %v1665_v0  ;;  %v1714_v28 = vpack.c.bf16 %v1532_v34, %v1532_v34  ;;  %v1717_v37 = vpack.c.bf16 %v1535_v38, %v1535_v38  ;;  %1740 = vst.msk [vmem:[%s3252_s8 + $0x4c] sm:$0x7] %vm1721_vm5, %v1710_v12 }
 0x190   : > { %v1624_v42 = vmul.f32 %v1532_v34, %v1532_v34  ;;  %v1718_v39 = vpack.c.bf16 %v1536_v5, %v1536_v5  ;;  %1741 = vst.msk [vmem:[%s3252_s8 + $0x50] sm:$0xf] %vm1719_vm4, %v1711_v4  ;;  %v1625_v57 = vmul.f32 %v3363_v8, %v3363_v8  ;;  %v1670_v36 = vsel %vm1539_vm2, %v1622_v22, 0.0 }
 0x191   : > { %v1585_v55 = vadd.f32 %v1584_v50, %v1583_v56  ;;  %v1669_v52 = vadd.f32 %v1668_v44, %v1667_v17  ;;  %v1672_v11 = vsel %vm1537_vm3, %v1623_v2, 0.0  ;;  %1743 = vst.msk [vmem:[%s3252_s8 + $0x58] sm:$0xf] %vm1719_vm4, %v1713_v19  ;;  %v1588_v16 = vsel %vm1539_vm2, %v3396_v53, 0.0 }
 0x192   : > { %v1590_v63 = vsel %vm1537_vm3, %v1535_v38, 0.0  ;;  %1744 = vst.msk [vmem:[%s3252_s8 + $0x5c] sm:$0x7] %vm1721_vm5, %v1714_v28  ;;  %v1626_v8 = vmul.f32 %v3396_v53, %v3396_v53  ;;  %v1627_v48 = vmul.f32 %v1535_v38, %v1535_v38  ;;  %v1674_v23 = vsel %vm1539_vm2, %v1624_v42, 0.0 }
 0x193   : > { %v1587_v21 = vadd.f32 %v1586_v27, %v1585_v55  ;;  %v1671_v13 = vadd.f32 %v1670_v36, %v1669_v52  ;;  %1747 = vst.msk [vmem:[%s3252_s8 + $0x68] sm:$0xf] %vm1719_vm4, %v1717_v37  ;;  %v1676_v40 = vsel %vm1537_vm3, %v1625_v57, 0.0  ;;  %v1592_v35 = vsel %vm1539_vm2, %v1536_v5, 0.0 }
 0x194   : > { %1748 = vst.msk [vmem:[%s3252_s8 + $0x6c] sm:$0x7] %vm1721_vm5, %v1718_v39  ;;  %v1628_v46 = vmul.f32 %v1536_v5, %v1536_v5  ;;  %v1678_v20 = vsel %vm1539_vm2, %v1626_v8, 0.0  ;;  %v1680_v53 = vsel %vm1537_vm3, %v1627_v48, 0.0 }
 0x195   : > { %v1589_v7 = vadd.f32 %v1588_v16, %v1587_v21  ;;  %v1673_v47 = vadd.f32 %v1672_v11, %v1671_v13 }
 0x196   : > { %v1682_v1 = vsel %vm1539_vm2, %v1628_v46, 0.0 }
 0x197   : > { %v1591_v43 = vadd.f32 %v1590_v63, %v1589_v7  ;;  %v1675_v18 = vadd.f32 %v1674_v23, %v1673_v47 }
 0x199   : > { %v1593_v29 = vadd.f32 %v1592_v35, %v1591_v43  ;;  %v1677_v32 = vadd.f32 %v1676_v40, %v1675_v18 }
 0x19b   : > { %v1594_v26 = vrot.slane %v1593_v29, 4  ;;  %v1679_v9 = vadd.f32 %v1678_v20, %v1677_v32 }
 0x19d   : > { %v1595_v10 = vadd.f32 %v1594_v26, %v1593_v29  ;;  %v1681_v61 = vadd.f32 %v1680_v53, %v1679_v9 }
 0x19f   : > { %v1596_v51 = vrot.slane %v1595_v10, 2  ;;  %v1683_v33 = vadd.f32 %v1682_v1, %v1681_v61 }
 0x1a1   : > { %v1597_v15 = vadd.f32 %v1596_v51, %v1595_v10  ;;  %v1684_v54 = vrot.slane %v1683_v33, 4 }
 0x1a3   : > { %v1598_v62 = vrot.slane %v1597_v15, 1  ;;  %v1685_v49 = vadd.f32 %v1684_v54, %v1683_v33 }
 0x1a5   : > { %v1599_v34 = vadd.f32 %v1598_v62, %v1597_v15  ;;  %v1686_v24 = vrot.slane %v1685_v49, 2 }
 0x1a7   : > { %1750 = vst.msk [vmem:[%s220_s12] sm:$0x1] %vm1749_vm6, %v1599_v34  ;;  %v1687_v30 = vadd.f32 %v1686_v24, %v1685_v49 }
 0x1a9   : > { %v1688_v58 = vrot.slane %v1687_v30, 1 }
 0x1ab   : > { %v1689_v45 = vadd.f32 %v1688_v58, %v1687_v30 }
 0x1ad   : > { %1751 = vst.msk [vmem:[%s220_s12 + $0x1] sm:$0x1] %vm1749_vm6, %v1689_v45 }
 0x1ae PF: > { %p15_p4 = scmp.ge.s32.totalorder %s2119_s24, 4   ;;  %s3664_s12 = smov %s2041_s13 }
 0x1af   : > { %s3665_s13 = smov %s2045_s14  ;;  %s3666_s14 = smov %s2129_s29 }
 0x1b0   : > { %s3667_s15 = smov %s2119_s24  ;;  %17 = sbr.rel (!%p15_p4) target bundleno = 4 (0x4), region = 84 }
 0x1b5   :  { %1787 = vsyncpa [#allocation3], 1 }
 0x1b6   :  { %1789 = vsyncpa [#allocation3 + $0x1], 1 }
 0x1b7   :  { %1790 = vsyncpa [#allocation5], 1 }

// kernel: galaxy_net_forward.5
= control target key start
LH: loop header
LB: loop body
LE: loop exit
PB: predicated region body
PF: predicated region fallthrough
CT: control target
= control target key end

     0   :  { %10 = vsyncpa [#allocation4], 0  ;;  %s3336_s0 = inlined_call_operand.vmem [shape: bf16[2,3200], index: 0, kind: input, shape index: {}]   ;;  %s3337_s1 = inlined_call_operand.hbm [shape: bf16[3200,128], index: 1, kind: input, shape index: {}]   ;;  %s3338_s2 = inlined_call_operand.vmem [shape: f32[1,128], index: 2, kind: input, shape index: {}]   ;;  %s3339_s3 = inlined_call_operand.vmem [shape: bf16[128,128], index: 3, kind: input, shape index: {}]   ;;  %s3340_s4 = inlined_call_operand.vmem [shape: f32[1,128], index: 4, kind: input, shape index: {}]   ;;  %s3341_s5 = inlined_call_operand.hbm [shape: f32[2,128], index: 5, kind: output, shape index: {}]  }
   0x1   :  { %11 = vsyncpa [#allocation5], 0  ;;  %s18_s20 = sshll.u32 %s3337_s1, 4  ;;  %s3241_s21 = smov [#allocation3]   ;;  %s19_s20 = int_to_ptr.hbm [resolvable:$true] %s18_s20 }
   0x2   :  { %s20_s22 = sshll.u32 %s3241_s21, 4  ;;  %s3242_s23 = smov 64   ;;  %s21_s22 = int_to_ptr.vmem [resolvable:$true] %s20_s22 }
   0x3   :  { %s3243_s24 = smov 4  }
   0x4   :  { %26 = dma.hbm_to_vmem [thread:$0]  %s19_s20, 25600, %s21_s22, [#allocation4], %s3242_s23, %s3242_s23, %s3243_s24  }
   0x5   :  { %3237 = dma.done.wait [#allocation4], 25600  }
   0x6   :  { %3238 = vsyncadd [#allocation4], 4294941696  ;;  %v2981_v0 = vld [vmem:[#allocation3 + $0x38] sm:$0xff]  ;;  %v2980_v4 = vld [vmem:[#allocation3 + $0x30] sm:$0xff]  ;;  %s3245_s1 = smov [#allocation6]   ;;  %s2132_s28 = sshll.u32 %s3341_s5, 4  ;;  %s2133_s28 = int_to_ptr.hbm [resolvable:$true] %s2132_s28 }
   0x7   :  { %v2997_v1 = vld [vmem:[#allocation3 + $0xb8] sm:$0xff]  ;;  %1705 = vmatpush.bf16.msra.mxu0 %v2981_v0  ;;  %v2996_v5 = vld [vmem:[#allocation3 + $0xb0] sm:$0xff]  ;;  %v2979_v8 = vld [vmem:[#allocation3 + $0x28] sm:$0xff]  ;;  %s2130_s25 = sshll.u32 %s3245_s1, 4  ;;  %s2131_s25 = int_to_ptr.vmem [resolvable:$true] %s2130_s25 }
   0x8   :  { %v2989_v2 = vld [vmem:[#allocation3 + $0x78] sm:$0xff]  ;;  %1731 = vmatpush.bf16.msra.mxu2 %v2997_v1  ;;  %v2988_v6 = vld [vmem:[#allocation3 + $0x70] sm:$0xff]  ;;  %v2995_v9 = vld [vmem:[#allocation3 + $0xa8] sm:$0xff] }
   0x9   :  { %v3005_v3 = vld [vmem:[#allocation3 + $0xf8] sm:$0xff]  ;;  %1718 = vmatpush.bf16.msra.mxu1 %v2989_v2  ;;  %v3004_v7 = vld [vmem:[#allocation3 + $0xf0] sm:$0xff]  ;;  %v2987_v10 = vld [vmem:[#allocation3 + $0x68] sm:$0xff] }
   0xa   :  { %1744 = vmatpush.bf16.msra.mxu3 %v3005_v3  ;;  %v3003_v11 = vld [vmem:[#allocation3 + $0xe8] sm:$0xff]  ;;  %v2978_v12 = vld [vmem:[#allocation3 + $0x20] sm:$0xff]  ;;  %v2977_v16 = vld [vmem:[#allocation3 + $0x18] sm:$0xff] }
   0xb   :  { %1706 = vmatpush.bf16.msra.mxu0 %v2980_v4  ;;  %v2994_v13 = vld [vmem:[#allocation3 + $0xa0] sm:$0xff]  ;;  %v2993_v17 = vld [vmem:[#allocation3 + $0x98] sm:$0xff]  ;;  %v2976_v21 = vld [vmem:[#allocation3 + $0x10] sm:$0xff] }
   0xc   :  { %1732 = vmatpush.bf16.msra.mxu2 %v2996_v5  ;;  %v2986_v14 = vld [vmem:[#allocation3 + $0x60] sm:$0xff]  ;;  %v2985_v18 = vld [vmem:[#allocation3 + $0x58] sm:$0xff]  ;;  %v2992_v22 = vld [vmem:[#allocation3 + $0x90] sm:$0xff] }
   0xd   :  { %1719 = vmatpush.bf16.msra.mxu1 %v2988_v6  ;;  %v3002_v15 = vld [vmem:[#allocation3 + $0xe0] sm:$0xff]  ;;  %v3001_v19 = vld [vmem:[#allocation3 + $0xd8] sm:$0xff]  ;;  %v2984_v23 = vld [vmem:[#allocation3 + $0x50] sm:$0xff] }
   0xe   :  { %1745 = vmatpush.bf16.msra.mxu3 %v3004_v7  ;;  %v43_v20 = vld [vmem:[%s3336_s0] sm:$0xff]  ;;  %v2975_v25 = vld [vmem:[#allocation3 + $0x8] sm:$0xff]  ;;  %v2974_v29 = vld [vmem:[#allocation3] sm:$0xff] }
   0xf   :  { %1707 = vmatpush.bf16.msra.mxu0 %v2979_v8  ;;  %448 = vst [vmem:[#allocation1] ss:$9 sm:$0xff] %v43_v20  ;;  %v3000_v24 = vld [vmem:[#allocation3 + $0xd0] sm:$0xff]  ;;  %v2991_v26 = vld [vmem:[#allocation3 + $0x88] sm:$0xff]  ;;  %v2990_v30 = vld [vmem:[#allocation3 + $0x80] sm:$0xff] }
  0x10   :  { %1733 = vmatpush.bf16.msra.mxu2 %v2995_v9  ;;  %v2983_v27 = vld [vmem:[#allocation3 + $0x48] sm:$0xff]  ;;  %v3013_v31 = vld [vmem:[#allocation3 + $0x138] sm:$0xff]  ;;  %v2982_v33 = vld [vmem:[#allocation3 + $0x40] sm:$0xff] }
  0x11   :  { %1720 = vmatpush.bf16.msra.mxu1 %v2987_v10  ;;  %v2999_v28 = vld [vmem:[#allocation3 + $0xc8] sm:$0xff]  ;;  %v3029_v32 = vld [vmem:[#allocation3 + $0x1b8] sm:$0xff]  ;;  %v2998_v34 = vld [vmem:[#allocation3 + $0xc0] sm:$0xff] }
  0x12   :  { %1746 = vmatpush.bf16.msra.mxu3 %v3003_v11  ;;  %v3021_v35 = vld [vmem:[#allocation3 + $0x178] sm:$0xff]  ;;  %v3012_v37 = vld [vmem:[#allocation3 + $0x130] sm:$0xff]  ;;  %v3011_v50 = vld [vmem:[#allocation3 + $0x128] sm:$0xff] }
  0x13   :  { %1708 = vmatpush.bf16.msra.mxu0 %v2978_v12  ;;  %v3037_v36 = vld [vmem:[#allocation3 + $0x1f8] sm:$0xff]  ;;  %v3028_v38 = vld [vmem:[#allocation3 + $0x1b0] sm:$0xff]  ;;  %v3027_v51 = vld [vmem:[#allocation3 + $0x1a8] sm:$0xff] }
  0x14   :  { %1734 = vmatpush.bf16.msra.mxu2 %v2994_v13  ;;  %v3020_v41 = vld [vmem:[#allocation3 + $0x170] sm:$0xff]  ;;  %v44_v48 = vld [vmem:[%s3336_s0 + $0x8] sm:$0xff]  ;;  %v3019_v52 = vld [vmem:[#allocation3 + $0x168] sm:$0xff] }
  0x15   :  { %1721 = vmatpush.bf16.msra.mxu1 %v2986_v14  ;;  %v3036_v42 = vld [vmem:[#allocation3 + $0x1f0] sm:$0xff]  ;;  %v3035_v53 = vld [vmem:[#allocation3 + $0x1e8] sm:$0xff]  ;;  %v3010_v54 = vld [vmem:[#allocation3 + $0x120] sm:$0xff] }
  0x16   :  { %1747 = vmatpush.bf16.msra.mxu3 %v3002_v15  ;;  %v451_v39 = vld [vmem:[#allocation1 + $0x12] sm:$0xff]  ;;  %v449_v40 = vld [vmem:[#allocation1] sm:$0xff]  ;;  %v450_v44 = vld [vmem:[#allocation1 + $0x9] sm:$0xff] }
  0x17   :  { %1709 = vmatpush.bf16.msra.mxu0 %v2977_v16  ;;  %v452_v43 = vld [vmem:[#allocation1 + $0x1b] sm:$0xff]  ;;  %v3284_v46 = vld [vmem:[#allocation1 + $0x24] sm:$0xff]  ;;  %v3291_v49 = vld [vmem:[#allocation1 + $0x2d] sm:$0xff] }
  0x18   :  { %1735 = vmatpush.bf16.msra.mxu2 %v2993_v17  ;;  %v3282_v45 = vld [vmem:[#allocation1 + $0x36] sm:$0xff]  ;;  %v3286_v47 = vld [vmem:[#allocation1 + $0x3f] sm:$0xff]  ;;  %v3026_v55 = vld [vmem:[#allocation3 + $0x1a0] sm:$0xff] }
  0x19   :  { %1722 = vmatpush.bf16.msra.mxu1 %v2985_v18  ;;  %458 = vst [vmem:[#allocation1] ss:$9 sm:$0xff] %v44_v48  ;;  %v3018_v56 = vld [vmem:[#allocation3 + $0x160] sm:$0xff]  ;;  %v3009_v58 = vld [vmem:[#allocation3 + $0x118] sm:$0xff]  ;;  %v3008_v62 = vld [vmem:[#allocation3 + $0x110] sm:$0xff] }
  0x1a   :  { %1748 = vmatpush.bf16.msra.mxu3 %v3001_v19  ;;  %v3034_v57 = vld [vmem:[#allocation3 + $0x1e0] sm:$0xff]  ;;  %v3025_v59 = vld [vmem:[#allocation3 + $0x198] sm:$0xff]  ;;  %v3024_v63 = vld [vmem:[#allocation3 + $0x190] sm:$0xff] }
  0x1b   :  { %1710 = vmatpush.bf16.msra.mxu0 %v2976_v21  ;;  %v3017_v60 = vld [vmem:[#allocation3 + $0x158] sm:$0xff]  ;;  %v3016_v0 = vld [vmem:[#allocation3 + $0x150] sm:$0xff]  ;;  %v3007_v2 = vld [vmem:[#allocation3 + $0x108] sm:$0xff] }
  0x1c   :  { %1736 = vmatpush.bf16.msra.mxu2 %v2992_v22  ;;  %v3033_v61 = vld [vmem:[#allocation3 + $0x1d8] sm:$0xff]  ;;  %v3032_v1 = vld [vmem:[#allocation3 + $0x1d0] sm:$0xff]  ;;  %v3023_v3 = vld [vmem:[#allocation3 + $0x188] sm:$0xff] }
  0x1d   :  { %1723 = vmatpush.bf16.msra.mxu1 %v2984_v23  ;;  %v3015_v4 = vld [vmem:[#allocation3 + $0x148] sm:$0xff]  ;;  %v3006_v6 = vld [vmem:[#allocation3 + $0x100] sm:$0xff]  ;;  %v3045_v8 = vld [vmem:[#allocation3 + $0x238] sm:$0xff] }
  0x1e   :  { %1749 = vmatpush.bf16.msra.mxu3 %v3000_v24  ;;  %v3031_v5 = vld [vmem:[#allocation3 + $0x1c8] sm:$0xff]  ;;  %v3022_v7 = vld [vmem:[#allocation3 + $0x180] sm:$0xff]  ;;  %v3061_v9 = vld [vmem:[#allocation3 + $0x2b8] sm:$0xff] }
  0x1f   :  { %1711 = vmatpush.bf16.msra.mxu0 %v2975_v25  ;;  %v3014_v10 = vld [vmem:[#allocation3 + $0x140] sm:$0xff]  ;;  %v3053_v12 = vld [vmem:[#allocation3 + $0x278] sm:$0xff]  ;;  %v3044_v14 = vld [vmem:[#allocation3 + $0x230] sm:$0xff] }
  0x20   :  { %1737 = vmatpush.bf16.msra.mxu2 %v2991_v26  ;;  %v3030_v11 = vld [vmem:[#allocation3 + $0x1c0] sm:$0xff]  ;;  %v3069_v13 = vld [vmem:[#allocation3 + $0x2f8] sm:$0xff]  ;;  %v3060_v15 = vld [vmem:[#allocation3 + $0x2b0] sm:$0xff] }
  0x21   :  { %1724 = vmatpush.bf16.msra.mxu1 %v2983_v27  ;;  %v3052_v16 = vld [vmem:[#allocation3 + $0x270] sm:$0xff]  ;;  %v3043_v18 = vld [vmem:[#allocation3 + $0x228] sm:$0xff]  ;;  %v3042_v22 = vld [vmem:[#allocation3 + $0x220] sm:$0xff] }
  0x22   :  { %1750 = vmatpush.bf16.msra.mxu3 %v2999_v28  ;;  %v3068_v17 = vld [vmem:[#allocation3 + $0x2f0] sm:$0xff]  ;;  %v3059_v19 = vld [vmem:[#allocation3 + $0x2a8] sm:$0xff]  ;;  %v3058_v23 = vld [vmem:[#allocation3 + $0x2a0] sm:$0xff] }
  0x23   :  { %1712 = vmatpush.bf16.msra.mxu0 %v2974_v29  ;;  %v3051_v20 = vld [vmem:[#allocation3 + $0x268] sm:$0xff]  ;;  %v3050_v24 = vld [vmem:[#allocation3 + $0x260] sm:$0xff]  ;;  %v3041_v26 = vld [vmem:[#allocation3 + $0x218] sm:$0xff] }
  0x24   :  { %1738 = vmatpush.bf16.msra.mxu2 %v2990_v30  ;;  %v3067_v21 = vld [vmem:[#allocation3 + $0x2e8] sm:$0xff]  ;;  %v3066_v25 = vld [vmem:[#allocation3 + $0x2e0] sm:$0xff]  ;;  %v3057_v27 = vld [vmem:[#allocation3 + $0x298] sm:$0xff] }
  0x25   :  { %1725 = vmatpush.bf16.msra.mxu1 %v2982_v33  ;;  %v3049_v28 = vld [vmem:[#allocation3 + $0x258] sm:$0xff]  ;;  %v3040_v30 = vld [vmem:[#allocation3 + $0x210] sm:$0xff] }
  0x26   :  { %1751 = vmatpush.bf16.msra.mxu3 %v2998_v34  ;;  %1713 = vmatmul.bf16.vlgmr.msra.gmra.mxu0 %v449_v40  ;;  %v3065_v29 = vld [vmem:[#allocation3 + $0x2d8] sm:$0xff]  ;;  %v3064_v33 = vld [vmem:[#allocation3 + $0x2d0] sm:$0xff]  ;;  %v3039_v34 = vld [vmem:[#allocation3 + $0x208] sm:$0xff] }
  0x27   :  { %1757 = vmatpush.bf16.msrb.mxu0 %v3013_v31  ;;  %1739 = vmatmul.bf16.vlgmr.msra.gmra.mxu2 %v451_v39  ;;  %v3056_v31 = vld [vmem:[#allocation3 + $0x290] sm:$0xff]  ;;  %v3054_v39 = vld [vmem:[#allocation3 + $0x280] sm:$0xff]  ;;  %v3077_v40 = vld [vmem:[#allocation3 + $0x338] sm:$0xff] }
  0x28   :  { %1783 = vmatpush.bf16.msrb.mxu2 %v3029_v32  ;;  %1726 = vmatmul.bf16.vlgmr.msra.gmra.mxu1 %v450_v44  ;;  %v3048_v32 = vld [vmem:[#allocation3 + $0x250] sm:$0xff]  ;;  %v3085_v44 = vld [vmem:[#allocation3 + $0x378] sm:$0xff] }
  0x29   :  { %1770 = vmatpush.bf16.msrb.mxu1 %v3021_v35  ;;  %1752 = vmatmul.bf16.vlgmr.msra.gmra.mxu3 %v452_v43  ;;  %v3055_v35 = vld [vmem:[#allocation3 + $0x288] sm:$0xff]  ;;  %v3062_v43 = vld [vmem:[#allocation3 + $0x2c0] sm:$0xff] }
  0x2a   :  { %1796 = vmatpush.bf16.msrb.mxu3 %v3037_v36  ;;  %v3047_v36 = vld [vmem:[#allocation3 + $0x248] sm:$0xff]  ;;  %v460_v48 = vld [vmem:[#allocation1 + $0x9] sm:$0xff] }
  0x2b   :  { %1758 = vmatpush.bf16.msrb.mxu0 %v3012_v37  ;;  %v3063_v37 = vld [vmem:[#allocation3 + $0x2c8] sm:$0xff] }
  0x2c   :  { %1784 = vmatpush.bf16.msrb.mxu2 %v3028_v38  ;;  %v3038_v38 = vld [vmem:[#allocation3 + $0x200] sm:$0xff] }
  0x2d   :  { %1771 = vmatpush.bf16.msrb.mxu1 %v3020_v41  ;;  %v3093_v41 = vld [vmem:[#allocation3 + $0x3b8] sm:$0xff] }
  0x2e   :  { %1797 = vmatpush.bf16.msrb.mxu3 %v3036_v42  ;;  %v3046_v42 = vld [vmem:[#allocation3 + $0x240] sm:$0xff] }
  0x2f   :  { %1759 = vmatpush.bf16.msrb.mxu0 %v3011_v50  ;;  %v3076_v50 = vld [vmem:[#allocation3 + $0x330] sm:$0xff] }
  0x30   :  { %1785 = vmatpush.bf16.msrb.mxu2 %v3027_v51  ;;  %v3092_v51 = vld [vmem:[#allocation3 + $0x3b0] sm:$0xff] }
  0x31   :  { %1772 = vmatpush.bf16.msrb.mxu1 %v3019_v52  ;;  %v3084_v52 = vld [vmem:[#allocation3 + $0x370] sm:$0xff] }
  0x32   :  { %1798 = vmatpush.bf16.msrb.mxu3 %v3035_v53  ;;  %v3100_v53 = vld [vmem:[#allocation3 + $0x3f0] sm:$0xff] }
  0x33   :  { %1760 = vmatpush.bf16.msrb.mxu0 %v3010_v54  ;;  %v3075_v54 = vld [vmem:[#allocation3 + $0x328] sm:$0xff] }
  0x34   :  { %1786 = vmatpush.bf16.msrb.mxu2 %v3026_v55  ;;  %v3091_v55 = vld [vmem:[#allocation3 + $0x3a8] sm:$0xff] }
  0x35   :  { %1773 = vmatpush.bf16.msrb.mxu1 %v3018_v56  ;;  %v3083_v56 = vld [vmem:[#allocation3 + $0x368] sm:$0xff] }
  0x36   :  { %1799 = vmatpush.bf16.msrb.mxu3 %v3034_v57  ;;  %v3099_v57 = vld [vmem:[#allocation3 + $0x3e8] sm:$0xff] }
  0x37   :  { %1761 = vmatpush.bf16.msrb.mxu0 %v3009_v58  ;;  %v3074_v58 = vld [vmem:[#allocation3 + $0x320] sm:$0xff] }
  0x38   :  { %1787 = vmatpush.bf16.msrb.mxu2 %v3025_v59  ;;  %v3090_v59 = vld [vmem:[#allocation3 + $0x3a0] sm:$0xff] }
  0x39   :  { %1774 = vmatpush.bf16.msrb.mxu1 %v3017_v60  ;;  %v3082_v60 = vld [vmem:[#allocation3 + $0x360] sm:$0xff] }
  0x3a   :  { %1800 = vmatpush.bf16.msrb.mxu3 %v3033_v61  ;;  %v3098_v61 = vld [vmem:[#allocation3 + $0x3e0] sm:$0xff] }
  0x3b   :  { %1762 = vmatpush.bf16.msrb.mxu0 %v3008_v62  ;;  %v3073_v62 = vld [vmem:[#allocation3 + $0x318] sm:$0xff] }
  0x3c   :  { %1788 = vmatpush.bf16.msrb.mxu2 %v3024_v63  ;;  %v3089_v63 = vld [vmem:[#allocation3 + $0x398] sm:$0xff] }
  0x3d   :  { %1775 = vmatpush.bf16.msrb.mxu1 %v3016_v0  ;;  %v3081_v0 = vld [vmem:[#allocation3 + $0x358] sm:$0xff] }
  0x3e   :  { %1801 = vmatpush.bf16.msrb.mxu3 %v3032_v1  ;;  %v3097_v1 = vld [vmem:[#allocation3 + $0x3d8] sm:$0xff] }
  0x3f   :  { %1763 = vmatpush.bf16.msrb.mxu0 %v3007_v2  ;;  %v3072_v2 = vld [vmem:[#allocation3 + $0x310] sm:$0xff] }
  0x40   :  { %1789 = vmatpush.bf16.msrb.mxu2 %v3023_v3  ;;  %v3088_v3 = vld [vmem:[#allocation3 + $0x390] sm:$0xff] }
  0x41   :  { %1776 = vmatpush.bf16.msrb.mxu1 %v3015_v4  ;;  %v3080_v4 = vld [vmem:[#allocation3 + $0x350] sm:$0xff] }
  0x42   :  { %1802 = vmatpush.bf16.msrb.mxu3 %v3031_v5  ;;  %v3096_v5 = vld [vmem:[#allocation3 + $0x3d0] sm:$0xff] }
  0x43   :  { %1764 = vmatpush.bf16.msrb.mxu0 %v3006_v6  ;;  %v3071_v6 = vld [vmem:[#allocation3 + $0x308] sm:$0xff] }
  0x44   :  { %1790 = vmatpush.bf16.msrb.mxu2 %v3022_v7  ;;  %v3087_v7 = vld [vmem:[#allocation3 + $0x388] sm:$0xff] }
  0x45   :  { %1777 = vmatpush.bf16.msrb.mxu1 %v3014_v10  ;;  %v464_v10 = vld [vmem:[#allocation1 + $0x2d] sm:$0xff] }
  0x46   :  { %1803 = vmatpush.bf16.msrb.mxu3 %v3030_v11  ;;  %1765 = vmatmul.bf16.vlgmr.msrb.gmra.mxu0 %v3284_v46  ;;  %v461_v46 = vld [vmem:[#allocation1 + $0x12] sm:$0xff]  ;;  %v466_v11 = vld [vmem:[#allocation1 + $0x3f] sm:$0xff] }
  0x47   :  { %1809 = vmatpush.bf16.msra.mxu0 %v3045_v8  ;;  %1791 = vmatmul.bf16.vlgmr.msrb.gmra.mxu2 %v3282_v45  ;;  %v459_v45 = vld [vmem:[#allocation1] sm:$0xff] }
  0x48   :  { %1835 = vmatpush.bf16.msra.mxu2 %v3061_v9  ;;  %1778 = vmatmul.bf16.vlgmr.msrb.gmra.mxu1 %v3291_v49  ;;  %v462_v49 = vld [vmem:[#allocation1 + $0x1b] sm:$0xff]  ;;  %v463_v8 = vld [vmem:[#allocation1 + $0x24] sm:$0xff] }
  0x49   :  { %1822 = vmatpush.bf16.msra.mxu1 %v3053_v12  ;;  %1804 = vmatmul.bf16.vlgmr.msrb.gmra.mxu3 %v3286_v47  ;;  %v3101_v47 = vld [vmem:[#allocation3 + $0x3f8] sm:$0xff]  ;;  %v465_v9 = vld [vmem:[#allocation1 + $0x36] sm:$0xff] }
  0x4a   :  { %1848 = vmatpush.bf16.msra.mxu3 %v3069_v13  ;;  %v45_v12 = vld [vmem:[%s3336_s0 + $0x10] sm:$0xff] }
  0x4b   :  { %1810 = vmatpush.bf16.msra.mxu0 %v3044_v14  ;;  %468 = vst [vmem:[#allocation1] ss:$9 sm:$0xff] %v45_v12  ;;  %v3079_v13 = vld [vmem:[#allocation3 + $0x348] sm:$0xff]  ;;  %v3145_v12 = vld [vmem:[#allocation3 + $0x558] sm:$0xff] }
  0x4c   :  { %1836 = vmatpush.bf16.msra.mxu2 %v3060_v15  ;;  %v3095_v14 = vld [vmem:[#allocation3 + $0x3c8] sm:$0xff]  ;;  %v3070_v15 = vld [vmem:[#allocation3 + $0x300] sm:$0xff] }
  0x4d   :  { %1823 = vmatpush.bf16.msra.mxu1 %v3052_v16  ;;  %v3086_v16 = vld [vmem:[#allocation3 + $0x380] sm:$0xff] }
  0x4e   :  { %1849 = vmatpush.bf16.msra.mxu3 %v3068_v17  ;;  %v3109_v17 = vld [vmem:[#allocation3 + $0x438] sm:$0xff] }
  0x4f   :  { %1811 = vmatpush.bf16.msra.mxu0 %v3043_v18  ;;  %v3125_v18 = vld [vmem:[#allocation3 + $0x4b8] sm:$0xff] }
  0x50   :  { %1837 = vmatpush.bf16.msra.mxu2 %v3059_v19  ;;  %v3078_v19 = vld [vmem:[#allocation3 + $0x340] sm:$0xff] }
  0x51   :  { %1824 = vmatpush.bf16.msra.mxu1 %v3051_v20  ;;  %v3094_v20 = vld [vmem:[#allocation3 + $0x3c0] sm:$0xff] }
  0x52   :  { %1850 = vmatpush.bf16.msra.mxu3 %v3067_v21  ;;  %v3117_v21 = vld [vmem:[#allocation3 + $0x478] sm:$0xff] }
  0x53   :  { %1812 = vmatpush.bf16.msra.mxu0 %v3042_v22  ;;  %v3133_v22 = vld [vmem:[#allocation3 + $0x4f8] sm:$0xff] }
  0x54   :  { %1838 = vmatpush.bf16.msra.mxu2 %v3058_v23  ;;  %v3108_v23 = vld [vmem:[#allocation3 + $0x430] sm:$0xff] }
  0x55   :  { %1825 = vmatpush.bf16.msra.mxu1 %v3050_v24  ;;  %v3124_v24 = vld [vmem:[#allocation3 + $0x4b0] sm:$0xff] }
  0x56   :  { %1851 = vmatpush.bf16.msra.mxu3 %v3066_v25  ;;  %v3116_v25 = vld [vmem:[#allocation3 + $0x470] sm:$0xff] }
  0x57   :  { %1813 = vmatpush.bf16.msra.mxu0 %v3041_v26  ;;  %v3132_v26 = vld [vmem:[#allocation3 + $0x4f0] sm:$0xff] }
  0x58   :  { %1839 = vmatpush.bf16.msra.mxu2 %v3057_v27  ;;  %v3107_v27 = vld [vmem:[#allocation3 + $0x428] sm:$0xff] }
  0x59   :  { %1826 = vmatpush.bf16.msra.mxu1 %v3049_v28  ;;  %v3123_v28 = vld [vmem:[#allocation3 + $0x4a8] sm:$0xff] }
  0x5a   :  { %1852 = vmatpush.bf16.msra.mxu3 %v3065_v29  ;;  %v3115_v29 = vld [vmem:[#allocation3 + $0x468] sm:$0xff] }
  0x5b   :  { %1814 = vmatpush.bf16.msra.mxu0 %v3040_v30  ;;  %v3131_v30 = vld [vmem:[#allocation3 + $0x4e8] sm:$0xff] }
  0x5c   :  { %1840 = vmatpush.bf16.msra.mxu2 %v3056_v31  ;;  %v3106_v31 = vld [vmem:[#allocation3 + $0x420] sm:$0xff] }
  0x5d   :  { %1827 = vmatpush.bf16.msra.mxu1 %v3048_v32  ;;  %v3122_v32 = vld [vmem:[#allocation3 + $0x4a0] sm:$0xff] }
  0x5e   :  { %1853 = vmatpush.bf16.msra.mxu3 %v3064_v33  ;;  %v3114_v33 = vld [vmem:[#allocation3 + $0x460] sm:$0xff] }
  0x5f   :  { %1815 = vmatpush.bf16.msra.mxu0 %v3039_v34  ;;  %v3130_v34 = vld [vmem:[#allocation3 + $0x4e0] sm:$0xff] }
  0x60   :  { %1841 = vmatpush.bf16.msra.mxu2 %v3055_v35  ;;  %v3105_v35 = vld [vmem:[#allocation3 + $0x418] sm:$0xff] }
  0x61   :  { %1828 = vmatpush.bf16.msra.mxu1 %v3047_v36  ;;  %v3121_v36 = vld [vmem:[#allocation3 + $0x498] sm:$0xff] }
  0x62   :  { %1854 = vmatpush.bf16.msra.mxu3 %v3063_v37  ;;  %v3113_v37 = vld [vmem:[#allocation3 + $0x458] sm:$0xff] }
  0x63   :  { %1816 = vmatpush.bf16.msra.mxu0 %v3038_v38  ;;  %v3129_v38 = vld [vmem:[#allocation3 + $0x4d8] sm:$0xff] }
  0x64   :  { %1842 = vmatpush.bf16.msra.mxu2 %v3054_v39  ;;  %v3104_v39 = vld [vmem:[#allocation3 + $0x410] sm:$0xff] }
  0x65   :  { %1829 = vmatpush.bf16.msra.mxu1 %v3046_v42  ;;  %v3128_v42 = vld [vmem:[#allocation3 + $0x4d0] sm:$0xff] }
  0x66   :  { %1855 = vmatpush.bf16.msra.mxu3 %v3062_v43  ;;  %1817 = vmatmul.bf16.vlgmr.msra.gmra.mxu0 %v459_v45  ;;  %v3103_v43 = vld [vmem:[#allocation3 + $0x408] sm:$0xff] }
  0x67   :  { %1861 = vmatpush.bf16.msrb.mxu0 %v3077_v40  ;;  %1843 = vmatmul.bf16.vlgmr.msra.gmra.mxu2 %v461_v46  ;;  %v3120_v40 = vld [vmem:[#allocation3 + $0x490] sm:$0xff]  ;;  %v3111_v45 = vld [vmem:[#allocation3 + $0x448] sm:$0xff] }
  0x68   :  { %1887 = vmatpush.bf16.msrb.mxu2 %v3093_v41  ;;  %1830 = vmatmul.bf16.vlgmr.msra.gmra.mxu1 %v460_v48  ;;  %v3112_v41 = vld [vmem:[#allocation3 + $0x450] sm:$0xff]  ;;  %v3127_v46 = vld [vmem:[#allocation3 + $0x4c8] sm:$0xff]  ;;  %v3118_v48 = vld [vmem:[#allocation3 + $0x480] sm:$0xff] }
  0x69   :  { %1874 = vmatpush.bf16.msrb.mxu1 %v3085_v44  ;;  %1856 = vmatmul.bf16.vlgmr.msra.gmra.mxu3 %v462_v49  ;;  %v3119_v44 = vld [vmem:[#allocation3 + $0x488] sm:$0xff]  ;;  %v3141_v49 = vld [vmem:[#allocation3 + $0x538] sm:$0xff] }
  0x6a   :  { %1900 = vmatpush.bf16.msrb.mxu3 %v3101_v47  ;;  %v3102_v47 = vld [vmem:[#allocation3 + $0x400] sm:$0xff] }
  0x6b   :  { %1862 = vmatpush.bf16.msrb.mxu0 %v3076_v50  ;;  %v3157_v50 = vld [vmem:[#allocation3 + $0x5b8] sm:$0xff] }
  0x6c   :  { %1888 = vmatpush.bf16.msrb.mxu2 %v3092_v51  ;;  %v3110_v51 = vld [vmem:[#allocation3 + $0x440] sm:$0xff] }
  0x6d   :  { %1875 = vmatpush.bf16.msrb.mxu1 %v3084_v52  ;;  %v3126_v52 = vld [vmem:[#allocation3 + $0x4c0] sm:$0xff] }
  0x6e   :  { %1901 = vmatpush.bf16.msrb.mxu3 %v3100_v53  ;;  %v3149_v53 = vld [vmem:[#allocation3 + $0x578] sm:$0xff] }
  0x6f   :  { %1863 = vmatpush.bf16.msrb.mxu0 %v3075_v54  ;;  %v469_v54 = vld [vmem:[#allocation1] sm:$0xff] }
  0x70   :  { %1889 = vmatpush.bf16.msrb.mxu2 %v3091_v55  ;;  %v471_v55 = vld [vmem:[#allocation1 + $0x12] sm:$0xff] }
  0x71   :  { %1876 = vmatpush.bf16.msrb.mxu1 %v3083_v56  ;;  %v3165_v56 = vld [vmem:[#allocation3 + $0x5f8] sm:$0xff] }
  0x72   :  { %1902 = vmatpush.bf16.msrb.mxu3 %v3099_v57  ;;  %v470_v57 = vld [vmem:[#allocation1 + $0x9] sm:$0xff] }
  0x73   :  { %1864 = vmatpush.bf16.msrb.mxu0 %v3074_v58  ;;  %v472_v58 = vld [vmem:[#allocation1 + $0x1b] sm:$0xff] }
  0x74   :  { %1890 = vmatpush.bf16.msrb.mxu2 %v3090_v59  ;;  %v3140_v59 = vld [vmem:[#allocation3 + $0x530] sm:$0xff] }
  0x75   :  { %1877 = vmatpush.bf16.msrb.mxu1 %v3082_v60  ;;  %v3156_v60 = vld [vmem:[#allocation3 + $0x5b0] sm:$0xff] }
  0x76   :  { %1903 = vmatpush.bf16.msrb.mxu3 %v3098_v61  ;;  %v3148_v61 = vld [vmem:[#allocation3 + $0x570] sm:$0xff] }
  0x77   :  { %1865 = vmatpush.bf16.msrb.mxu0 %v3073_v62  ;;  %v3164_v62 = vld [vmem:[#allocation3 + $0x5f0] sm:$0xff] }
  0x78   :  { %1891 = vmatpush.bf16.msrb.mxu2 %v3089_v63  ;;  %v3139_v63 = vld [vmem:[#allocation3 + $0x528] sm:$0xff] }
  0x79   :  { %1878 = vmatpush.bf16.msrb.mxu1 %v3081_v0  ;;  %v3155_v0 = vld [vmem:[#allocation3 + $0x5a8] sm:$0xff] }
  0x7a   :  { %1904 = vmatpush.bf16.msrb.mxu3 %v3097_v1  ;;  %v3147_v1 = vld [vmem:[#allocation3 + $0x568] sm:$0xff] }
  0x7b   :  { %1866 = vmatpush.bf16.msrb.mxu0 %v3072_v2  ;;  %v3163_v2 = vld [vmem:[#allocation3 + $0x5e8] sm:$0xff] }
  0x7c   :  { %1892 = vmatpush.bf16.msrb.mxu2 %v3088_v3  ;;  %v3138_v3 = vld [vmem:[#allocation3 + $0x520] sm:$0xff] }
  0x7d   :  { %1879 = vmatpush.bf16.msrb.mxu1 %v3080_v4  ;;  %v3154_v4 = vld [vmem:[#allocation3 + $0x5a0] sm:$0xff] }
  0x7e   :  { %1905 = vmatpush.bf16.msrb.mxu3 %v3096_v5 }
  0x7f   :  { %1867 = vmatpush.bf16.msrb.mxu0 %v3071_v6  ;;  %v3146_v6 = vld [vmem:[#allocation3 + $0x560] sm:$0xff] }
  0x80   :  { %1893 = vmatpush.bf16.msrb.mxu2 %v3087_v7  ;;  %v3162_v7 = vld [vmem:[#allocation3 + $0x5e0] sm:$0xff] }
  0x81   :  { %1880 = vmatpush.bf16.msrb.mxu1 %v3079_v13  ;;  %v3161_v13 = vld [vmem:[#allocation3 + $0x5d8] sm:$0xff] }
  0x82   :  { %1906 = vmatpush.bf16.msrb.mxu3 %v3095_v14 }
  0x83   :  { %1868 = vmatpush.bf16.msrb.mxu0 %v3070_v15  ;;  %v3136_v15 = vld [vmem:[#allocation3 + $0x510] sm:$0xff] }
  0x84   :  { %1894 = vmatpush.bf16.msrb.mxu2 %v3086_v16  ;;  %v3152_v16 = vld [vmem:[#allocation3 + $0x590] sm:$0xff] }
  0x85   :  { %1881 = vmatpush.bf16.msrb.mxu1 %v3078_v19 }
  0x86   :  { %1907 = vmatpush.bf16.msrb.mxu3 %v3094_v20  ;;  %1869 = vmatmul.bf16.vlgmr.msrb.gmra.mxu0 %v463_v8  ;;  %v3144_v20 = vld [vmem:[#allocation3 + $0x550] sm:$0xff] }
  0x87   :  { %1913 = vmatpush.bf16.msra.mxu0 %v3109_v17  ;;  %1895 = vmatmul.bf16.vlgmr.msrb.gmra.mxu2 %v465_v9  ;;  %v3137_v9 = vld [vmem:[#allocation3 + $0x518] sm:$0xff] }
  0x88   :  { %1939 = vmatpush.bf16.msra.mxu2 %v3125_v18  ;;  %1882 = vmatmul.bf16.vlgmr.msrb.gmra.mxu1 %v464_v10  ;;  %v3153_v10 = vld [vmem:[#allocation3 + $0x598] sm:$0xff] }
  0x89   :  { %1926 = vmatpush.bf16.msra.mxu1 %v3117_v21  ;;  %1908 = vmatmul.bf16.vlgmr.msrb.gmra.mxu3 %v466_v11  ;;  %v3160_v21 = vld [vmem:[#allocation3 + $0x5d0] sm:$0xff] }
  0x8a   :  { %1952 = vmatpush.bf16.msra.mxu3 %v3133_v22  ;;  %v3135_v22 = vld [vmem:[#allocation3 + $0x508] sm:$0xff] }
  0x8b   :  { %1914 = vmatpush.bf16.msra.mxu0 %v3108_v23 }
  0x8c   :  { %1940 = vmatpush.bf16.msra.mxu2 %v3124_v24  ;;  %v3151_v24 = vld [vmem:[#allocation3 + $0x588] sm:$0xff] }
  0x8d   :  { %1927 = vmatpush.bf16.msra.mxu1 %v3116_v25  ;;  %v473_v25 = vld [vmem:[#allocation1 + $0x24] sm:$0xff] }
  0x8e   :  { %1953 = vmatpush.bf16.msra.mxu3 %v3132_v26  ;;  %v475_v26 = vld [vmem:[#allocation1 + $0x36] sm:$0xff] }
  0x8f   :  { %1915 = vmatpush.bf16.msra.mxu0 %v3107_v27 }
  0x90   :  { %1941 = vmatpush.bf16.msra.mxu2 %v3123_v28  ;;  %v474_v28 = vld [vmem:[#allocation1 + $0x2d] sm:$0xff] }
  0x91   :  { %1928 = vmatpush.bf16.msra.mxu1 %v3115_v29  ;;  %v476_v29 = vld [vmem:[#allocation1 + $0x3f] sm:$0xff] }
  0x92   :  { %1954 = vmatpush.bf16.msra.mxu3 %v3131_v30  ;;  %v46_v30 = vld [vmem:[%s3336_s0 + $0x18] sm:$0x1] }
  0x93   :  { %1916 = vmatpush.bf16.msra.mxu0 %v3106_v31  ;;  %478 = vst [vmem:[#allocation1] ss:$9 sm:$0xff] %v46_v30  ;;  %v3143_v31 = vld [vmem:[#allocation3 + $0x548] sm:$0xff]  ;;  %v3244_v30 = vmov 0.0  }
  0x94   :  { %1942 = vmatpush.bf16.msra.mxu2 %v3122_v32  ;;  %v3159_v32 = vld [vmem:[#allocation3 + $0x5c8] sm:$0xff]  ;;  %41 = vst [vmem:[#allocation2] sm:$0x3] %v3244_v30 }
  0x95   :  { %1929 = vmatpush.bf16.msra.mxu1 %v3114_v33 }
  0x96   :  { %1955 = vmatpush.bf16.msra.mxu3 %v3130_v34  ;;  %v3134_v34 = vld [vmem:[#allocation3 + $0x500] sm:$0xff] }
  0x97   :  { %1917 = vmatpush.bf16.msra.mxu0 %v3105_v35  ;;  %v3150_v35 = vld [vmem:[#allocation3 + $0x580] sm:$0xff] }
  0x98   :  { %1943 = vmatpush.bf16.msra.mxu2 %v3121_v36  ;;  %v3173_v36 = vld [vmem:[#allocation3 + $0x638] sm:$0xff] }
  0x99   :  { %1930 = vmatpush.bf16.msra.mxu1 %v3113_v37 }
  0x9a   :  { %1956 = vmatpush.bf16.msra.mxu3 %v3129_v38  ;;  %v3142_v38 = vld [vmem:[#allocation3 + $0x540] sm:$0xff] }
  0x9b   :  { %1918 = vmatpush.bf16.msra.mxu0 %v3104_v39  ;;  %v3158_v39 = vld [vmem:[#allocation3 + $0x5c0] sm:$0xff] }
  0x9c   :  { %1944 = vmatpush.bf16.msra.mxu2 %v3120_v40  ;;  %v3172_v40 = vld [vmem:[#allocation3 + $0x630] sm:$0xff] }
  0x9d   :  { %1931 = vmatpush.bf16.msra.mxu1 %v3112_v41  ;;  %v3171_v41 = vld [vmem:[#allocation3 + $0x628] sm:$0xff] }
  0x9e   :  { %1957 = vmatpush.bf16.msra.mxu3 %v3128_v42  ;;  %v3170_v42 = vld [vmem:[#allocation3 + $0x620] sm:$0xff] }
  0x9f   :  { %1919 = vmatpush.bf16.msra.mxu0 %v3103_v43 }
  0xa0   :  { %1945 = vmatpush.bf16.msra.mxu2 %v3119_v44 }
  0xa1   :  { %1932 = vmatpush.bf16.msra.mxu1 %v3111_v45 }
  0xa2   :  { %1958 = vmatpush.bf16.msra.mxu3 %v3127_v46 }
  0xa3   :  { %1920 = vmatpush.bf16.msra.mxu0 %v3102_v47  ;;  %v1714_v5 = vpop.f32.mrf.mxu0  ;;  %v3169_v47 = vld [vmem:[#allocation3 + $0x618] sm:$0xff] }
  0xa4   :  { %1946 = vmatpush.bf16.msra.mxu2 %v3118_v48 }
  0xa5   :  { %1933 = vmatpush.bf16.msra.mxu1 %v3110_v51  ;;  %v1727_v8 = vpop.f32.mrf.mxu1 }
  0xa6   :  { %1959 = vmatpush.bf16.msra.mxu3 %v3126_v52  ;;  %1921 = vmatmul.bf16.vlgmr.msra.gmra.mxu0 %v469_v54  ;;  %v1728_v11 = vadd.f32 %v1727_v8, %v1714_v5 }
  0xa7   :  { %1965 = vmatpush.bf16.msrb.mxu0 %v3141_v49  ;;  %1947 = vmatmul.bf16.vlgmr.msra.gmra.mxu2 %v471_v55  ;;  %v3167_v55 = vld [vmem:[#allocation3 + $0x608] sm:$0xff] }
  0xa8   :  { %1991 = vmatpush.bf16.msrb.mxu2 %v3157_v50  ;;  %1934 = vmatmul.bf16.vlgmr.msra.gmra.mxu1 %v470_v57  ;;  %v3168_v50 = vld [vmem:[#allocation3 + $0x610] sm:$0xff]  ;;  %v3166_v57 = vld [vmem:[#allocation3 + $0x600] sm:$0xff] }
  0xa9   :  { %1978 = vmatpush.bf16.msrb.mxu1 %v3149_v53  ;;  %1960 = vmatmul.bf16.vlgmr.msra.gmra.mxu3 %v472_v58 }
  0xaa   :  { %2004 = vmatpush.bf16.msrb.mxu3 %v3165_v56  ;;  %v1740_v14 = vpop.f32.mrf.mxu2 }
  0xab   :  { %1966 = vmatpush.bf16.msrb.mxu0 %v3140_v59  ;;  %v1741_v17 = vadd.f32 %v1740_v14, %v1728_v11  ;;  %v1716_v19 = vpop.f32.mrf.mxu0  ;;  %v479_v59 = vld [vmem:[#allocation1] sm:$0xff] }
  0xac   :  { %1992 = vmatpush.bf16.msrb.mxu2 %v3156_v60  ;;  %v1753_v18 = vpop.f32.mrf.mxu3 }
  0xad   :  { %1979 = vmatpush.bf16.msrb.mxu1 %v3148_v61  ;;  %v1754_v23 = vadd.f32 %v1753_v18, %v1741_v17  ;;  %v1729_v27 = vpop.f32.mrf.mxu1 }
  0xae   :  { %2005 = vmatpush.bf16.msrb.mxu3 %v3164_v62 }
  0xaf   :  { %1967 = vmatpush.bf16.msrb.mxu0 %v3139_v63 }
  0xb0   :  { %1993 = vmatpush.bf16.msrb.mxu2 %v3155_v0 }
  0xb1   :  { %1980 = vmatpush.bf16.msrb.mxu1 %v3147_v1 }
  0xb2   :  { %2006 = vmatpush.bf16.msrb.mxu3 %v3163_v2  ;;  %v1742_v33 = vpop.f32.mrf.mxu2 }
  0xb3   :  { %1968 = vmatpush.bf16.msrb.mxu0 %v3138_v3 }
  0xb4   :  { %1994 = vmatpush.bf16.msrb.mxu2 %v3154_v4  ;;  %v1755_v37 = vpop.f32.mrf.mxu3 }
  0xb5   :  { %1981 = vmatpush.bf16.msrb.mxu1 %v3146_v6 }
  0xb6   :  { %2007 = vmatpush.bf16.msrb.mxu3 %v3162_v7 }
  0xb7   :  { %1969 = vmatpush.bf16.msrb.mxu0 %v3137_v9 }
  0xb8   :  { %1995 = vmatpush.bf16.msrb.mxu2 %v3153_v10 }
  0xb9   :  { %1982 = vmatpush.bf16.msrb.mxu1 %v3145_v12 }
  0xba   :  { %2008 = vmatpush.bf16.msrb.mxu3 %v3161_v13 }
  0xbb   :  { %1970 = vmatpush.bf16.msrb.mxu0 %v3136_v15 }
  0xbc   :  { %1996 = vmatpush.bf16.msrb.mxu2 %v3152_v16 }
  0xbd   :  { %1983 = vmatpush.bf16.msrb.mxu1 %v3144_v20 }
  0xbe   :  { %2009 = vmatpush.bf16.msrb.mxu3 %v3160_v21 }
  0xbf   :  { %1971 = vmatpush.bf16.msrb.mxu0 %v3135_v22 }
  0xc0   :  { %1997 = vmatpush.bf16.msrb.mxu2 %v3151_v24 }
  0xc1   :  { %1984 = vmatpush.bf16.msrb.mxu1 %v3143_v31 }
  0xc2   :  { %2010 = vmatpush.bf16.msrb.mxu3 %v3159_v32  ;;  %v3178_v32 = vld [vmem:[%s3339_s3 + $0x20] sm:$0xff] }
  0xc3   :  { %1972 = vmatpush.bf16.msrb.mxu0 %v3134_v34  ;;  %v1766_v43 = vpop.f32.mrf.mxu0  ;;  %v3177_v34 = vld [vmem:[%s3339_s3 + $0x18] sm:$0xff] }
  0xc4   :  { %1998 = vmatpush.bf16.msrb.mxu2 %v3150_v35  ;;  %v1767_v44 = vadd.f32 %v1766_v43, %v1754_v23  ;;  %v3181_v23 = vld [vmem:[%s3339_s3 + $0x38] sm:$0xff]  ;;  %v3174_v43 = vld [vmem:[%s3339_s3] sm:$0xff] }
  0xc5   :  { %1985 = vmatpush.bf16.msrb.mxu1 %v3142_v38  ;;  %v1779_v45 = vpop.f32.mrf.mxu1  ;;  %v3175_v38 = vld [vmem:[%s3339_s3 + $0x8] sm:$0xff] }
  0xc6   :  { %2011 = vmatpush.bf16.msrb.mxu3 %v3158_v39  ;;  %1973 = vmatmul.bf16.vlgmr.msrb.gmra.mxu0 %v473_v25  ;;  %v1780_v46 = vadd.f32 %v1779_v45, %v1767_v44 }
  0xc7   :  { %2017 = vmatpush.bf16.msra.mxu0 %v3173_v36  ;;  %1999 = vmatmul.bf16.vlgmr.msrb.gmra.mxu2 %v475_v26  ;;  %v3180_v26 = vld [vmem:[%s3339_s3 + $0x30] sm:$0xff] }
  0xc8   :  { %1986 = vmatmul.bf16.vlgmr.msrb.gmra.mxu1 %v474_v28  ;;  %v3179_v28 = vld [vmem:[%s3339_s3 + $0x28] sm:$0xff]  ;;  %v3176_v36 = vld [vmem:[%s3339_s3 + $0x10] sm:$0xff] }
  0xc9   :  { %2012 = vmatmul.bf16.vlgmr.msrb.gmra.mxu3 %v476_v29  ;;  %2111 = vmatpush.bf16.msra.mxu1 %v3181_v23 }
  0xca   :  { %v1792_v48 = vpop.f32.mrf.mxu2 }
  0xcb   :  { %2018 = vmatpush.bf16.msra.mxu0 %v3172_v40  ;;  %v1793_v49 = vadd.f32 %v1792_v48, %v1780_v46  ;;  %v1768_v52 = vpop.f32.mrf.mxu0 }
  0xcc   :  { %v1805_v51 = vpop.f32.mrf.mxu3 }
  0xcd   :  { %v1806_v53 = vadd.f32 %v1805_v51, %v1793_v49  ;;  %v1781_v54 = vpop.f32.mrf.mxu1  ;;  %2112 = vmatpush.bf16.msra.mxu1 %v3180_v26 }
  0xcf   :  { %2019 = vmatpush.bf16.msra.mxu0 %v3171_v41 }
  0xd1   :  { %2113 = vmatpush.bf16.msra.mxu1 %v3179_v28 }
  0xd2   :  { %v1794_v56 = vpop.f32.mrf.mxu2 }
  0xd3   :  { %2020 = vmatpush.bf16.msra.mxu0 %v3170_v42 }
  0xd4   :  { %v1807_v58 = vpop.f32.mrf.mxu3 }
  0xd5   :  { %2114 = vmatpush.bf16.msra.mxu1 %v3178_v32  ;;  %v3187_v58 = vld [vmem:[%s3338_s2] ss:$0 sm:$0xff] }
  0xd7   :  { %2021 = vmatpush.bf16.msra.mxu0 %v3169_v47 }
  0xd9   :  { %2115 = vmatpush.bf16.msra.mxu1 %v3177_v34 }
  0xdb   :  { %2022 = vmatpush.bf16.msra.mxu0 %v3168_v50 }
  0xdd   :  { %2116 = vmatpush.bf16.msra.mxu1 %v3176_v36 }
  0xdf   :  { %2023 = vmatpush.bf16.msra.mxu0 %v3167_v55 }
  0xe1   :  { %2117 = vmatpush.bf16.msra.mxu1 %v3175_v38 }
  0xe3   :  { %2024 = vmatpush.bf16.msra.mxu0 %v3166_v57  ;;  %v1818_v60 = vpop.f32.mrf.mxu0 }
  0xe4   :  { %v1819_v61 = vadd.f32 %v1818_v60, %v1806_v53  ;;  %v42_v53 = vld [vmem:[#allocation2] sm:$0x3] }
  0xe5   :  { %v1831_v62 = vpop.f32.mrf.mxu1  ;;  %2118 = vmatpush.bf16.msra.mxu1 %v3174_v43 }
  0xe6   :  { %2025 = vmatmul.bf16.vlgmr.msra.gmra.mxu0 %v479_v59  ;;  %v1832_v63 = vadd.f32 %v1831_v62, %v1819_v61 }
  0xea   :  { %v1844_v0 = vpop.f32.mrf.mxu2 }
  0xeb   :  { %v1845_v1 = vadd.f32 %v1844_v0, %v1832_v63  ;;  %v1820_v3 = vpop.f32.mrf.mxu0  ;;  %v3188_v63 = vld [vmem:[%s3340_s4] ss:$0 sm:$0xff] }
  0xec   :  { %v1857_v2 = vpop.f32.mrf.mxu3 }
  0xed   :  { %v1858_v4 = vadd.f32 %v1857_v2, %v1845_v1  ;;  %v1833_v5 = vpop.f32.mrf.mxu1 }
  0xf2   :  { %v1846_v6 = vpop.f32.mrf.mxu2 }
  0xf4   :  { %v1859_v7 = vpop.f32.mrf.mxu3 }
 0x103   :  { %v1870_v8 = vpop.f32.mrf.mxu0 }
 0x104   :  { %v1871_v9 = vadd.f32 %v1870_v8, %v1858_v4 }
 0x105   :  { %v1883_v10 = vpop.f32.mrf.mxu1 }
 0x106   :  { %v1884_v11 = vadd.f32 %v1883_v10, %v1871_v9 }
 0x10a   :  { %v1896_v12 = vpop.f32.mrf.mxu2 }
 0x10b   :  { %v1897_v13 = vadd.f32 %v1896_v12, %v1884_v11  ;;  %v1872_v15 = vpop.f32.mrf.mxu0 }
 0x10c   :  { %v1909_v14 = vpop.f32.mrf.mxu3 }
 0x10d   :  { %v1910_v16 = vadd.f32 %v1909_v14, %v1897_v13  ;;  %v1885_v17 = vpop.f32.mrf.mxu1 }
 0x112   :  { %v1898_v18 = vpop.f32.mrf.mxu2 }
 0x114   :  { %v1911_v19 = vpop.f32.mrf.mxu3 }
 0x123   :  { %v1922_v20 = vpop.f32.mrf.mxu0 }
 0x124   :  { %v1923_v39 = vadd.f32 %v1922_v20, %v1910_v16 }
 0x125   :  { %v1935_v21 = vpop.f32.mrf.mxu1 }
 0x126   :  { %v1936_v44 = vadd.f32 %v1935_v21, %v1923_v39 }
 0x12a   :  { %v1948_v22 = vpop.f32.mrf.mxu2 }
 0x12b   :  { %v1924_v25 = vpop.f32.mrf.mxu0  ;;  %v1949_v45 = vadd.f32 %v1948_v22, %v1936_v44 }
 0x12c   :  { %v1961_v24 = vpop.f32.mrf.mxu3 }
 0x12d   :  { %v1937_v27 = vpop.f32.mrf.mxu1  ;;  %v1962_v48 = vadd.f32 %v1961_v24, %v1949_v45 }
 0x132   :  { %v1950_v29 = vpop.f32.mrf.mxu2 }
 0x134   :  { %v1963_v31 = vpop.f32.mrf.mxu3 }
 0x143   :  { %v1974_v33 = vpop.f32.mrf.mxu0 }
 0x144   :  { %v1975_v49 = vadd.f32 %v1974_v33, %v1962_v48 }
 0x145   :  { %v1987_v35 = vpop.f32.mrf.mxu1 }
 0x146   :  { %v1988_v50 = vadd.f32 %v1987_v35, %v1975_v49 }
 0x14a   :  { %v2000_v37 = vpop.f32.mrf.mxu2 }
 0x14b   :  { %v1976_v41 = vpop.f32.mrf.mxu0  ;;  %v2001_v51 = vadd.f32 %v2000_v37, %v1988_v50 }
 0x14c   :  { %v2013_v40 = vpop.f32.mrf.mxu3 }
 0x14d   :  { %v1989_v42 = vpop.f32.mrf.mxu1  ;;  %v2014_v52 = vadd.f32 %v2013_v40, %v2001_v51 }
 0x152   :  { %v2002_v46 = vpop.f32.mrf.mxu2 }
 0x154   :  { %v2015_v47 = vpop.f32.mrf.mxu3 }
 0x163   :  { %v2026_v54 = vpop.f32.mrf.mxu0 }
 0x164   :  { %v2027_v55 = vadd.f32 %v2026_v54, %v2014_v52 }
 0x166   :  { %v2030_v56 = vadd.f32 %v2027_v55, %v42_v53 }
 0x168   :  { %2031 = vst [vmem:[#allocation2] sm:$0x3] %v2030_v56 }
 0x16b   :  { %v2028_v57 = vpop.f32.mrf.mxu0 }
 0x16f   :  { %v2035_v59 = vld [vmem:[#allocation2] sm:$0x3] }
 0x170   :  { %v2040_v60 = vadd.f32 %v3187_v58, %v2035_v59 }
 0x172   :  { %v2041_v61 = vmax.f32 %v2040_v60, 0.0 }
 0x174   :  { %v2042_v62 = vpack.c.bf16 %v2041_v61, %v2041_v61 }
 0x176   :  { %2119 = vmatmul.bf16.vlgmr.msra.gmra.mxu1 %v2042_v62 }
 0x1f3   :  { %v2120_v0 = vpop.f32.mrf.mxu1 }
 0x1f4   :  { %v2121_v1 = vadd.f32 %v3188_v63, %v2120_v0 }
 0x1f6   :  { %2124 = vst [vmem:[#allocation6] sm:$0x3] %v2121_v1 }
 0x1f7   :  { %2135 = dma.vmem_to_hbm [thread:$0]  %s2131_s25, 32, %s2133_s28, [#allocation5]  }
 0x1fb   :  { %v2122_v2 = vpop.f32.mrf.mxu1 }
 0x1fc   :  { %3239 = dma.done.wait [#allocation5], 32  }
 0x1fd   :  { %3240 = vsyncadd [#allocation5], 4294967264 }
 0x1fe   :  { %2140 = vsyncpa [#allocation4], 1 }
 0x1ff   :  { %2141 = vsyncpa [#allocation5], 1 }

</bundles_post_ra>
